<compile_context>
chip_gen: v5e
topology: v5e:2x2
jax: 0.10.0
libtpu: 0.0.40
codegen_flags: <defaults>
</compile_context>

<pallas_src>
import functools
import math

import jax
import jax.numpy as jnp
import numpy as np
from jax.experimental import pallas as pl
from jax.experimental.pallas import tpu as pltpu


# ----------------------------------------------------------------------------
# Helpers (kernel side uses only ops with guaranteed Mosaic lowerings)
# ----------------------------------------------------------------------------
def _full_spec(shape):
  n = len(shape)
  return pl.BlockSpec(shape, lambda b: (0,) * n)


def _linear(x, w, b):
  # x: (T, In); w: (Out, In) (torch Linear layout); b: (1, Out)
  return jax.lax.dot_general(
      x, w, (((1,), (1,)), ((), ())),
      preferred_element_type=jnp.float32) + b


def _sigmoid(x):
  return 1.0 / (1.0 + jnp.exp(-x))


def _erf(x):
  # Abramowitz & Stegun 7.1.26, |err| < 1.5e-7 (exp/mul/where only).
  ax = jnp.abs(x)
  t = 1.0 / (1.0 + 0.3275911 * ax)
  poly = t * (0.254829592 + t * (-0.284496736 + t * (1.421413741
              + t * (-1.453152027 + t * 1.061405429))))
  y = 1.0 - poly * jnp.exp(-ax * ax)
  return jnp.where(x >= 0, y, -y)


def _attend_heads(q, k, v, num_heads):
  """Per-head softmax attention; returns (T, E) with heads concatenated."""
  e = q.shape[-1]
  dh = e // num_heads
  outs = []
  for h in range(num_heads):
    sl = slice(h * dh, (h + 1) * dh)
    qh, kh, vh = q[:, sl], k[:, sl], v[:, sl]
    s = jax.lax.dot_general(qh, kh, (((1,), (1,)), ((), ())),
                            preferred_element_type=jnp.float32)     # (T, S)
    s = s - jnp.max(s, axis=-1, keepdims=True)
    p = jnp.exp(s)
    p = p / jnp.sum(p, axis=-1, keepdims=True)                      # exact
    outs.append(jnp.dot(p, vh, preferred_element_type=jnp.float32))
  return jnp.concatenate(outs, axis=-1)


# ----------------------------------------------------------------------------
# Fused kernel: one batch element per grid step, everything resident in VMEM
# ----------------------------------------------------------------------------
def _fused_kernel(heads, cache_dim,
                  x_ref,
                  wqkv_s_ref, bqkv_s_ref, wo_s_ref, bo_s_ref,
                  wq_m_ref, bq_m_ref, wkv_m_ref, bkv_m_ref,
                  wo_m_ref, bo_m_ref,
                  wu_ref, bu_ref, wa_ref, ba_ref, gamma_ref, beta_ref,
                  w_taps_ref, conv_bias_ref, s_sel_ref, oma_ref,
                  o_ref):
  C = x_ref.shape[2]
  Cc = cache_dim
  x = x_ref[0]                                                      # (T, C)

  # ---- self attention (fused QKV; 1/sqrt(dh) folded into Wq/bq) -----------
  qkv = _linear(x, wqkv_s_ref[...], bqkv_s_ref[...])                # (T, 3C)
  attn_s = _attend_heads(qkv[:, :C], qkv[:, C:2 * C], qkv[:, 2 * C:], heads)
  x_self = _linear(attn_s, wo_s_ref[...], bo_s_ref[...])            # (T, C)

  # ---- GRC gate (gr_cache == 0: reset gate & cache halves fold away) ------
  z = _sigmoid(_linear(x_self, wu_ref[...], bu_ref[...]))           # (T, Cc)
  a = _linear(x_self, wa_ref[...], ba_ref[...])                     # (T, Cc)
  a = 0.5 * a * (1.0 + _erf(a * (1.0 / math.sqrt(2.0))))            # GELU
  mu = jnp.mean(a, axis=-1, keepdims=True)
  var = jnp.mean(jnp.square(a - mu), axis=-1, keepdims=True)
  a = (a - mu) * jax.lax.rsqrt(var + 1e-5) * gamma_ref[...] + beta_ref[...]
  cache_new = z * a                                                 # (T, Cc)

  # ---- memory attention (query slice + 1/sqrt(dc) folded into wq_m) -------
  q_m = _linear(x, wq_m_ref[...], bq_m_ref[...])                    # (T, Cc)
  kv_m = _linear(cache_new, wkv_m_ref[...], bkv_m_ref[...])         # (T, 2Cc)
  attn_m = _attend_heads(q_m, kv_m[:, :Cc], kv_m[:, Cc:], heads)    # (T, Cc)
  # head-scatter + zero padding + alpha are folded into wo_m / bo_m:
  mem_contrib = _linear(attn_m, wo_m_ref[...], bo_m_ref[...])       # (T, C)

  # ---- grouped 3x3 conv positional embedding as 9 selection matmuls -------
  # spa = conv_bias + sum_t S_t @ (x @ W_t)   (S_t: (T,T) shift/valid mask,
  # already zero for the cls row; bias already zeroed on the cls row).
  spa = conv_bias_ref[...]                                          # (T, C)
  for t in range(9):
    xw = jnp.dot(x, w_taps_ref[t], preferred_element_type=jnp.float32)
    spa = spa + jnp.dot(s_sel_ref[t], xw, preferred_element_type=jnp.float32)

  # ---- combine -------------------------------------------------------------
  o_ref[0] = mem_contrib + oma_ref[...] * x_self + spa


# ----------------------------------------------------------------------------
# Forward wrapper: constant-fold / repack weights, then ONE pallas_call
# ----------------------------------------------------------------------------
def grc_self_attention_forward(x, params, *, heads, cache_dim, cls_dim=1):
  B, T, C = x.shape
  H = W = int(round(math.sqrt(T - cls_dim)))
  Cc = cache_dim
  dh = C // heads
  dc = Cc // heads

  # self-attention: fused QKV with the 1/sqrt(dh) scale folded into q
  wq, wk, wv, bq, bk, bv, wo_s, bo_s = params['attn_self']
  scale_s = 1.0 / math.sqrt(dh)
  wqkv_s = jnp.concatenate([wq * scale_s, wk, wv], axis=0)          # (3C, C)
  bqkv_s = jnp.concatenate([bq * scale_s, bk, bv], axis=1)          # (1, 3C)

  # memory attention: fold the x[:, :, :Cc] query slice (zero columns) and the
  # 1/sqrt(dc) scale into wq_m; fuse K/V projections.
  wqm, wkm, wvm, bqm, bkm, bvm, wom, bom = params['attn_mem']
  scale_m = 1.0 / math.sqrt(dc)
  zpad = jnp.zeros((Cc, C - Cc), jnp.float32)
  wq_m = jnp.concatenate([wqm * scale_m, zpad], axis=1)             # (Cc, C)
  bq_m = bqm * scale_m
  wkv_m = jnp.concatenate([wkm, wvm], axis=0)                       # (2Cc, Cc)
  bkv_m = jnp.concatenate([bkm, bvm], axis=1)                       # (1, 2Cc)

  # fold per-head scatter (pad to C) + alpha blend into the mem out-projection
  alpha_h = jax.nn.sigmoid(params['lam'])                           # (heads,)
  scatter = np.zeros((Cc, C), np.float32)
  for h in range(heads):
    for j in range(dc):
      scatter[h * dc + j, h * dh + j] = 1.0
  p_alpha = jnp.asarray(scatter) * jnp.repeat(alpha_h, dc)[:, None]  # (Cc, C)
  wo_m = p_alpha.T @ wom                                            # (C, Cc)
  bo_m = bom @ p_alpha                                              # (1, C)
  one_minus_alpha = (1.0 - jnp.repeat(alpha_h, dh)).reshape(1, C)

  # GRC gate: gr_cache is identically zero in this forward-only path, so only
  # the x_summary halves of the update/add weights survive; pad them with zero
  # columns so the kernel can feed x_self (full C) without a lane slice.
  _wr, _br, wu, bu, wa, ba, gamma, beta = params['gate']
  wu_eff = jnp.concatenate([wu[:, Cc:], zpad], axis=1)              # (Cc, C)
  wa_eff = jnp.concatenate([wa[:, Cc:], zpad], axis=1)              # (Cc, C)

  # grouped conv: per-tap channel-mix matrices (ic, oc) + (T, T) selection
  # matrices that pick input row (i+di, j+dj) for output row (i, j), zero when
  # out of bounds and zero on the cls row(s).
  wd = params['conv_w_dense']                                       # (C, C, 3, 3)
  w_taps = jnp.transpose(wd, (2, 3, 1, 0)).reshape(9, C, C)         # [t, ic, oc]
  s_sel_np = np.zeros((9, T, T), np.float32)
  for kh in range(3):
    for kw in range(3):
      t = kh * 3 + kw
      di, dj = kh - 1, kw - 1
      for i in range(H):
        for j in range(W):
          ii, jj = i + di, j + dj
          if 0 <= ii < H and 0 <= jj < W:
            s_sel_np[t, cls_dim + i * W + j, cls_dim + ii * W + jj] = 1.0
  s_sel = jnp.asarray(s_sel_np)                                     # (9, T, T)
  conv_bias_full = jnp.concatenate(
      [jnp.zeros((cls_dim, C), jnp.float32),
       jnp.broadcast_to(params['conv_b'].reshape(1, C), (T - cls_dim, C))],
      axis=0)                                                       # (T, C)

  weights = (wqkv_s, bqkv_s, wo_s, bo_s,
             wq_m, bq_m, wkv_m, bkv_m, wo_m, bo_m,
             wu_eff, bu, wa_eff, ba, gamma, beta,
             w_taps, conv_bias_full, s_sel, one_minus_alpha)

  kernel = functools.partial(_fused_kernel, heads, Cc)
  return pl.pallas_call(
      kernel,
      out_shape=jax.ShapeDtypeStruct((B, T, C), jnp.float32),
      grid=(B,),
      in_specs=[pl.BlockSpec((1, T, C), lambda b: (b, 0, 0))]
              + [_full_spec(w.shape) for w in weights],
      out_specs=pl.BlockSpec((1, T, C), lambda b: (b, 0, 0)),
      compiler_params=pltpu.CompilerParams(
          dimension_semantics=("parallel",)),   # batch shards across TCs
  )(x, *weights)


# ----------------------------------------------------------------------------
# Deterministic synthetic parameters (shapes from the module's __init__)
# ----------------------------------------------------------------------------
def init_params(key, dim, heads, cache_dim):
  ks = iter(jax.random.split(key, 32))

  def w(shape, scale=0.1):
    return (scale * jax.random.normal(next(ks), shape)).astype(jnp.float32)

  def attn_params(e):
    # (Wq, Wk, Wv, bq, bk, bv, Wout, bout) -- torch (out, in) layout
    return (w((e, e)), w((e, e)), w((e, e)),
            w((1, e)), w((1, e)), w((1, e)),
            w((e, e)), w((1, e)))

  params = {
      'attn_self': attn_params(dim),
      'attn_mem': attn_params(cache_dim),
      'gate': (w((cache_dim, 2 * cache_dim)), w((1, cache_dim)),   # reset
               w((cache_dim, 2 * cache_dim)), w((1, cache_dim)),   # update
               w((cache_dim, 2 * cache_dim)), w((1, cache_dim)),   # add
               jnp.ones((1, cache_dim), jnp.float32),              # LN gamma
               jnp.zeros((1, cache_dim), jnp.float32)),            # LN beta
      'lam': -jnp.ones((heads,), jnp.float32),    # torch.zeros(heads) - 1
  }

  # Conv2d(dim, dim, 3, groups=cache_dim): weight (dim, dim//cache_dim, 3, 3)
  in_per_g = dim // cache_dim
  out_per_g = dim // cache_dim
  conv_w = w((dim, in_per_g, 3, 3))
  conv_b = w((dim, 1))
  wd = jnp.zeros((dim, dim, 3, 3), jnp.float32)
  for oc in range(dim):
    g0 = (oc // out_per_g) * in_per_g
    wd = wd.at[oc, g0:g0 + in_per_g].set(conv_w[oc])
  params['conv_w_grouped'] = conv_w
  params['conv_b'] = conv_b
  params['conv_w_dense'] = wd            # group structure baked into zeros
  return params


# ----------------------------------------------------------------------------
# Pure-JAX reference (for correctness check of the Pallas kernel)
# ----------------------------------------------------------------------------
def _ref_mha(xq, xkv, p, num_heads):
  wq, wk, wv, bq, bk, bv, wo, bo = p
  B, T, _ = xq.shape
  S = xkv.shape[1]
  E = wq.shape[0]
  dh = E // num_heads
  q = (jnp.einsum('bti,oi->bto', xq, wq) + bq).reshape(B, T, num_heads, dh)
  k = (jnp.einsum('bsi,oi->bso', xkv, wk) + bk).reshape(B, S, num_heads, dh)
  v = (jnp.einsum('bsi,oi->bso', xkv, wv) + bv).reshape(B, S, num_heads, dh)
  q = q / math.sqrt(dh)
  s = jnp.einsum('bthd,bshd->bhts', q, k)
  p_attn = jax.nn.softmax(s, axis=-1)
  o = jnp.einsum('bhts,bshd->bthd', p_attn, v).reshape(B, T, E)
  return jnp.einsum('bti,oi->bto', o, wo) + bo


def ref_forward(x, params, heads, cache_dim, cls_dim):
  B, T, C = x.shape
  H = W = int(round(math.sqrt(T - cls_dim)))
  x_sp = x[:, cls_dim:, :].reshape(B, H, W, C).transpose(0, 3, 1, 2)
  conv = jax.lax.conv_general_dilated(
      x_sp, params['conv_w_grouped'], (1, 1), ((1, 1), (1, 1)),
      dimension_numbers=('NCHW', 'OIHW', 'NCHW'),
      feature_group_count=cache_dim) + params['conv_b'].reshape(1, C, 1, 1)
  spa = conv.reshape(B, C, H * W).transpose(0, 2, 1)
  spa = jnp.concatenate([jnp.zeros((B, cls_dim, C), x.dtype), spa], axis=1)

  x_self = _ref_mha(x, x, params['attn_self'], heads)
  cache = jnp.zeros((B, T, cache_dim), jnp.float32)
  xs = x_self[:, :, :cache_dim]
  wr, br, wu, bu, wa, ba, g, be = params['gate']
  cat = jnp.concatenate([cache, xs], -1)
  r = jax.nn.sigmoid(jnp.einsum('bti,oi->bto', cat, wr) + br)
  z = jax.nn.sigmoid(jnp.einsum('bti,oi->bto', cat, wu) + bu)
  cat2 = jnp.concatenate([r * cache, xs], -1)
  a = jnp.einsum('bti,oi->bto', cat2, wa) + ba
  a = 0.5 * a * (1.0 + jax.lax.erf(a / math.sqrt(2.0)))
  mu = a.mean(-1, keepdims=True)
  var = ((a - mu) ** 2).mean(-1, keepdims=True)
  a = (a - mu) * jax.lax.rsqrt(var + 1e-5) * g + be
  cache_new = z * a + (1 - z) * cache

  x_mem = _ref_mha(x[:, :, :cache_dim], cache_new, params['attn_mem'], heads)
  dh = C // heads
  dc = cache_dim // heads
  x_mem_pad = jnp.concatenate(
      [x_mem.reshape(B, T, heads, dc),
       jnp.zeros((B, T, heads, dh - dc), x.dtype)], -1).reshape(B, T, C)
  alpha_c = jnp.repeat(jax.nn.sigmoid(params['lam']), dh).reshape(1, 1, C)
  return alpha_c * x_mem_pad + (1 - alpha_c) * x_self + spa


# ----------------------------------------------------------------------------
if __name__ == "__main__":
  B, heads, dim = 2, 4, 32
  cache_dim = dim // 2          # cache_ratio = 0.5
  cls_dim = 1
  H = W = 4
  T = H * W + cls_dim           # 17 tokens (1 cls + 16 spatial)

  key = jax.random.PRNGKey(0)
  kx, kp = jax.random.split(key)
  x = jax.random.normal(kx, (B, T, dim), jnp.float32)
  params = init_params(kp, dim, heads, cache_dim)

  fwd = jax.jit(functools.partial(grc_self_attention_forward,
                                  heads=heads, cache_dim=cache_dim,
                                  cls_dim=cls_dim))
  out = jax.block_until_ready(fwd(x, params))

  ref = ref_forward(x, params, heads, cache_dim, cls_dim)
  assert out.shape == (B, T, dim)
  assert bool(jnp.all(jnp.isfinite(out)))
  np.testing.assert_allclose(np.asarray(out), np.asarray(ref),
                             rtol=2e-4, atol=2e-4)
  print("KERNEL_OK")
</pallas_src>

<mosaic_0001>
module attributes {stable_mosaic.version = 11 : i64} {
  func.func @_fused_kernel(%arg0: i32, %arg1: memref<1x17x32xf32, #tpu.memory_space<vmem>>, %arg2: memref<96x32xf32, #tpu.memory_space<vmem>>, %arg3: memref<1x96xf32, #tpu.memory_space<vmem>>, %arg4: memref<32x32xf32, #tpu.memory_space<vmem>>, %arg5: memref<1x32xf32, #tpu.memory_space<vmem>>, %arg6: memref<16x32xf32, #tpu.memory_space<vmem>>, %arg7: memref<1x16xf32, #tpu.memory_space<vmem>>, %arg8: memref<32x16xf32, #tpu.memory_space<vmem>>, %arg9: memref<1x32xf32, #tpu.memory_space<vmem>>, %arg10: memref<32x16xf32, #tpu.memory_space<vmem>>, %arg11: memref<1x32xf32, #tpu.memory_space<vmem>>, %arg12: memref<16x32xf32, #tpu.memory_space<vmem>>, %arg13: memref<1x16xf32, #tpu.memory_space<vmem>>, %arg14: memref<16x32xf32, #tpu.memory_space<vmem>>, %arg15: memref<1x16xf32, #tpu.memory_space<vmem>>, %arg16: memref<1x16xf32, #tpu.memory_space<vmem>>, %arg17: memref<1x16xf32, #tpu.memory_space<vmem>>, %arg18: memref<9x32x32xf32, #tpu.memory_space<vmem>>, %arg19: memref<17x32xf32, #tpu.memory_space<vmem>>, %arg20: memref<9x17x17xf32, #tpu.memory_space<vmem>>, %arg21: memref<1x32xf32, #tpu.memory_space<vmem>>, %arg22: memref<1x17x32xf32, #tpu.memory_space<vmem>>) attributes {dimension_semantics = [#tpu.dimension_semantics<parallel>], iteration_bounds = array<i64: 2>, scalar_prefetch = 0 : i64, scratch_operands = 0 : i64, tpu.core_type = #tpu.core_type<tc>, window_params = [{transform_indices = @transform_0, window_bounds = array<i64: 1, 17, 32>}, {pipeline_mode = #tpu.pipeline_mode<synchronous>, transform_indices = @transform_1, window_bounds = array<i64: 96, 32>}, {pipeline_mode = #tpu.pipeline_mode<synchronous>, transform_indices = @transform_2, window_bounds = array<i64: 1, 96>}, {pipeline_mode = #tpu.pipeline_mode<synchronous>, transform_indices = @transform_3, window_bounds = array<i64: 32, 32>}, {pipeline_mode = #tpu.pipeline_mode<synchronous>, transform_indices = @transform_4, window_bounds = array<i64: 1, 32>}, {pipeline_mode = #tpu.pipeline_mode<synchronous>, transform_indices = @transform_5, window_bounds = array<i64: 16, 32>}, {pipeline_mode = #tpu.pipeline_mode<synchronous>, transform_indices = @transform_6, window_bounds = array<i64: 1, 16>}, {pipeline_mode = #tpu.pipeline_mode<synchronous>, transform_indices = @transform_7, window_bounds = array<i64: 32, 16>}, {pipeline_mode = #tpu.pipeline_mode<synchronous>, transform_indices = @transform_8, window_bounds = array<i64: 1, 32>}, {pipeline_mode = #tpu.pipeline_mode<synchronous>, transform_indices = @transform_9, window_bounds = array<i64: 32, 16>}, {pipeline_mode = #tpu.pipeline_mode<synchronous>, transform_indices = @transform_10, window_bounds = array<i64: 1, 32>}, {pipeline_mode = #tpu.pipeline_mode<synchronous>, transform_indices = @transform_11, window_bounds = array<i64: 16, 32>}, {pipeline_mode = #tpu.pipeline_mode<synchronous>, transform_indices = @transform_12, window_bounds = array<i64: 1, 16>}, {pipeline_mode = #tpu.pipeline_mode<synchronous>, transform_indices = @transform_13, window_bounds = array<i64: 16, 32>}, {pipeline_mode = #tpu.pipeline_mode<synchronous>, transform_indices = @transform_14, window_bounds = array<i64: 1, 16>}, {pipeline_mode = #tpu.pipeline_mode<synchronous>, transform_indices = @transform_15, window_bounds = array<i64: 1, 16>}, {pipeline_mode = #tpu.pipeline_mode<synchronous>, transform_indices = @transform_16, window_bounds = array<i64: 1, 16>}, {pipeline_mode = #tpu.pipeline_mode<synchronous>, transform_indices = @transform_17, window_bounds = array<i64: 9, 32, 32>}, {pipeline_mode = #tpu.pipeline_mode<synchronous>, transform_indices = @transform_18, window_bounds = array<i64: 17, 32>}, {pipeline_mode = #tpu.pipeline_mode<synchronous>, transform_indices = @transform_19, window_bounds = array<i64: 9, 17, 17>}, {pipeline_mode = #tpu.pipeline_mode<synchronous>, transform_indices = @transform_20, window_bounds = array<i64: 1, 32>}, {transform_indices = @transform_21, window_bounds = array<i64: 1, 17, 32>}]} {
    %c0 = arith.constant 0 : index
    %c0_0 = arith.constant 0 : index
    %c0_1 = arith.constant 0 : index
    %0 = vector.load %arg1[%c0, %c0_0, %c0_1] : memref<1x17x32xf32, #tpu.memory_space<vmem>>, vector<1x17x32xf32>
    %1 = vector.shape_cast %0 : vector<1x17x32xf32> to vector<17x32xf32>
    %c0_2 = arith.constant 0 : index
    %c0_3 = arith.constant 0 : index
    %2 = vector.load %arg2[%c0_2, %c0_3] : memref<96x32xf32, #tpu.memory_space<vmem>>, vector<96x32xf32>
    %c0_4 = arith.constant 0 : index
    %c0_5 = arith.constant 0 : index
    %3 = vector.load %arg3[%c0_4, %c0_5] : memref<1x96xf32, #tpu.memory_space<vmem>>, vector<1x96xf32>
    %cst = arith.constant dense<0.000000e+00> : vector<17x96xf32>
    %4 = tpu.matmul %1, %2, %cst {dimension_numbers = #tpu.dot_dimension_numbers<[1], [1], [0], [0], [0, 0, 1, 0], [], []>} : vector<17x32xf32>, vector<96x32xf32>, vector<17x96xf32> -> vector<17x96xf32>
    %5 = vector.broadcast %3 : vector<1x96xf32> to vector<17x96xf32>
    %6 = arith.addf %4, %5 : vector<17x96xf32>
    %7 = vector.extract_strided_slice %6 {offsets = [0, 0], sizes = [17, 32], strides = [1, 1]} : vector<17x96xf32> to vector<17x32xf32>
    %8 = vector.extract_strided_slice %6 {offsets = [0, 32], sizes = [17, 32], strides = [1, 1]} : vector<17x96xf32> to vector<17x32xf32>
    %9 = vector.extract_strided_slice %6 {offsets = [0, 64], sizes = [17, 32], strides = [1, 1]} : vector<17x96xf32> to vector<17x32xf32>
    %10 = vector.extract_strided_slice %7 {offsets = [0, 0], sizes = [17, 8], strides = [1, 1]} : vector<17x32xf32> to vector<17x8xf32>
    %11 = vector.extract_strided_slice %8 {offsets = [0, 0], sizes = [17, 8], strides = [1, 1]} : vector<17x32xf32> to vector<17x8xf32>
    %12 = vector.extract_strided_slice %9 {offsets = [0, 0], sizes = [17, 8], strides = [1, 1]} : vector<17x32xf32> to vector<17x8xf32>
    %cst_6 = arith.constant dense<0.000000e+00> : vector<17x17xf32>
    %13 = tpu.matmul %10, %11, %cst_6 {dimension_numbers = #tpu.dot_dimension_numbers<[1], [1], [0], [0], [0, 0, 1, 0], [], []>} : vector<17x8xf32>, vector<17x8xf32>, vector<17x17xf32> -> vector<17x17xf32>
    %cst_7 = arith.constant dense<0xFF800000> : vector<17xf32>
    %14 = vector.multi_reduction <maximumf>, %13, %cst_7 [1] : vector<17x17xf32> to vector<17xf32>
    %15 = vector.shape_cast %14 : vector<17xf32> to vector<17x1xf32>
    %16 = vector.broadcast %15 : vector<17x1xf32> to vector<17x17xf32>
    %17 = arith.subf %13, %16 : vector<17x17xf32>
    %18 = math.exp %17 : vector<17x17xf32>
    %cst_8 = arith.constant dense<0.000000e+00> : vector<17xf32>
    %19 = vector.multi_reduction <add>, %18, %cst_8 [1] : vector<17x17xf32> to vector<17xf32>
    %20 = vector.shape_cast %19 : vector<17xf32> to vector<17x1xf32>
    %21 = vector.broadcast %20 : vector<17x1xf32> to vector<17x17xf32>
    %22 = arith.divf %18, %21 : vector<17x17xf32>
    %cst_9 = arith.constant dense<0.000000e+00> : vector<17x8xf32>
    %23 = tpu.matmul %22, %12, %cst_9 {dimension_numbers = #tpu.dot_dimension_numbers<[1], [0], [0], [1], [0, 0, 1, 1], [], []>} : vector<17x17xf32>, vector<17x8xf32>, vector<17x8xf32> -> vector<17x8xf32>
    %24 = vector.extract_strided_slice %7 {offsets = [0, 8], sizes = [17, 8], strides = [1, 1]} : vector<17x32xf32> to vector<17x8xf32>
    %25 = vector.extract_strided_slice %8 {offsets = [0, 8], sizes = [17, 8], strides = [1, 1]} : vector<17x32xf32> to vector<17x8xf32>
    %26 = vector.extract_strided_slice %9 {offsets = [0, 8], sizes = [17, 8], strides = [1, 1]} : vector<17x32xf32> to vector<17x8xf32>
    %cst_10 = arith.constant dense<0.000000e+00> : vector<17x17xf32>
    %27 = tpu.matmul %24, %25, %cst_10 {dimension_numbers = #tpu.dot_dimension_numbers<[1], [1], [0], [0], [0, 0, 1, 0], [], []>} : vector<17x8xf32>, vector<17x8xf32>, vector<17x17xf32> -> vector<17x17xf32>
    %cst_11 = arith.constant dense<0xFF800000> : vector<17xf32>
    %28 = vector.multi_reduction <maximumf>, %27, %cst_11 [1] : vector<17x17xf32> to vector<17xf32>
    %29 = vector.shape_cast %28 : vector<17xf32> to vector<17x1xf32>
    %30 = vector.broadcast %29 : vector<17x1xf32> to vector<17x17xf32>
    %31 = arith.subf %27, %30 : vector<17x17xf32>
    %32 = math.exp %31 : vector<17x17xf32>
    %cst_12 = arith.constant dense<0.000000e+00> : vector<17xf32>
    %33 = vector.multi_reduction <add>, %32, %cst_12 [1] : vector<17x17xf32> to vector<17xf32>
    %34 = vector.shape_cast %33 : vector<17xf32> to vector<17x1xf32>
    %35 = vector.broadcast %34 : vector<17x1xf32> to vector<17x17xf32>
    %36 = arith.divf %32, %35 : vector<17x17xf32>
    %cst_13 = arith.constant dense<0.000000e+00> : vector<17x8xf32>
    %37 = tpu.matmul %36, %26, %cst_13 {dimension_numbers = #tpu.dot_dimension_numbers<[1], [0], [0], [1], [0, 0, 1, 1], [], []>} : vector<17x17xf32>, vector<17x8xf32>, vector<17x8xf32> -> vector<17x8xf32>
    %38 = vector.extract_strided_slice %7 {offsets = [0, 16], sizes = [17, 8], strides = [1, 1]} : vector<17x32xf32> to vector<17x8xf32>
    %39 = vector.extract_strided_slice %8 {offsets = [0, 16], sizes = [17, 8], strides = [1, 1]} : vector<17x32xf32> to vector<17x8xf32>
    %40 = vector.extract_strided_slice %9 {offsets = [0, 16], sizes = [17, 8], strides = [1, 1]} : vector<17x32xf32> to vector<17x8xf32>
    %cst_14 = arith.constant dense<0.000000e+00> : vector<17x17xf32>
    %41 = tpu.matmul %38, %39, %cst_14 {dimension_numbers = #tpu.dot_dimension_numbers<[1], [1], [0], [0], [0, 0, 1, 0], [], []>} : vector<17x8xf32>, vector<17x8xf32>, vector<17x17xf32> -> vector<17x17xf32>
    %cst_15 = arith.constant dense<0xFF800000> : vector<17xf32>
    %42 = vector.multi_reduction <maximumf>, %41, %cst_15 [1] : vector<17x17xf32> to vector<17xf32>
    %43 = vector.shape_cast %42 : vector<17xf32> to vector<17x1xf32>
    %44 = vector.broadcast %43 : vector<17x1xf32> to vector<17x17xf32>
    %45 = arith.subf %41, %44 : vector<17x17xf32>
    %46 = math.exp %45 : vector<17x17xf32>
    %cst_16 = arith.constant dense<0.000000e+00> : vector<17xf32>
    %47 = vector.multi_reduction <add>, %46, %cst_16 [1] : vector<17x17xf32> to vector<17xf32>
    %48 = vector.shape_cast %47 : vector<17xf32> to vector<17x1xf32>
    %49 = vector.broadcast %48 : vector<17x1xf32> to vector<17x17xf32>
    %50 = arith.divf %46, %49 : vector<17x17xf32>
    %cst_17 = arith.constant dense<0.000000e+00> : vector<17x8xf32>
    %51 = tpu.matmul %50, %40, %cst_17 {dimension_numbers = #tpu.dot_dimension_numbers<[1], [0], [0], [1], [0, 0, 1, 1], [], []>} : vector<17x17xf32>, vector<17x8xf32>, vector<17x8xf32> -> vector<17x8xf32>
    %52 = vector.extract_strided_slice %7 {offsets = [0, 24], sizes = [17, 8], strides = [1, 1]} : vector<17x32xf32> to vector<17x8xf32>
    %53 = vector.extract_strided_slice %8 {offsets = [0, 24], sizes = [17, 8], strides = [1, 1]} : vector<17x32xf32> to vector<17x8xf32>
    %54 = vector.extract_strided_slice %9 {offsets = [0, 24], sizes = [17, 8], strides = [1, 1]} : vector<17x32xf32> to vector<17x8xf32>
    %cst_18 = arith.constant dense<0.000000e+00> : vector<17x17xf32>
    %55 = tpu.matmul %52, %53, %cst_18 {dimension_numbers = #tpu.dot_dimension_numbers<[1], [1], [0], [0], [0, 0, 1, 0], [], []>} : vector<17x8xf32>, vector<17x8xf32>, vector<17x17xf32> -> vector<17x17xf32>
    %cst_19 = arith.constant dense<0xFF800000> : vector<17xf32>
    %56 = vector.multi_reduction <maximumf>, %55, %cst_19 [1] : vector<17x17xf32> to vector<17xf32>
    %57 = vector.shape_cast %56 : vector<17xf32> to vector<17x1xf32>
    %58 = vector.broadcast %57 : vector<17x1xf32> to vector<17x17xf32>
    %59 = arith.subf %55, %58 : vector<17x17xf32>
    %60 = math.exp %59 : vector<17x17xf32>
    %cst_20 = arith.constant dense<0.000000e+00> : vector<17xf32>
    %61 = vector.multi_reduction <add>, %60, %cst_20 [1] : vector<17x17xf32> to vector<17xf32>
    %62 = vector.shape_cast %61 : vector<17xf32> to vector<17x1xf32>
    %63 = vector.broadcast %62 : vector<17x1xf32> to vector<17x17xf32>
    %64 = arith.divf %60, %63 : vector<17x17xf32>
    %cst_21 = arith.constant dense<0.000000e+00> : vector<17x8xf32>
    %65 = tpu.matmul %64, %54, %cst_21 {dimension_numbers = #tpu.dot_dimension_numbers<[1], [0], [0], [1], [0, 0, 1, 1], [], []>} : vector<17x17xf32>, vector<17x8xf32>, vector<17x8xf32> -> vector<17x8xf32>
    %66 = tpu.concatenate %23, %37, %51, %65 in 1 : vector<17x8xf32>, vector<17x8xf32>, vector<17x8xf32>, vector<17x8xf32> -> vector<17x32xf32>
    %c0_22 = arith.constant 0 : index
    %c0_23 = arith.constant 0 : index
    %67 = vector.load %arg4[%c0_22, %c0_23] : memref<32x32xf32, #tpu.memory_space<vmem>>, vector<32x32xf32>
    %c0_24 = arith.constant 0 : index
    %c0_25 = arith.constant 0 : index
    %68 = vector.load %arg5[%c0_24, %c0_25] : memref<1x32xf32, #tpu.memory_space<vmem>>, vector<1x32xf32>
    %cst_26 = arith.constant dense<0.000000e+00> : vector<17x32xf32>
    %69 = tpu.matmul %66, %67, %cst_26 {dimension_numbers = #tpu.dot_dimension_numbers<[1], [1], [0], [0], [0, 0, 1, 0], [], []>} : vector<17x32xf32>, vector<32x32xf32>, vector<17x32xf32> -> vector<17x32xf32>
    %70 = vector.broadcast %68 : vector<1x32xf32> to vector<17x32xf32>
    %71 = arith.addf %69, %70 : vector<17x32xf32>
    %c0_27 = arith.constant 0 : index
    %c0_28 = arith.constant 0 : index
    %72 = vector.load %arg12[%c0_27, %c0_28] : memref<16x32xf32, #tpu.memory_space<vmem>>, vector<16x32xf32>
    %c0_29 = arith.constant 0 : index
    %c0_30 = arith.constant 0 : index
    %73 = vector.load %arg13[%c0_29, %c0_30] : memref<1x16xf32, #tpu.memory_space<vmem>>, vector<1x16xf32>
    %cst_31 = arith.constant dense<0.000000e+00> : vector<17x16xf32>
    %74 = tpu.matmul %71, %72, %cst_31 {dimension_numbers = #tpu.dot_dimension_numbers<[1], [1], [0], [0], [0, 0, 1, 0], [], []>} : vector<17x32xf32>, vector<16x32xf32>, vector<17x16xf32> -> vector<17x16xf32>
    %75 = vector.broadcast %73 : vector<1x16xf32> to vector<17x16xf32>
    %76 = arith.addf %74, %75 : vector<17x16xf32>
    %cst_32 = arith.constant 0.000000e+00 : f32
    %77 = vector.broadcast %cst_32 : f32 to vector<17x16xf32>
    %78 = arith.subf %77, %76 : vector<17x16xf32>
    %79 = math.exp %78 : vector<17x16xf32>
    %cst_33 = arith.constant 1.000000e+00 : f32
    %80 = vector.broadcast %cst_33 : f32 to vector<17x16xf32>
    %81 = arith.addf %80, %79 : vector<17x16xf32>
    %cst_34 = arith.constant 1.000000e+00 : f32
    %82 = vector.broadcast %cst_34 : f32 to vector<17x16xf32>
    %83 = arith.divf %82, %81 : vector<17x16xf32>
    %c0_35 = arith.constant 0 : index
    %c0_36 = arith.constant 0 : index
    %84 = vector.load %arg14[%c0_35, %c0_36] : memref<16x32xf32, #tpu.memory_space<vmem>>, vector<16x32xf32>
    %c0_37 = arith.constant 0 : index
    %c0_38 = arith.constant 0 : index
    %85 = vector.load %arg15[%c0_37, %c0_38] : memref<1x16xf32, #tpu.memory_space<vmem>>, vector<1x16xf32>
    %cst_39 = arith.constant dense<0.000000e+00> : vector<17x16xf32>
    %86 = tpu.matmul %71, %84, %cst_39 {dimension_numbers = #tpu.dot_dimension_numbers<[1], [1], [0], [0], [0, 0, 1, 0], [], []>} : vector<17x32xf32>, vector<16x32xf32>, vector<17x16xf32> -> vector<17x16xf32>
    %87 = vector.broadcast %85 : vector<1x16xf32> to vector<17x16xf32>
    %88 = arith.addf %86, %87 : vector<17x16xf32>
    %cst_40 = arith.constant 5.000000e-01 : f32
    %89 = vector.broadcast %cst_40 : f32 to vector<17x16xf32>
    %90 = arith.mulf %89, %88 : vector<17x16xf32>
    %cst_41 = arith.constant 0.707106769 : f32
    %91 = vector.broadcast %cst_41 : f32 to vector<17x16xf32>
    %92 = arith.mulf %88, %91 : vector<17x16xf32>
    %93 = math.absf %92 : vector<17x16xf32>
    %cst_42 = arith.constant 0.327591091 : f32
    %94 = vector.broadcast %cst_42 : f32 to vector<17x16xf32>
    %95 = arith.mulf %94, %93 : vector<17x16xf32>
    %cst_43 = arith.constant 1.000000e+00 : f32
    %96 = vector.broadcast %cst_43 : f32 to vector<17x16xf32>
    %97 = arith.addf %96, %95 : vector<17x16xf32>
    %cst_44 = arith.constant 1.000000e+00 : f32
    %98 = vector.broadcast %cst_44 : f32 to vector<17x16xf32>
    %99 = arith.divf %98, %97 : vector<17x16xf32>
    %cst_45 = arith.constant 1.06140542 : f32
    %100 = vector.broadcast %cst_45 : f32 to vector<17x16xf32>
    %101 = arith.mulf %99, %100 : vector<17x16xf32>
    %cst_46 = arith.constant -1.45315206 : f32
    %102 = vector.broadcast %cst_46 : f32 to vector<17x16xf32>
    %103 = arith.addf %102, %101 : vector<17x16xf32>
    %104 = arith.mulf %99, %103 : vector<17x16xf32>
    %cst_47 = arith.constant 1.42141378 : f32
    %105 = vector.broadcast %cst_47 : f32 to vector<17x16xf32>
    %106 = arith.addf %105, %104 : vector<17x16xf32>
    %107 = arith.mulf %99, %106 : vector<17x16xf32>
    %cst_48 = arith.constant -0.284496725 : f32
    %108 = vector.broadcast %cst_48 : f32 to vector<17x16xf32>
    %109 = arith.addf %108, %107 : vector<17x16xf32>
    %110 = arith.mulf %99, %109 : vector<17x16xf32>
    %cst_49 = arith.constant 0.254829586 : f32
    %111 = vector.broadcast %cst_49 : f32 to vector<17x16xf32>
    %112 = arith.addf %111, %110 : vector<17x16xf32>
    %113 = arith.mulf %99, %112 : vector<17x16xf32>
    %cst_50 = arith.constant 0.000000e+00 : f32
    %114 = vector.broadcast %cst_50 : f32 to vector<17x16xf32>
    %115 = arith.subf %114, %93 : vector<17x16xf32>
    %116 = arith.mulf %115, %93 : vector<17x16xf32>
    %117 = math.exp %116 : vector<17x16xf32>
    %118 = arith.mulf %113, %117 : vector<17x16xf32>
    %cst_51 = arith.constant 1.000000e+00 : f32
    %119 = vector.broadcast %cst_51 : f32 to vector<17x16xf32>
    %120 = arith.subf %119, %118 : vector<17x16xf32>
    %cst_52 = arith.constant 0.000000e+00 : f32
    %121 = vector.broadcast %cst_52 : f32 to vector<17x16xf32>
    %122 = arith.cmpf oge, %92, %121 : vector<17x16xf32>
    %cst_53 = arith.constant 0.000000e+00 : f32
    %123 = vector.broadcast %cst_53 : f32 to vector<17x16xf32>
    %124 = arith.subf %123, %120 : vector<17x16xf32>
    %125 = arith.select %122, %120, %124 : vector<17x16xi1>, vector<17x16xf32>
    %cst_54 = arith.constant 1.000000e+00 : f32
    %126 = vector.broadcast %cst_54 : f32 to vector<17x16xf32>
    %127 = arith.addf %126, %125 : vector<17x16xf32>
    %128 = arith.mulf %90, %127 : vector<17x16xf32>
    %cst_55 = arith.constant dense<0.000000e+00> : vector<17xf32>
    %129 = vector.multi_reduction <add>, %128, %cst_55 [1] : vector<17x16xf32> to vector<17xf32>
    %130 = vector.shape_cast %129 : vector<17xf32> to vector<17x1xf32>
    %cst_56 = arith.constant 1.600000e+01 : f32
    %131 = vector.broadcast %cst_56 : f32 to vector<17x1xf32>
    %132 = arith.divf %130, %131 : vector<17x1xf32>
    %133 = vector.broadcast %132 : vector<17x1xf32> to vector<17x16xf32>
    %134 = arith.subf %128, %133 : vector<17x16xf32>
    %135 = arith.mulf %134, %134 : vector<17x16xf32>
    %cst_57 = arith.constant dense<0.000000e+00> : vector<17xf32>
    %136 = vector.multi_reduction <add>, %135, %cst_57 [1] : vector<17x16xf32> to vector<17xf32>
    %137 = vector.shape_cast %136 : vector<17xf32> to vector<17x1xf32>
    %cst_58 = arith.constant 1.600000e+01 : f32
    %138 = vector.broadcast %cst_58 : f32 to vector<17x1xf32>
    %139 = arith.divf %137, %138 : vector<17x1xf32>
    %140 = vector.broadcast %132 : vector<17x1xf32> to vector<17x16xf32>
    %141 = arith.subf %128, %140 : vector<17x16xf32>
    %cst_59 = arith.constant 9.99999974E-6 : f32
    %142 = vector.broadcast %cst_59 : f32 to vector<17x1xf32>
    %143 = arith.addf %139, %142 : vector<17x1xf32>
    %144 = math.rsqrt %143 : vector<17x1xf32>
    %145 = vector.broadcast %144 : vector<17x1xf32> to vector<17x16xf32>
    %146 = arith.mulf %141, %145 : vector<17x16xf32>
    %c0_60 = arith.constant 0 : index
    %c0_61 = arith.constant 0 : index
    %147 = vector.load %arg16[%c0_60, %c0_61] : memref<1x16xf32, #tpu.memory_space<vmem>>, vector<1x16xf32>
    %148 = vector.broadcast %147 : vector<1x16xf32> to vector<17x16xf32>
    %149 = arith.mulf %146, %148 : vector<17x16xf32>
    %c0_62 = arith.constant 0 : index
    %c0_63 = arith.constant 0 : index
    %150 = vector.load %arg17[%c0_62, %c0_63] : memref<1x16xf32, #tpu.memory_space<vmem>>, vector<1x16xf32>
    %151 = vector.broadcast %150 : vector<1x16xf32> to vector<17x16xf32>
    %152 = arith.addf %149, %151 : vector<17x16xf32>
    %153 = arith.mulf %83, %152 : vector<17x16xf32>
    %c0_64 = arith.constant 0 : index
    %c0_65 = arith.constant 0 : index
    %154 = vector.load %arg6[%c0_64, %c0_65] : memref<16x32xf32, #tpu.memory_space<vmem>>, vector<16x32xf32>
    %c0_66 = arith.constant 0 : index
    %c0_67 = arith.constant 0 : index
    %155 = vector.load %arg7[%c0_66, %c0_67] : memref<1x16xf32, #tpu.memory_space<vmem>>, vector<1x16xf32>
    %cst_68 = arith.constant dense<0.000000e+00> : vector<17x16xf32>
    %156 = tpu.matmul %1, %154, %cst_68 {dimension_numbers = #tpu.dot_dimension_numbers<[1], [1], [0], [0], [0, 0, 1, 0], [], []>} : vector<17x32xf32>, vector<16x32xf32>, vector<17x16xf32> -> vector<17x16xf32>
    %157 = vector.broadcast %155 : vector<1x16xf32> to vector<17x16xf32>
    %158 = arith.addf %156, %157 : vector<17x16xf32>
    %c0_69 = arith.constant 0 : index
    %c0_70 = arith.constant 0 : index
    %159 = vector.load %arg8[%c0_69, %c0_70] : memref<32x16xf32, #tpu.memory_space<vmem>>, vector<32x16xf32>
    %c0_71 = arith.constant 0 : index
    %c0_72 = arith.constant 0 : index
    %160 = vector.load %arg9[%c0_71, %c0_72] : memref<1x32xf32, #tpu.memory_space<vmem>>, vector<1x32xf32>
    %cst_73 = arith.constant dense<0.000000e+00> : vector<17x32xf32>
    %161 = tpu.matmul %153, %159, %cst_73 {dimension_numbers = #tpu.dot_dimension_numbers<[1], [1], [0], [0], [0, 0, 1, 0], [], []>} : vector<17x16xf32>, vector<32x16xf32>, vector<17x32xf32> -> vector<17x32xf32>
    %162 = vector.broadcast %160 : vector<1x32xf32> to vector<17x32xf32>
    %163 = arith.addf %161, %162 : vector<17x32xf32>
    %164 = vector.extract_strided_slice %163 {offsets = [0, 0], sizes = [17, 16], strides = [1, 1]} : vector<17x32xf32> to vector<17x16xf32>
    %165 = vector.extract_strided_slice %163 {offsets = [0, 16], sizes = [17, 16], strides = [1, 1]} : vector<17x32xf32> to vector<17x16xf32>
    %166 = vector.extract_strided_slice %158 {offsets = [0, 0], sizes = [17, 4], strides = [1, 1]} : vector<17x16xf32> to vector<17x4xf32>
    %167 = vector.extract_strided_slice %164 {offsets = [0, 0], sizes = [17, 4], strides = [1, 1]} : vector<17x16xf32> to vector<17x4xf32>
    %168 = vector.extract_strided_slice %165 {offsets = [0, 0], sizes = [17, 4], strides = [1, 1]} : vector<17x16xf32> to vector<17x4xf32>
    %cst_74 = arith.constant dense<0.000000e+00> : vector<17x17xf32>
    %169 = tpu.matmul %166, %167, %cst_74 {dimension_numbers = #tpu.dot_dimension_numbers<[1], [1], [0], [0], [0, 0, 1, 0], [], []>} : vector<17x4xf32>, vector<17x4xf32>, vector<17x17xf32> -> vector<17x17xf32>
    %cst_75 = arith.constant dense<0xFF800000> : vector<17xf32>
    %170 = vector.multi_reduction <maximumf>, %169, %cst_75 [1] : vector<17x17xf32> to vector<17xf32>
    %171 = vector.shape_cast %170 : vector<17xf32> to vector<17x1xf32>
    %172 = vector.broadcast %171 : vector<17x1xf32> to vector<17x17xf32>
    %173 = arith.subf %169, %172 : vector<17x17xf32>
    %174 = math.exp %173 : vector<17x17xf32>
    %cst_76 = arith.constant dense<0.000000e+00> : vector<17xf32>
    %175 = vector.multi_reduction <add>, %174, %cst_76 [1] : vector<17x17xf32> to vector<17xf32>
    %176 = vector.shape_cast %175 : vector<17xf32> to vector<17x1xf32>
    %177 = vector.broadcast %176 : vector<17x1xf32> to vector<17x17xf32>
    %178 = arith.divf %174, %177 : vector<17x17xf32>
    %cst_77 = arith.constant dense<0.000000e+00> : vector<17x4xf32>
    %179 = tpu.matmul %178, %168, %cst_77 {dimension_numbers = #tpu.dot_dimension_numbers<[1], [0], [0], [1], [0, 0, 1, 1], [], []>} : vector<17x17xf32>, vector<17x4xf32>, vector<17x4xf32> -> vector<17x4xf32>
    %180 = vector.extract_strided_slice %158 {offsets = [0, 4], sizes = [17, 4], strides = [1, 1]} : vector<17x16xf32> to vector<17x4xf32>
    %181 = vector.extract_strided_slice %164 {offsets = [0, 4], sizes = [17, 4], strides = [1, 1]} : vector<17x16xf32> to vector<17x4xf32>
    %182 = vector.extract_strided_slice %165 {offsets = [0, 4], sizes = [17, 4], strides = [1, 1]} : vector<17x16xf32> to vector<17x4xf32>
    %cst_78 = arith.constant dense<0.000000e+00> : vector<17x17xf32>
    %183 = tpu.matmul %180, %181, %cst_78 {dimension_numbers = #tpu.dot_dimension_numbers<[1], [1], [0], [0], [0, 0, 1, 0], [], []>} : vector<17x4xf32>, vector<17x4xf32>, vector<17x17xf32> -> vector<17x17xf32>
    %cst_79 = arith.constant dense<0xFF800000> : vector<17xf32>
    %184 = vector.multi_reduction <maximumf>, %183, %cst_79 [1] : vector<17x17xf32> to vector<17xf32>
    %185 = vector.shape_cast %184 : vector<17xf32> to vector<17x1xf32>
    %186 = vector.broadcast %185 : vector<17x1xf32> to vector<17x17xf32>
    %187 = arith.subf %183, %186 : vector<17x17xf32>
    %188 = math.exp %187 : vector<17x17xf32>
    %cst_80 = arith.constant dense<0.000000e+00> : vector<17xf32>
    %189 = vector.multi_reduction <add>, %188, %cst_80 [1] : vector<17x17xf32> to vector<17xf32>
    %190 = vector.shape_cast %189 : vector<17xf32> to vector<17x1xf32>
    %191 = vector.broadcast %190 : vector<17x1xf32> to vector<17x17xf32>
    %192 = arith.divf %188, %191 : vector<17x17xf32>
    %cst_81 = arith.constant dense<0.000000e+00> : vector<17x4xf32>
    %193 = tpu.matmul %192, %182, %cst_81 {dimension_numbers = #tpu.dot_dimension_numbers<[1], [0], [0], [1], [0, 0, 1, 1], [], []>} : vector<17x17xf32>, vector<17x4xf32>, vector<17x4xf32> -> vector<17x4xf32>
    %194 = vector.extract_strided_slice %158 {offsets = [0, 8], sizes = [17, 4], strides = [1, 1]} : vector<17x16xf32> to vector<17x4xf32>
    %195 = vector.extract_strided_slice %164 {offsets = [0, 8], sizes = [17, 4], strides = [1, 1]} : vector<17x16xf32> to vector<17x4xf32>
    %196 = vector.extract_strided_slice %165 {offsets = [0, 8], sizes = [17, 4], strides = [1, 1]} : vector<17x16xf32> to vector<17x4xf32>
    %cst_82 = arith.constant dense<0.000000e+00> : vector<17x17xf32>
    %197 = tpu.matmul %194, %195, %cst_82 {dimension_numbers = #tpu.dot_dimension_numbers<[1], [1], [0], [0], [0, 0, 1, 0], [], []>} : vector<17x4xf32>, vector<17x4xf32>, vector<17x17xf32> -> vector<17x17xf32>
    %cst_83 = arith.constant dense<0xFF800000> : vector<17xf32>
    %198 = vector.multi_reduction <maximumf>, %197, %cst_83 [1] : vector<17x17xf32> to vector<17xf32>
    %199 = vector.shape_cast %198 : vector<17xf32> to vector<17x1xf32>
    %200 = vector.broadcast %199 : vector<17x1xf32> to vector<17x17xf32>
    %201 = arith.subf %197, %200 : vector<17x17xf32>
    %202 = math.exp %201 : vector<17x17xf32>
    %cst_84 = arith.constant dense<0.000000e+00> : vector<17xf32>
    %203 = vector.multi_reduction <add>, %202, %cst_84 [1] : vector<17x17xf32> to vector<17xf32>
    %204 = vector.shape_cast %203 : vector<17xf32> to vector<17x1xf32>
    %205 = vector.broadcast %204 : vector<17x1xf32> to vector<17x17xf32>
    %206 = arith.divf %202, %205 : vector<17x17xf32>
    %cst_85 = arith.constant dense<0.000000e+00> : vector<17x4xf32>
    %207 = tpu.matmul %206, %196, %cst_85 {dimension_numbers = #tpu.dot_dimension_numbers<[1], [0], [0], [1], [0, 0, 1, 1], [], []>} : vector<17x17xf32>, vector<17x4xf32>, vector<17x4xf32> -> vector<17x4xf32>
    %208 = vector.extract_strided_slice %158 {offsets = [0, 12], sizes = [17, 4], strides = [1, 1]} : vector<17x16xf32> to vector<17x4xf32>
    %209 = vector.extract_strided_slice %164 {offsets = [0, 12], sizes = [17, 4], strides = [1, 1]} : vector<17x16xf32> to vector<17x4xf32>
    %210 = vector.extract_strided_slice %165 {offsets = [0, 12], sizes = [17, 4], strides = [1, 1]} : vector<17x16xf32> to vector<17x4xf32>
    %cst_86 = arith.constant dense<0.000000e+00> : vector<17x17xf32>
    %211 = tpu.matmul %208, %209, %cst_86 {dimension_numbers = #tpu.dot_dimension_numbers<[1], [1], [0], [0], [0, 0, 1, 0], [], []>} : vector<17x4xf32>, vector<17x4xf32>, vector<17x17xf32> -> vector<17x17xf32>
    %cst_87 = arith.constant dense<0xFF800000> : vector<17xf32>
    %212 = vector.multi_reduction <maximumf>, %211, %cst_87 [1] : vector<17x17xf32> to vector<17xf32>
    %213 = vector.shape_cast %212 : vector<17xf32> to vector<17x1xf32>
    %214 = vector.broadcast %213 : vector<17x1xf32> to vector<17x17xf32>
    %215 = arith.subf %211, %214 : vector<17x17xf32>
    %216 = math.exp %215 : vector<17x17xf32>
    %cst_88 = arith.constant dense<0.000000e+00> : vector<17xf32>
    %217 = vector.multi_reduction <add>, %216, %cst_88 [1] : vector<17x17xf32> to vector<17xf32>
    %218 = vector.shape_cast %217 : vector<17xf32> to vector<17x1xf32>
    %219 = vector.broadcast %218 : vector<17x1xf32> to vector<17x17xf32>
    %220 = arith.divf %216, %219 : vector<17x17xf32>
    %cst_89 = arith.constant dense<0.000000e+00> : vector<17x4xf32>
    %221 = tpu.matmul %220, %210, %cst_89 {dimension_numbers = #tpu.dot_dimension_numbers<[1], [0], [0], [1], [0, 0, 1, 1], [], []>} : vector<17x17xf32>, vector<17x4xf32>, vector<17x4xf32> -> vector<17x4xf32>
    %222 = tpu.concatenate %179, %193, %207, %221 in 1 : vector<17x4xf32>, vector<17x4xf32>, vector<17x4xf32>, vector<17x4xf32> -> vector<17x16xf32>
    %c0_90 = arith.constant 0 : index
    %c0_91 = arith.constant 0 : index
    %223 = vector.load %arg10[%c0_90, %c0_91] : memref<32x16xf32, #tpu.memory_space<vmem>>, vector<32x16xf32>
    %c0_92 = arith.constant 0 : index
    %c0_93 = arith.constant 0 : index
    %224 = vector.load %arg11[%c0_92, %c0_93] : memref<1x32xf32, #tpu.memory_space<vmem>>, vector<1x32xf32>
    %cst_94 = arith.constant dense<0.000000e+00> : vector<17x32xf32>
    %225 = tpu.matmul %222, %223, %cst_94 {dimension_numbers = #tpu.dot_dimension_numbers<[1], [1], [0], [0], [0, 0, 1, 0], [], []>} : vector<17x16xf32>, vector<32x16xf32>, vector<17x32xf32> -> vector<17x32xf32>
    %226 = vector.broadcast %224 : vector<1x32xf32> to vector<17x32xf32>
    %227 = arith.addf %225, %226 : vector<17x32xf32>
    %c0_95 = arith.constant 0 : index
    %c0_96 = arith.constant 0 : index
    %228 = vector.load %arg19[%c0_95, %c0_96] : memref<17x32xf32, #tpu.memory_space<vmem>>, vector<17x32xf32>
    %c0_97 = arith.constant 0 : index
    %c0_98 = arith.constant 0 : index
    %c0_99 = arith.constant 0 : index
    %229 = vector.load %arg18[%c0_97, %c0_98, %c0_99] : memref<9x32x32xf32, #tpu.memory_space<vmem>>, vector<1x32x32xf32>
    %230 = vector.shape_cast %229 : vector<1x32x32xf32> to vector<32x32xf32>
    %cst_100 = arith.constant dense<0.000000e+00> : vector<17x32xf32>
    %231 = tpu.matmul %1, %230, %cst_100 {dimension_numbers = #tpu.dot_dimension_numbers<[1], [0], [0], [1], [0, 0, 1, 1], [], []>} : vector<17x32xf32>, vector<32x32xf32>, vector<17x32xf32> -> vector<17x32xf32>
    %c0_101 = arith.constant 0 : index
    %c0_102 = arith.constant 0 : index
    %c0_103 = arith.constant 0 : index
    %232 = vector.load %arg20[%c0_101, %c0_102, %c0_103] : memref<9x17x17xf32, #tpu.memory_space<vmem>>, vector<1x17x17xf32>
    %233 = vector.shape_cast %232 : vector<1x17x17xf32> to vector<17x17xf32>
    %cst_104 = arith.constant dense<0.000000e+00> : vector<17x32xf32>
    %234 = tpu.matmul %233, %231, %cst_104 {dimension_numbers = #tpu.dot_dimension_numbers<[1], [0], [0], [1], [0, 0, 1, 1], [], []>} : vector<17x17xf32>, vector<17x32xf32>, vector<17x32xf32> -> vector<17x32xf32>
    %235 = arith.addf %228, %234 : vector<17x32xf32>
    %c1 = arith.constant 1 : index
    %c0_105 = arith.constant 0 : index
    %c0_106 = arith.constant 0 : index
    %236 = vector.load %arg18[%c1, %c0_105, %c0_106] : memref<9x32x32xf32, #tpu.memory_space<vmem>>, vector<1x32x32xf32>
    %237 = vector.shape_cast %236 : vector<1x32x32xf32> to vector<32x32xf32>
    %cst_107 = arith.constant dense<0.000000e+00> : vector<17x32xf32>
    %238 = tpu.matmul %1, %237, %cst_107 {dimension_numbers = #tpu.dot_dimension_numbers<[1], [0], [0], [1], [0, 0, 1, 1], [], []>} : vector<17x32xf32>, vector<32x32xf32>, vector<17x32xf32> -> vector<17x32xf32>
    %c1_108 = arith.constant 1 : index
    %c0_109 = arith.constant 0 : index
    %c0_110 = arith.constant 0 : index
    %239 = vector.load %arg20[%c1_108, %c0_109, %c0_110] : memref<9x17x17xf32, #tpu.memory_space<vmem>>, vector<1x17x17xf32>
    %240 = vector.shape_cast %239 : vector<1x17x17xf32> to vector<17x17xf32>
    %cst_111 = arith.constant dense<0.000000e+00> : vector<17x32xf32>
    %241 = tpu.matmul %240, %238, %cst_111 {dimension_numbers = #tpu.dot_dimension_numbers<[1], [0], [0], [1], [0, 0, 1, 1], [], []>} : vector<17x17xf32>, vector<17x32xf32>, vector<17x32xf32> -> vector<17x32xf32>
    %242 = arith.addf %235, %241 : vector<17x32xf32>
    %c2 = arith.constant 2 : index
    %c0_112 = arith.constant 0 : index
    %c0_113 = arith.constant 0 : index
    %243 = vector.load %arg18[%c2, %c0_112, %c0_113] : memref<9x32x32xf32, #tpu.memory_space<vmem>>, vector<1x32x32xf32>
    %244 = vector.shape_cast %243 : vector<1x32x32xf32> to vector<32x32xf32>
    %cst_114 = arith.constant dense<0.000000e+00> : vector<17x32xf32>
    %245 = tpu.matmul %1, %244, %cst_114 {dimension_numbers = #tpu.dot_dimension_numbers<[1], [0], [0], [1], [0, 0, 1, 1], [], []>} : vector<17x32xf32>, vector<32x32xf32>, vector<17x32xf32> -> vector<17x32xf32>
    %c2_115 = arith.constant 2 : index
    %c0_116 = arith.constant 0 : index
    %c0_117 = arith.constant 0 : index
    %246 = vector.load %arg20[%c2_115, %c0_116, %c0_117] : memref<9x17x17xf32, #tpu.memory_space<vmem>>, vector<1x17x17xf32>
    %247 = vector.shape_cast %246 : vector<1x17x17xf32> to vector<17x17xf32>
    %cst_118 = arith.constant dense<0.000000e+00> : vector<17x32xf32>
    %248 = tpu.matmul %247, %245, %cst_118 {dimension_numbers = #tpu.dot_dimension_numbers<[1], [0], [0], [1], [0, 0, 1, 1], [], []>} : vector<17x17xf32>, vector<17x32xf32>, vector<17x32xf32> -> vector<17x32xf32>
    %249 = arith.addf %242, %248 : vector<17x32xf32>
    %c3 = arith.constant 3 : index
    %c0_119 = arith.constant 0 : index
    %c0_120 = arith.constant 0 : index
    %250 = vector.load %arg18[%c3, %c0_119, %c0_120] : memref<9x32x32xf32, #tpu.memory_space<vmem>>, vector<1x32x32xf32>
    %251 = vector.shape_cast %250 : vector<1x32x32xf32> to vector<32x32xf32>
    %cst_121 = arith.constant dense<0.000000e+00> : vector<17x32xf32>
    %252 = tpu.matmul %1, %251, %cst_121 {dimension_numbers = #tpu.dot_dimension_numbers<[1], [0], [0], [1], [0, 0, 1, 1], [], []>} : vector<17x32xf32>, vector<32x32xf32>, vector<17x32xf32> -> vector<17x32xf32>
    %c3_122 = arith.constant 3 : index
    %c0_123 = arith.constant 0 : index
    %c0_124 = arith.constant 0 : index
    %253 = vector.load %arg20[%c3_122, %c0_123, %c0_124] : memref<9x17x17xf32, #tpu.memory_space<vmem>>, vector<1x17x17xf32>
    %254 = vector.shape_cast %253 : vector<1x17x17xf32> to vector<17x17xf32>
    %cst_125 = arith.constant dense<0.000000e+00> : vector<17x32xf32>
    %255 = tpu.matmul %254, %252, %cst_125 {dimension_numbers = #tpu.dot_dimension_numbers<[1], [0], [0], [1], [0, 0, 1, 1], [], []>} : vector<17x17xf32>, vector<17x32xf32>, vector<17x32xf32> -> vector<17x32xf32>
    %256 = arith.addf %249, %255 : vector<17x32xf32>
    %c4 = arith.constant 4 : index
    %c0_126 = arith.constant 0 : index
    %c0_127 = arith.constant 0 : index
    %257 = vector.load %arg18[%c4, %c0_126, %c0_127] : memref<9x32x32xf32, #tpu.memory_space<vmem>>, vector<1x32x32xf32>
    %258 = vector.shape_cast %257 : vector<1x32x32xf32> to vector<32x32xf32>
    %cst_128 = arith.constant dense<0.000000e+00> : vector<17x32xf32>
    %259 = tpu.matmul %1, %258, %cst_128 {dimension_numbers = #tpu.dot_dimension_numbers<[1], [0], [0], [1], [0, 0, 1, 1], [], []>} : vector<17x32xf32>, vector<32x32xf32>, vector<17x32xf32> -> vector<17x32xf32>
    %c4_129 = arith.constant 4 : index
    %c0_130 = arith.constant 0 : index
    %c0_131 = arith.constant 0 : index
    %260 = vector.load %arg20[%c4_129, %c0_130, %c0_131] : memref<9x17x17xf32, #tpu.memory_space<vmem>>, vector<1x17x17xf32>
    %261 = vector.shape_cast %260 : vector<1x17x17xf32> to vector<17x17xf32>
    %cst_132 = arith.constant dense<0.000000e+00> : vector<17x32xf32>
    %262 = tpu.matmul %261, %259, %cst_132 {dimension_numbers = #tpu.dot_dimension_numbers<[1], [0], [0], [1], [0, 0, 1, 1], [], []>} : vector<17x17xf32>, vector<17x32xf32>, vector<17x32xf32> -> vector<17x32xf32>
    %263 = arith.addf %256, %262 : vector<17x32xf32>
    %c5 = arith.constant 5 : index
    %c0_133 = arith.constant 0 : index
    %c0_134 = arith.constant 0 : index
    %264 = vector.load %arg18[%c5, %c0_133, %c0_134] : memref<9x32x32xf32, #tpu.memory_space<vmem>>, vector<1x32x32xf32>
    %265 = vector.shape_cast %264 : vector<1x32x32xf32> to vector<32x32xf32>
    %cst_135 = arith.constant dense<0.000000e+00> : vector<17x32xf32>
    %266 = tpu.matmul %1, %265, %cst_135 {dimension_numbers = #tpu.dot_dimension_numbers<[1], [0], [0], [1], [0, 0, 1, 1], [], []>} : vector<17x32xf32>, vector<32x32xf32>, vector<17x32xf32> -> vector<17x32xf32>
    %c5_136 = arith.constant 5 : index
    %c0_137 = arith.constant 0 : index
    %c0_138 = arith.constant 0 : index
    %267 = vector.load %arg20[%c5_136, %c0_137, %c0_138] : memref<9x17x17xf32, #tpu.memory_space<vmem>>, vector<1x17x17xf32>
    %268 = vector.shape_cast %267 : vector<1x17x17xf32> to vector<17x17xf32>
    %cst_139 = arith.constant dense<0.000000e+00> : vector<17x32xf32>
    %269 = tpu.matmul %268, %266, %cst_139 {dimension_numbers = #tpu.dot_dimension_numbers<[1], [0], [0], [1], [0, 0, 1, 1], [], []>} : vector<17x17xf32>, vector<17x32xf32>, vector<17x32xf32> -> vector<17x32xf32>
    %270 = arith.addf %263, %269 : vector<17x32xf32>
    %c6 = arith.constant 6 : index
    %c0_140 = arith.constant 0 : index
    %c0_141 = arith.constant 0 : index
    %271 = vector.load %arg18[%c6, %c0_140, %c0_141] : memref<9x32x32xf32, #tpu.memory_space<vmem>>, vector<1x32x32xf32>
    %272 = vector.shape_cast %271 : vector<1x32x32xf32> to vector<32x32xf32>
    %cst_142 = arith.constant dense<0.000000e+00> : vector<17x32xf32>
    %273 = tpu.matmul %1, %272, %cst_142 {dimension_numbers = #tpu.dot_dimension_numbers<[1], [0], [0], [1], [0, 0, 1, 1], [], []>} : vector<17x32xf32>, vector<32x32xf32>, vector<17x32xf32> -> vector<17x32xf32>
    %c6_143 = arith.constant 6 : index
    %c0_144 = arith.constant 0 : index
    %c0_145 = arith.constant 0 : index
    %274 = vector.load %arg20[%c6_143, %c0_144, %c0_145] : memref<9x17x17xf32, #tpu.memory_space<vmem>>, vector<1x17x17xf32>
    %275 = vector.shape_cast %274 : vector<1x17x17xf32> to vector<17x17xf32>
    %cst_146 = arith.constant dense<0.000000e+00> : vector<17x32xf32>
    %276 = tpu.matmul %275, %273, %cst_146 {dimension_numbers = #tpu.dot_dimension_numbers<[1], [0], [0], [1], [0, 0, 1, 1], [], []>} : vector<17x17xf32>, vector<17x32xf32>, vector<17x32xf32> -> vector<17x32xf32>
    %277 = arith.addf %270, %276 : vector<17x32xf32>
    %c7 = arith.constant 7 : index
    %c0_147 = arith.constant 0 : index
    %c0_148 = arith.constant 0 : index
    %278 = vector.load %arg18[%c7, %c0_147, %c0_148] : memref<9x32x32xf32, #tpu.memory_space<vmem>>, vector<1x32x32xf32>
    %279 = vector.shape_cast %278 : vector<1x32x32xf32> to vector<32x32xf32>
    %cst_149 = arith.constant dense<0.000000e+00> : vector<17x32xf32>
    %280 = tpu.matmul %1, %279, %cst_149 {dimension_numbers = #tpu.dot_dimension_numbers<[1], [0], [0], [1], [0, 0, 1, 1], [], []>} : vector<17x32xf32>, vector<32x32xf32>, vector<17x32xf32> -> vector<17x32xf32>
    %c7_150 = arith.constant 7 : index
    %c0_151 = arith.constant 0 : index
    %c0_152 = arith.constant 0 : index
    %281 = vector.load %arg20[%c7_150, %c0_151, %c0_152] : memref<9x17x17xf32, #tpu.memory_space<vmem>>, vector<1x17x17xf32>
    %282 = vector.shape_cast %281 : vector<1x17x17xf32> to vector<17x17xf32>
    %cst_153 = arith.constant dense<0.000000e+00> : vector<17x32xf32>
    %283 = tpu.matmul %282, %280, %cst_153 {dimension_numbers = #tpu.dot_dimension_numbers<[1], [0], [0], [1], [0, 0, 1, 1], [], []>} : vector<17x17xf32>, vector<17x32xf32>, vector<17x32xf32> -> vector<17x32xf32>
    %284 = arith.addf %277, %283 : vector<17x32xf32>
    %c8 = arith.constant 8 : index
    %c0_154 = arith.constant 0 : index
    %c0_155 = arith.constant 0 : index
    %285 = vector.load %arg18[%c8, %c0_154, %c0_155] : memref<9x32x32xf32, #tpu.memory_space<vmem>>, vector<1x32x32xf32>
    %286 = vector.shape_cast %285 : vector<1x32x32xf32> to vector<32x32xf32>
    %cst_156 = arith.constant dense<0.000000e+00> : vector<17x32xf32>
    %287 = tpu.matmul %1, %286, %cst_156 {dimension_numbers = #tpu.dot_dimension_numbers<[1], [0], [0], [1], [0, 0, 1, 1], [], []>} : vector<17x32xf32>, vector<32x32xf32>, vector<17x32xf32> -> vector<17x32xf32>
    %c8_157 = arith.constant 8 : index
    %c0_158 = arith.constant 0 : index
    %c0_159 = arith.constant 0 : index
    %288 = vector.load %arg20[%c8_157, %c0_158, %c0_159] : memref<9x17x17xf32, #tpu.memory_space<vmem>>, vector<1x17x17xf32>
    %289 = vector.shape_cast %288 : vector<1x17x17xf32> to vector<17x17xf32>
    %cst_160 = arith.constant dense<0.000000e+00> : vector<17x32xf32>
    %290 = tpu.matmul %289, %287, %cst_160 {dimension_numbers = #tpu.dot_dimension_numbers<[1], [0], [0], [1], [0, 0, 1, 1], [], []>} : vector<17x17xf32>, vector<17x32xf32>, vector<17x32xf32> -> vector<17x32xf32>
    %291 = arith.addf %284, %290 : vector<17x32xf32>
    %c0_161 = arith.constant 0 : index
    %c0_162 = arith.constant 0 : index
    %292 = vector.load %arg21[%c0_161, %c0_162] : memref<1x32xf32, #tpu.memory_space<vmem>>, vector<1x32xf32>
    %293 = vector.broadcast %292 : vector<1x32xf32> to vector<17x32xf32>
    %294 = arith.mulf %293, %71 : vector<17x32xf32>
    %295 = arith.addf %227, %294 : vector<17x32xf32>
    %296 = arith.addf %295, %291 : vector<17x32xf32>
    %c0_163 = arith.constant 0 : index
    %c0_164 = arith.constant 0 : index
    %c0_165 = arith.constant 0 : index
    %297 = vector.load %arg22[%c0_163, %c0_164, %c0_165] : memref<1x17x32xf32, #tpu.memory_space<vmem>>, vector<1x17x32xf32>
    %298 = vector.shape_cast %297 : vector<1x17x32xf32> to vector<17x32xf32>
    %299 = vector.shape_cast %296 : vector<17x32xf32> to vector<1x17x32xf32>
    tpu.vector_store %arg22[%c0_163, %c0_164, %c0_165], %299 {strides = array<i32>} : memref<1x17x32xf32, #tpu.memory_space<vmem>>, vector<1x17x32xf32>,
    return
  }
  func.func @transform_0(%arg0: i32) -> (i32, i32, i32) {
    %c0_i32 = arith.constant 0 : i32
    %c0_i32_0 = arith.constant 0 : i32
    %c0_i32_1 = arith.constant 0 : i32
    return %arg0, %c0_i32, %c0_i32_0 : i32, i32, i32
  }
  func.func @transform_1(%arg0: i32) -> (i32, i32) {
    %c0_i32 = arith.constant 0 : i32
    %c0_i32_0 = arith.constant 0 : i32
    %c0_i32_1 = arith.constant 0 : i32
    return %c0_i32, %c0_i32_0 : i32, i32
  }
  func.func @transform_2(%arg0: i32) -> (i32, i32) {
    %c0_i32 = arith.constant 0 : i32
    %c0_i32_0 = arith.constant 0 : i32
    %c0_i32_1 = arith.constant 0 : i32
    return %c0_i32, %c0_i32_0 : i32, i32
  }
  func.func @transform_3(%arg0: i32) -> (i32, i32) {
    %c0_i32 = arith.constant 0 : i32
    %c0_i32_0 = arith.constant 0 : i32
    %c0_i32_1 = arith.constant 0 : i32
    return %c0_i32, %c0_i32_0 : i32, i32
  }
  func.func @transform_4(%arg0: i32) -> (i32, i32) {
    %c0_i32 = arith.constant 0 : i32
    %c0_i32_0 = arith.constant 0 : i32
    %c0_i32_1 = arith.constant 0 : i32
    return %c0_i32, %c0_i32_0 : i32, i32
  }
  func.func @transform_5(%arg0: i32) -> (i32, i32) {
    %c0_i32 = arith.constant 0 : i32
    %c0_i32_0 = arith.constant 0 : i32
    %c0_i32_1 = arith.constant 0 : i32
    return %c0_i32, %c0_i32_0 : i32, i32
  }
  func.func @transform_6(%arg0: i32) -> (i32, i32) {
    %c0_i32 = arith.constant 0 : i32
    %c0_i32_0 = arith.constant 0 : i32
    %c0_i32_1 = arith.constant 0 : i32
    return %c0_i32, %c0_i32_0 : i32, i32
  }
  func.func @transform_7(%arg0: i32) -> (i32, i32) {
    %c0_i32 = arith.constant 0 : i32
    %c0_i32_0 = arith.constant 0 : i32
    %c0_i32_1 = arith.constant 0 : i32
    return %c0_i32, %c0_i32_0 : i32, i32
  }
  func.func @transform_8(%arg0: i32) -> (i32, i32) {
    %c0_i32 = arith.constant 0 : i32
    %c0_i32_0 = arith.constant 0 : i32
    %c0_i32_1 = arith.constant 0 : i32
    return %c0_i32, %c0_i32_0 : i32, i32
  }
  func.func @transform_9(%arg0: i32) -> (i32, i32) {
    %c0_i32 = arith.constant 0 : i32
    %c0_i32_0 = arith.constant 0 : i32
    %c0_i32_1 = arith.constant 0 : i32
    return %c0_i32, %c0_i32_0 : i32, i32
  }
  func.func @transform_10(%arg0: i32) -> (i32, i32) {
    %c0_i32 = arith.constant 0 : i32
    %c0_i32_0 = arith.constant 0 : i32
    %c0_i32_1 = arith.constant 0 : i32
    return %c0_i32, %c0_i32_0 : i32, i32
  }
  func.func @transform_11(%arg0: i32) -> (i32, i32) {
    %c0_i32 = arith.constant 0 : i32
    %c0_i32_0 = arith.constant 0 : i32
    %c0_i32_1 = arith.constant 0 : i32
    return %c0_i32, %c0_i32_0 : i32, i32
  }
  func.func @transform_12(%arg0: i32) -> (i32, i32) {
    %c0_i32 = arith.constant 0 : i32
    %c0_i32_0 = arith.constant 0 : i32
    %c0_i32_1 = arith.constant 0 : i32
    return %c0_i32, %c0_i32_0 : i32, i32
  }
  func.func @transform_13(%arg0: i32) -> (i32, i32) {
    %c0_i32 = arith.constant 0 : i32
    %c0_i32_0 = arith.constant 0 : i32
    %c0_i32_1 = arith.constant 0 : i32
    return %c0_i32, %c0_i32_0 : i32, i32
  }
  func.func @transform_14(%arg0: i32) -> (i32, i32) {
    %c0_i32 = arith.constant 0 : i32
    %c0_i32_0 = arith.constant 0 : i32
    %c0_i32_1 = arith.constant 0 : i32
    return %c0_i32, %c0_i32_0 : i32, i32
  }
  func.func @transform_15(%arg0: i32) -> (i32, i32) {
    %c0_i32 = arith.constant 0 : i32
    %c0_i32_0 = arith.constant 0 : i32
    %c0_i32_1 = arith.constant 0 : i32
    return %c0_i32, %c0_i32_0 : i32, i32
  }
  func.func @transform_16(%arg0: i32) -> (i32, i32) {
    %c0_i32 = arith.constant 0 : i32
    %c0_i32_0 = arith.constant 0 : i32
    %c0_i32_1 = arith.constant 0 : i32
    return %c0_i32, %c0_i32_0 : i32, i32
  }
  func.func @transform_17(%arg0: i32) -> (i32, i32, i32) {
    %c0_i32 = arith.constant 0 : i32
    %c0_i32_0 = arith.constant 0 : i32
    %c0_i32_1 = arith.constant 0 : i32
    %c0_i32_2 = arith.constant 0 : i32
    return %c0_i32, %c0_i32_0, %c0_i32_1 : i32, i32, i32
  }
  func.func @transform_18(%arg0: i32) -> (i32, i32) {
    %c0_i32 = arith.constant 0 : i32
    %c0_i32_0 = arith.constant 0 : i32
    %c0_i32_1 = arith.constant 0 : i32
    return %c0_i32, %c0_i32_0 : i32, i32
  }
  func.func @transform_19(%arg0: i32) -> (i32, i32, i32) {
    %c0_i32 = arith.constant 0 : i32
    %c0_i32_0 = arith.constant 0 : i32
    %c0_i32_1 = arith.constant 0 : i32
    %c0_i32_2 = arith.constant 0 : i32
    return %c0_i32, %c0_i32_0, %c0_i32_1 : i32, i32, i32
  }
  func.func @transform_20(%arg0: i32) -> (i32, i32) {
    %c0_i32 = arith.constant 0 : i32
    %c0_i32_0 = arith.constant 0 : i32
    %c0_i32_1 = arith.constant 0 : i32
    return %c0_i32, %c0_i32_0 : i32, i32
  }
  func.func @transform_21(%arg0: i32) -> (i32, i32, i32) {
    %c0_i32 = arith.constant 0 : i32
    %c0_i32_0 = arith.constant 0 : i32
    %c0_i32_1 = arith.constant 0 : i32
    return %arg0, %c0_i32, %c0_i32_0 : i32, i32, i32
  }
}

</mosaic_0001>

<bundles_post_ra>
// kernel: mul.19
= control target key start
LH: loop header
LB: loop body
LE: loop exit
PB: predicated region body
PF: predicated region fallthrough
CT: control target
= control target key end

     0   :  { %s37_s8 = smov 4   ;;  %s38_s9 = smov 8   ;;  %vm7_vm0 = vcmask 31744   ;;  %vm13_vm1 = vcmask 130144   ;;  %vm19_vm2 = vcmask 97344   ;;  %vm25_vm3 = vcmask 64544   ;;  %s55_s0 = inlined_call_operand.vmem [shape: f32[4,4], index: 0, kind: input, shape index: {}]   ;;  %s56_s1 = inlined_call_operand.vmem [shape: f32[16], index: 1, kind: output, shape index: {}]  }
   0x1   :  { %v4_v0 = vld [vmem:[%s55_s0] sm:$0xf]  ;;  %s36_s0 = smov 12  }
   0x2   :  { %5 = vst [vmem:[#allocation1] sm:$0xf] %v4_v0 }
   0x9   :  { %v10_v1 = vld [vmem:[#allocation1 + $0x3] sm:$0x1]   ;;  %v22_v2 = vld [vmem:[#allocation1 + $0x1] sm:$0x1]   ;;  %v16_v3 = vld [vmem:[#allocation1 + $0x2] sm:$0x1]  }
   0xa   :  { %11 = vrot.lane.b32.xlu0 %v10_v1, %s36_s0  ;;  %23 = vrot.lane.b32.xlu1 %v22_v2, %s37_s8  ;;  %v6_v4 = vld [vmem:[#allocation1] sm:$0x1]  }
   0xb   :  { %8 = vst.msk [vmem:[#allocation0] sm:$0x1] %vm7_vm0, %v6_v4  }
  0x12   :  { %17 = vrot.lane.b32.xlu0 %v16_v3, %s38_s9 }
  0x7c   :  { %v12_v5 = vpop.permute.xlu0 %11   ;;  %v24_v6 = vpop.permute.xlu1 %23  }
  0x7d   :  { %14 = vst.msk [vmem:[#allocation0] sm:$0x1] %vm13_vm1, %v12_v5  }
  0x84   :  { %v18_v7 = vpop.permute.xlu0 %17  }
  0x85   :  { %20 = vst.msk [vmem:[#allocation0] sm:$0x1] %vm19_vm2, %v18_v7  }
  0x86   :  { %26 = vst.msk [vmem:[#allocation0] sm:$0x1] %vm25_vm3, %v24_v6  }
  0x8d   :  { %v29_v8 = vld [vmem:[#allocation0] sm:$0x1] }
  0x8e   :  { %32 = vst [vmem:[%s56_s1] sm:$0x1] %v29_v8 }

// kernel: grc_self_attention_forward.1
= control target key start
LH: loop header
LB: loop body
LE: loop exit
PB: predicated region body
PF: predicated region fallthrough
CT: control target
= control target key end

     0   :  { %s5217_s0 = inlined_call_operand.vmem [shape: f32[2,17,32], index: 0, kind: input, shape index: {}]   ;;  %s5218_s1 = inlined_call_operand.vmem [shape: f32[96,32], index: 1, kind: input, shape index: {}]   ;;  %s5219_s2 = inlined_call_operand.vmem [shape: f32[1,96], index: 2, kind: input, shape index: {}]   ;;  %s5220_s3 = inlined_call_operand.vmem [shape: f32[32,32], index: 3, kind: input, shape index: {}]   ;;  %s5221_s4 = inlined_call_operand.vmem [shape: f32[1,32], index: 4, kind: input, shape index: {}]   ;;  %s5222_s5 = inlined_call_operand.vmem [shape: f32[16,32], index: 5, kind: input, shape index: {}]   ;;  %s5223_s6 = inlined_call_operand.vmem [shape: f32[1,16], index: 6, kind: input, shape index: {}]   ;;  %s5224_s7 = inlined_call_operand.vmem [shape: f32[32,16], index: 7, kind: input, shape index: {}]   ;;  %s5225_s8 = inlined_call_operand.vmem [shape: f32[1,32], index: 8, kind: input, shape index: {}]   ;;  %s5226_s9 = inlined_call_operand.vmem [shape: f32[32,16], index: 9, kind: input, shape index: {}]   ;;  %s5227_s10 = inlined_call_operand.vmem [shape: f32[1,32], index: 10, kind: input, shape index: {}]   ;;  %s5228_s11 = inlined_call_operand.vmem [shape: f32[16,32], index: 11, kind: input, shape index: {}]   ;;  %s5229_s12 = inlined_call_operand.vmem [shape: f32[1,16], index: 12, kind: input, shape index: {}]   ;;  %s5230_s13 = inlined_call_operand.vmem [shape: f32[16,32], index: 13, kind: input, shape index: {}]   ;;  %s5231_s14 = inlined_call_operand.vmem [shape: f32[1,16], index: 14, kind: input, shape index: {}]   ;;  %s5232_s15 = inlined_call_operand.vmem [shape: f32[1,16], index: 15, kind: input, shape index: {}]   ;;  %s5233_s16 = inlined_call_operand.vmem [shape: f32[1,16], index: 16, kind: input, shape index: {}]   ;;  %s5234_s17 = inlined_call_operand.vmem [shape: f32[9,32,32], index: 17, kind: input, shape index: {}]   ;;  %s5235_s18 = inlined_call_operand.vmem [shape: f32[17,32], index: 18, kind: input, shape index: {}]   ;;  %s5236_s19 = inlined_call_operand.vmem [shape: f32[9,17,17], index: 19, kind: input, shape index: {}]   ;;  %s5237_s20 = inlined_call_operand.vmem [shape: f32[1,32], index: 20, kind: input, shape index: {}]   ;;  %s5238_s21 = inlined_call_operand.vmem [shape: f32[2,17,32], index: 21, kind: output, shape index: {}]  }
   0x1   :  { %5254 = sst [smem:[#allocation2_spill]] %s5217_s0 }
   0x2   :  { %5255 = sst [smem:[#allocation3_spill]] %s5218_s1 }
   0x3   :  { %5256 = sst [smem:[#allocation4_spill]] %s5219_s2  ;;  %s4101_s2 = smov 0  }
   0x4   :  { %5257 = sst [smem:[#allocation5_spill]] %s5220_s3 }
   0x5   :  { %5258 = sst [smem:[#allocation6_spill]] %s5221_s4 }
   0x6   :  { %5259 = sst [smem:[#allocation7_spill]] %s5222_s5 }
   0x7 LB: > { %s3486_s25 = sadd.s32 4294967295, %s3968_s2   ;;  %p3490_p0 = scmp.ge.s32.totalorder %s3968_s2, 1  ;;  %s3968_s2 = sphi %s4101_s2, %s31_s2  }
   0x8   : > { %p587_p1 = scmp.lt.s32.totalorder %s3968_s2, 3 }
   0xa   : > { %p588_p2 = pnand %p3490_p0, %p587_p1 }
   0xb   : > { %s5260_s3 = sld [smem:[#allocation3_spill]] (!%p588_p2)  ;;  %p647_p3 = scmp.lt.s32.totalorder (!%p588_p2), %s3486_s25, 1 }
   0xc   : > { %591 = sbr.rel (%p588_p2) target bundleno = 3392 (0xd40), region = 104  ;;  %s5261_s29 = sld [smem:[#allocation2_spill]] (!%p588_p2) }
   0xd   : > { %s5262_s5 = sld [smem:[#allocation4_spill]] (!%p588_p2)  ;;  %s3970_s22 = smov (!%p588_p2), 96  }
   0xe   : > { %s3971_s23 = smov (!%p588_p2), 88   ;;  %s3972_s24 = smov (!%p588_p2), 120  }
   0xf   : > { %s3973_s26 = smov (!%p588_p2), 64   ;;  %s3974_s27 = smov (!%p588_p2), 56  }
  0x10   : > { %s3975_s28 = smov (!%p588_p2), 80   ;;  %s5245_s4 = smov (!%p588_p2), 112  }
  0x11   : > { %v671_v0 = vld [vmem:[%s5260_s3 + $0x58] sm:$0xff]  ;;  %vm676_vm0 = vcmask 261120   ;;  %v670_v1 = vld [vmem:[%s5260_s3 + $0x50] sm:$0xff]  ;;  %v669_v2 = vld [vmem:[%s5260_s3 + $0x48] sm:$0xff]  ;;  %s5279_s25 = smov (!%p647_p3, %s3486_s25), 1  ;;  %vm757_vm1 = vcmask 64512  }
  0x12   : > { %3493 = vmatpush.xpose.msk.msra.mxu0 %vm676_vm0, %v671_v0  ;;  %v668_v3 = vld [vmem:[%s5260_s3 + $0x40] sm:$0xff]  ;;  %v667_v4 = vld [vmem:[%s5260_s3 + $0x38] sm:$0xff]  ;;  %v666_v5 = vld [vmem:[%s5260_s3 + $0x30] sm:$0xff]  ;;  %s5242_s1 = smul.u32 24, %s5279_s25  ;;  %vm796_vm2 = vcmask 138240   ;;  %vm803_vm3 = vcmask 131072  }
  0x13   : > { %v665_v6 = vld [vmem:[%s5260_s3 + $0x28] sm:$0xff]  ;;  %v664_v7 = vld [vmem:[%s5260_s3 + $0x20] sm:$0xff]  ;;  %v663_v8 = vld [vmem:[%s5260_s3 + $0x18] sm:$0xff]  ;;  %vm887_vm4 = vcmask 1040384   ;;  %s5243_s30 = smov 104  }
  0x14   : > { %v662_v9 = vld [vmem:[%s5260_s3 + $0x10] sm:$0xff]  ;;  %v661_v10 = vld [vmem:[%s5260_s3 + $0x8] sm:$0xff]  ;;  %v660_v11 = vld [vmem:[%s5260_s3] sm:$0xff]  ;;  %s4164_s0 = scalar_lea.vmem %s5261_s29, %s5242_s1  ;;  %s3976_s29 = smov 72  }
  0x15   : > { %v657_v12 = vld [vmem:[%s4164_s0] sm:$0xff]  ;;  %v658_v13 = vld [vmem:[%s4164_s0 + $0x8] sm:$0xff]  ;;  %v659_v14 = vld [vmem:[%s4164_s0 + $0x10] sm:$0x1] }
  0x16   : > { %3494 = vmatpush.xpose.msk.msra.mxu0 %vm676_vm0, %v670_v1  ;;  %v3818_v15 = vld [vmem:[%s5262_s5] ss:$0 sm:$0xff]  ;;  %s3979_s5 = smov 48  }
  0x1a   : > { %3495 = vmatpush.xpose.msk.msra.mxu0 %vm676_vm0, %v669_v2 }
  0x1e   : > { %3496 = vmatpush.xpose.msk.msra.mxu0 %vm676_vm0, %v668_v3 }
  0x22   : > { %3497 = vmatpush.xpose.msk.msra.mxu0 %vm676_vm0, %v667_v4 }
  0x26   : > { %3498 = vmatpush.xpose.msk.msra.mxu0 %vm676_vm0, %v666_v5 }
  0x2a   : > { %3499 = vmatpush.xpose.msk.msra.mxu0 %vm676_vm0, %v665_v6 }
  0x2e   : > { %3500 = vmatpush.xpose.msk.msra.mxu0 %vm676_vm0, %v664_v7 }
  0x32   : > { %3501 = vmatpush.xpose.msk.msra.mxu0 %vm676_vm0, %v663_v8 }
  0x36   : > { %3502 = vmatpush.xpose.msk.msra.mxu0 %vm676_vm0, %v662_v9 }
  0x3a   : > { %3503 = vmatpush.xpose.msk.msra.mxu0 %vm676_vm0, %v661_v10 }
  0x3e   : > { %3504 = vmatpush.xpose.msk.msra.mxu0 %vm676_vm0, %v660_v11 }
  0x41   : > { %3505 = vmatmul.msk.f32.vlgmr.msra.gmra.mxu0 %vm676_vm0, %v657_v12 }
  0x49   : > { %3506 = vmatmul.msk.f32.gmra.mxu0 %vm676_vm0, %v658_v13 }
  0x51   : > { %3507 = vmatmul.msk.f32.gmra.mxu0 %vm676_vm0, %v659_v14 }
  0xbe   : > { %v739_v16 = vpop.f32.mrf.mxu0 }
  0xbf   : > { %v4176_v17 = vadd.f32 %v3818_v15, %v739_v16 }
  0xc1   : > { %751 = vrot.lane.b32.xlu1 %v4176_v17, %s3970_s22 }
  0xc6   : > { %v742_v18 = vpop.f32.mrf.mxu0 }
  0xc7   : > { %v4179_v19 = vadd.f32 %v3818_v15, %v742_v18 }
  0xc9   : > { %924 = vrot.lane.b32.xlu2 %v4179_v19, %s3971_s23  ;;  %v4246_v59 = vpack.i.bf16 %v4176_v17, %v4179_v19 }
  0xce   : > { %v745_v20 = vpop.f32.mrf.mxu0 }
  0xcf   : > { %v4182_v21 = vadd.f32 %v3818_v15, %v745_v20 }
  0xd1   : > { %755 = vrot.lane.b32.xlu0 %v4182_v21, %s3970_s22  ;;  %922 = vrot.lane.b32.xlu2 %v4176_v17, %s3971_s23 }
  0xd2   : > { %926 = vrot.lane.b32.xlu1 %v4182_v21, %s3971_s23  ;;  %s5247_s23 = smov 8  }
  0xd9   : > { %753 = vrot.lane.b32.xlu0 %v4179_v19, %s3970_s22  ;;  %920 = vrot.lane.b32.xlu2 %v4182_v21, %s3972_s24  ;;  %s3980_s22 = smov 40  }
  0xda   : > { %918 = vrot.lane.b32.xlu1 %v4179_v19, %s3972_s24 }
  0xe1   : > { %916 = vrot.lane.b32.xlu0 %v4176_v17, %s3972_s24 }
 0x123   : > { %v925_v25 = vpop.permute.xlu2 %924 }
 0x12b   : > { %v923_v27 = vpop.permute.xlu2 %922 }
 0x133   : > { %v752_v23 = vpop.permute.xlu1 %751  ;;  %v921_v30 = vpop.permute.xlu2 %920 }
 0x143   : > { %v756_v22 = vpop.permute.xlu0 %755 }
 0x144   : > { %3508 = vmatpush.xpose.msk.msra.mxu1 %vm757_vm1, %v756_v22  ;;  %3745 = vmatpush.xpose.msk.msra.mxu3 %vm757_vm1, %v756_v22  ;;  %v927_v26 = vpop.permute.xlu1 %926 }
 0x14b   : > { %v754_v24 = vpop.permute.xlu0 %753 }
 0x14c   : > { %3509 = vmatpush.xpose.msk.msra.mxu1 %vm757_vm1, %v754_v24  ;;  %3746 = vmatpush.xpose.msk.msra.mxu3 %vm757_vm1, %v754_v24  ;;  %v919_v29 = vpop.permute.xlu1 %918 }
 0x150   : > { %3510 = vmatpush.xpose.msk.msra.mxu1 %vm757_vm1, %v752_v23  ;;  %3747 = vmatpush.xpose.msk.msra.mxu3 %vm757_vm1, %v752_v23 }
 0x153   : > { %3511 = vmatmul.msk.f32.vlgmr.msra.gmra.mxu1 %vm757_vm1, %v4176_v17  ;;  %3513 = vmatmul.msk.f32.vlgmr.msra.gmra.mxu3 %vm757_vm1, %v4182_v21  ;;  %v917_v28 = vpop.permute.xlu0 %916 }
 0x154   : > { %3518 = vmatpush.xpose.msk.msrb.mxu3 %vm757_vm1, %v927_v26 }
 0x158   : > { %3519 = vmatpush.xpose.msk.msrb.mxu3 %vm757_vm1, %v925_v25 }
 0x15b   : > { %3512 = vmatmul.msk.f32.gmra.mxu1 %vm757_vm1, %v4179_v19 }
 0x15c   : > { %3520 = vmatpush.xpose.msk.msrb.mxu3 %vm757_vm1, %v923_v27 }
 0x15f   : > { %3521 = vmatmul.msk.f32.vlgmr.msrb.gmra.mxu3 %vm757_vm1, %v917_v28 }
 0x167   : > { %3522 = vmatmul.msk.f32.gmra.mxu3 %vm757_vm1, %v919_v29 }
 0x16f   : > { %3523 = vmatmul.msk.f32.gmra.mxu3 %vm757_vm1, %v921_v30 }
 0x1d0   : > { %v787_v31 = vpop.f32.mrf.mxu1 }
 0x1d1   : > { %v797_v32 = vsel %vm796_vm2, %v787_v31, -inf }
 0x1d2   : > { %798 = vmax.xlane.f32.xlu0 %v797_v32 }
 0x1d6   : > { %v793_v33 = vpop.f32.mrf.mxu3 }
 0x1d7   : > { %v804_v34 = vsel %vm803_vm3, %v793_v33, -inf }
 0x1d8   : > { %805 = vmax.xlane.f32.xlu2 %v804_v34  ;;  %v790_v35 = vpop.f32.mrf.mxu1 }
 0x1d9   : > { %v800_v36 = vsel %vm796_vm2, %v790_v35, -inf }
 0x1da   : > { %801 = vmax.xlane.f32.xlu1 %v800_v36 }
 0x1e2   : > { %v957_v37 = vpop.f32.mrf.mxu3 }
 0x1e3   : > { %v966_v38 = vsel %vm796_vm2, %v957_v37, -inf }
 0x1e4   : > { %967 = vmax.xlane.f32.xlu2 %v966_v38 }
 0x1ea   : > { %v960_v39 = vpop.f32.mrf.mxu3 }
 0x1eb   : > { %v969_v40 = vsel %vm796_vm2, %v960_v39, -inf }
 0x1ec   : > { %970 = vmax.xlane.f32.xlu0 %v969_v40 }
 0x1f2   : > { %v963_v41 = vpop.f32.mrf.mxu3 }
 0x1f3   : > { %874 = vrot.lane.b32.xlu1 %v4182_v21, %s3973_s26  ;;  %v972_v42 = vsel %vm803_vm3, %v963_v41, -inf }
 0x21d   : > { %973 = vmax.xlane.f32.xlu1 %v972_v42 }
 0x236   : > { %1042 = vrot.lane.b32.xlu1 %v4182_v21, %s3974_s27 }
 0x23e   : > { %1093 = vrot.lane.b32.xlu1 %v4182_v21, %s3975_s28 }
 0x245   : > { %v799_v43 = vpop.xlane.xlu0 %798 }
 0x246   : > { %v807_v44 = vsub.f32 %v787_v31, %v799_v43  ;;  %1260 = vrot.lane.b32.xlu1 %v4182_v21, %s3976_s29 }
 0x248   : > { %v810_v45 = vmul.f32 1.442695, %v807_v44 }
 0x24a   : > { %3828 = vpow2.f32 %v810_v45 }
 0x24b   : > { %v806_v46 = vpop.xlane.xlu2 %805 }
 0x24c   : > { %v809_v47 = vsub.f32 %v793_v33, %v806_v46 }
 0x24d   : > { %v802_v48 = vpop.xlane.xlu1 %801 }
 0x24e   : > { %v814_v49 = vmul.f32 1.442695, %v809_v47  ;;  %v808_v50 = vsub.f32 %v790_v35, %v802_v48  ;;  %1091 = vrot.lane.b32.xlu1 %v4179_v19, %s3975_s28 }
 0x250   : > { %v4226_v51 = vpop.eup %3828  ;;  %3830 = vpow2.f32 %v814_v49  ;;  %v812_v52 = vmul.f32 1.442695, %v808_v50 }
 0x251   : > { %v816_v53 = vsel %vm796_vm2, %v4226_v51, 0.0 }
 0x252   : > { %3832 = vpow2.f32 %v812_v52  ;;  %817 = vadd.xlane.f32.xlu2 %v816_v53 }
 0x256   : > { %v4230_v54 = vpop.eup %3830  ;;  %1089 = vrot.lane.b32.xlu1 %v4176_v17, %s3975_s28  ;;  %s3988_s28 = smov 100  }
 0x257   : > { %v822_v56 = vsel %vm803_vm3, %v4230_v54, 0.0  ;;  %v968_v60 = vpop.xlane.xlu2 %967 }
 0x258   : > { %v4233_v55 = vpop.eup %3832  ;;  %v975_v62 = vsub.f32 %v957_v37, %v968_v60 }
 0x259   : > { %v819_v57 = vsel %vm796_vm2, %v4233_v55, 0.0 }
 0x25a   : > { %823 = vadd.xlane.f32.xlu2 %v822_v56  ;;  %820 = vadd.xlane.f32.xlu0 %v819_v57  ;;  %v978_v1 = vmul.f32 1.442695, %v975_v62 }
 0x25e   : > { %1083 = vrot.lane.b32.xlu1 %v4176_v17, %s5245_s4 }
 0x25f   : > { %v971_v2 = vpop.xlane.xlu0 %970 }
 0x260   : > { %v976_v3 = vsub.f32 %v960_v39, %v971_v2 }
 0x262   : > { %v980_v6 = vmul.f32 1.442695, %v976_v3 }
 0x265   : > { %v875_v58 = vpop.permute.xlu1 %874 }
 0x266   : > { %1252 = vrot.lane.b32.xlu1 %v4179_v19, %s5243_s30  ;;  %3514 = vmatpush.msk.msra.mxu2 %vm887_vm4, %v875_v58 }
 0x26e   : > { %1254 = vrot.lane.b32.xlu1 %v4182_v21, %s5243_s30  ;;  %3779 = vrot.lane.b32.xlu0 %v4246_v59, %s3973_s26  ;;  %s3982_s26 = smov 24  }
 0x272   : > { %3784 = vrot.lane.b32.xlu2 %v4246_v59, %s3974_s27  ;;  %s3983_s27 = smov 16  }
 0x27a   : > { %1258 = vrot.lane.b32.xlu2 %v4179_v19, %s3976_s29 }
 0x290   : > { %v974_v61 = vpop.xlane.xlu1 %973 }
 0x291   : > { %v977_v63 = vsub.f32 %v963_v41, %v974_v61 }
 0x293   : > { %v982_v0 = vmul.f32 1.442695, %v977_v63 }
 0x295   : > { %3834 = vpow2.f32 %v982_v0 }
 0x296   : > { %3836 = vpow2.f32 %v978_v1 }
 0x297   : > { %3838 = vpow2.f32 %v980_v6 }
 0x29b   : > { %v4256_v4 = vpop.eup %3834 }
 0x29c   : > { %v990_v5 = vsel %vm803_vm3, %v4256_v4, 0.0  ;;  %v4260_v7 = vpop.eup %3836 }
 0x29d   : > { %991 = vadd.xlane.f32.xlu0 %v990_v5  ;;  %v984_v8 = vsel %vm796_vm2, %v4260_v7, 0.0  ;;  %v4264_v9 = vpop.eup %3838 }
 0x29e   : > { %v987_v11 = vsel %vm796_vm2, %v4264_v9, 0.0 }
 0x2a3   : > { %985 = vadd.xlane.f32.xlu2 %v984_v8 }
 0x2a8   : > { %v1043_v10 = vpop.permute.xlu1 %1042 }
 0x2ab   : > { %988 = vadd.xlane.f32.xlu2 %v987_v11 }
 0x2b0   : > { %v1094_v12 = vpop.permute.xlu1 %1093 }
 0x2b1   : > { %1250 = vrot.lane.b32.xlu0 %v4176_v17, %s5243_s30  ;;  %3528 = vmatpush.xpose.msk.msrb.mxu1 %vm757_vm1, %v1094_v12  ;;  %s5269_s30 = sld [smem:[#allocation7_spill]] }
 0x2b8   : > { %v4271_v13 = vpop.permute.xlu1 %1260 }
 0x2c0   : > { %v1092_v14 = vpop.permute.xlu1 %1091 }
 0x2c1   : > { %3529 = vmatpush.xpose.msk.msrb.mxu1 %vm757_vm1, %v1092_v14 }
 0x2c3   : > { %1256 = vrot.lane.b32.xlu2 %v4176_v17, %s3976_s29 }
 0x2c5   : > { %v818_v15 = vpop.xlane.xlu2 %817 }
 0x2c6   : > { %3840 = vrcp.f32 %v818_v15  ;;  %v836_v30 = vand.u32 2147483648, %v818_v15  ;;  %vm830_vm6 = vweird.f32 %v818_v15  ;;  %v834_v31 = vand.u32 2147483647, %v818_v15 }
 0x2c8   : > { %v1090_v16 = vpop.permute.xlu1 %1089  ;;  %v837_v35 = vor.u32 1.1754944e-38, %v836_v30  ;;  %vm835_vm8 = vcmp.eq.f32.partialorder %v834_v31, 8.507059e+37 }
 0x2c9   : > { %3530 = vmatpush.xpose.msk.msrb.mxu1 %vm757_vm1, %v1090_v16 }
 0x2cb   : > { %1085 = vrot.lane.b32.xlu2 %v4179_v19, %s5245_s4 }
 0x2cc   : > { %v3841_v18 = vpop.eup %3840 }
 0x2cd   : > { %v821_v20 = vpop.xlane.xlu0 %820  ;;  %v826_v22 = vmul.f32 %v3841_v18, %v818_v15  ;;  %v824_v25 = vpop.xlane.xlu2 %823  ;;  %vm831_vm5 = vweird.f32 %v3841_v18 }
 0x2ce   : > { %3842 = vrcp.f32 %v821_v20  ;;  %vm832_vm7 = vmor %vm830_vm6, %vm831_vm5  ;;  %v851_v41 = vand.u32 2147483648, %v821_v20  ;;  %vm845_vm10 = vweird.f32 %v821_v20  ;;  %v849_v45 = vand.u32 2147483647, %v821_v20 }
 0x2cf   : > { %v827_v24 = vsub.f32 1.0, %v826_v22  ;;  %3844 = vrcp.f32 %v824_v25  ;;  %v866_v56 = vand.u32 2147483648, %v824_v25  ;;  %vm860_vm14 = vweird.f32 %v824_v25 }
 0x2d0   : > { %v1084_v23 = vpop.permute.xlu1 %1083  ;;  %v852_v48 = vor.u32 1.1754944e-38, %v851_v41  ;;  %vm850_vm12 = vcmp.eq.f32.partialorder %v849_v45, 8.507059e+37  ;;  %v864_v57 = vand.u32 2147483647, %v824_v25 }
 0x2d1   : > { %3531 = vmatmul.msk.f32.vlgmr.msrb.gmra.mxu1 %vm757_vm1, %v1084_v23  ;;  %v828_v26 = vmul.f32 %v3841_v18, %v827_v24  ;;  %v867_v60 = vor.u32 1.1754944e-38, %v866_v56 }
 0x2d2   : > { %vm865_vm5 = vcmp.eq.f32.partialorder %v864_v57, 8.507059e+37 }
 0x2d3   : > { %1087 = vrot.lane.b32.xlu2 %v4182_v21, %s5245_s4  ;;  %v829_v29 = vadd.f32 %v3841_v18, %v828_v26  ;;  %s5268_s4 = sld [smem:[#allocation6_spill]] }
 0x2d4   : > { %v3843_v17 = vpop.eup %3842 }
 0x2d5   : > { %v841_v27 = vmul.f32 %v3843_v17, %v821_v20  ;;  %v3845_v19 = vpop.eup %3844  ;;  %v833_v34 = vsel %vm832_vm7, %v3841_v18, %v829_v29  ;;  %vm846_vm9 = vweird.f32 %v3843_v17  ;;  %v3785_v43 = vpop.permute.xlu2 %3784 }
 0x2d6   : > { %v856_v32 = vmul.f32 %v3845_v19, %v824_v25  ;;  %v838_v38 = vsel %vm835_vm8, %v837_v35, %v833_v34  ;;  %vm847_vm11 = vmor %vm845_vm10, %vm846_vm9  ;;  %v3786_v49 = vunpack.i.l.bf16 %v3785_v43  ;;  %v3787_v50 = vunpack.i.h.bf16 %v3785_v43 }
 0x2d7   : > { %v842_v28 = vsub.f32 1.0, %v841_v27  ;;  %v839_v44 = vmul.f32 %v4226_v51, %v838_v38  ;;  %vm861_vm13 = vweird.f32 %v3845_v19 }
 0x2d8   : > { %v857_v39 = vsub.f32 1.0, %v856_v32  ;;  %vm862_vm15 = vmor %vm860_vm14, %vm861_vm13  ;;  %v1253_v41 = vpop.permute.xlu1 %1252 }
 0x2d9   : > { %v843_v33 = vmul.f32 %v3843_v17, %v842_v28 }
 0x2da   : > { %v858_v46 = vmul.f32 %v3845_v19, %v857_v39 }
 0x2db   : > { %v844_v40 = vadd.f32 %v3843_v17, %v843_v33 }
 0x2dc   : > { %v859_v53 = vadd.f32 %v3845_v19, %v858_v46 }
 0x2dd   : > { %v848_v47 = vsel %vm847_vm11, %v3843_v17, %v844_v40  ;;  %v1259_v61 = vpop.permute.xlu2 %1258 }
 0x2de   : > { %v853_v52 = vsel %vm850_vm12, %v852_v48, %v848_v47  ;;  %v863_v58 = vsel %vm862_vm15, %v3845_v19, %v859_v53 }
 0x2df   : > { %v854_v51 = vmul.f32 %v4233_v55, %v853_v52  ;;  %v868_v62 = vsel %vm865_vm5, %v867_v60, %v863_v58 }
 0x2e0   : > { %v3780_v36 = vpop.permute.xlu0 %3779  ;;  %v869_v63 = vmul.f32 %v4230_v54, %v868_v62  ;;  %v1255_v43 = vpop.permute.xlu1 %1254 }
 0x2e1   : > { %v3781_v37 = vunpack.i.l.bf16 %v3780_v36  ;;  %v3782_v42 = vunpack.i.h.bf16 %v3780_v36 }
 0x2e3   : > { %904 = vmatpush.msra.mxu2 %v3781_v37 }
 0x2e5   : > { %905 = vmatpush.msra.mxu2 %v3782_v42 }
 0x2e6   : > { %3515 = vmatmul.msk.f32.vlgmr.msra.gmra.mxu2 %vm796_vm2, %v839_v44 }
 0x2e7   : > { %3524 = vmatpush.msk.msrb.mxu2 %vm887_vm4, %v1043_v10 }
 0x2e9   : > { %1071 = vmatpush.msrb.mxu2 %v3786_v49 }
 0x2eb   : > { %1072 = vmatpush.msrb.mxu2 %v3787_v50 }
 0x2ed   : > { %3538 = vmatpush.xpose.msk.msra.mxu2 %vm757_vm1, %v4271_v13 }
 0x2ee   : > { %3516 = vmatmul.msk.f32.gmra.mxu2 %vm796_vm2, %v854_v51 }
 0x2f1   : > { %3539 = vmatpush.xpose.msk.msra.mxu2 %vm757_vm1, %v1259_v61 }
 0x2f6   : > { %3517 = vmatmul.msk.f32.gmra.mxu2 %vm796_vm2, %v869_v63 }
 0x310   : > { %v992_v0 = vpop.xlane.xlu0 %991 }
 0x311   : > { %v1034_v32 = vand.u32 2147483648, %v992_v0  ;;  %vm1028_vm15 = vweird.f32 %v992_v0  ;;  %v1032_v34 = vand.u32 2147483647, %v992_v0 }
 0x313   : > { %v1035_v36 = vor.u32 1.1754944e-38, %v1034_v32 }
 0x316   : > { %v986_v1 = vpop.xlane.xlu2 %985 }
 0x317   : > { %3846 = vrcp.f32 %v986_v1  ;;  %v1004_v8 = vand.u32 2147483648, %v986_v1  ;;  %v1002_v12 = vand.u32 2147483647, %v986_v1  ;;  %vm998_vm7 = vweird.f32 %v986_v1 }
 0x318   : > { %3848 = vrcp.f32 %v992_v0 }
 0x319   : > { %v1005_v14 = vor.u32 1.1754944e-38, %v1004_v8  ;;  %vm1003_vm9 = vcmp.eq.f32.partialorder %v1002_v12, 8.507059e+37 }
 0x31d   : > { %v3847_v55 = vpop.eup %3846 }
 0x31e   : > { %v994_v2 = vmul.f32 %v3847_v55, %v986_v1  ;;  %v989_v3 = vpop.xlane.xlu2 %988  ;;  %v3849_v5 = vpop.eup %3848  ;;  %vm999_vm6 = vweird.f32 %v3847_v55 }
 0x31f   : > { %3850 = vrcp.f32 %v989_v3  ;;  %v1024_v10 = vmul.f32 %v3849_v5, %v992_v0  ;;  %vm1000_vm8 = vmor %vm998_vm7, %vm999_vm6  ;;  %v1019_v25 = vand.u32 2147483648, %v989_v3  ;;  %v1017_v27 = vand.u32 2147483647, %v989_v3 }
 0x320   : > { %v995_v6 = vsub.f32 1.0, %v994_v2  ;;  %vm1013_vm11 = vweird.f32 %v989_v3  ;;  %vm1029_vm14 = vweird.f32 %v3849_v5  ;;  %vm1033_vm6 = vcmp.eq.f32.partialorder %v1032_v34, 8.507059e+37 }
 0x321   : > { %v1025_v15 = vsub.f32 1.0, %v1024_v10  ;;  %v1020_v29 = vor.u32 1.1754944e-38, %v1019_v25  ;;  %vm1018_vm13 = vcmp.eq.f32.partialorder %v1017_v27, 8.507059e+37  ;;  %vm1030_vm5 = vmor %vm1028_vm15, %vm1029_vm14 }
 0x322   : > { %v996_v11 = vmul.f32 %v3847_v55, %v995_v6 }
 0x323   : > { %v1026_v17 = vmul.f32 %v3849_v5, %v1025_v15  ;;  %v1251_v40 = vpop.permute.xlu0 %1250 }
 0x324   : > { %v997_v13 = vadd.f32 %v3847_v55, %v996_v11 }
 0x325   : > { %v3851_v54 = vpop.eup %3850  ;;  %v1027_v31 = vadd.f32 %v3849_v5, %v1026_v17 }
 0x326   : > { %v1009_v16 = vmul.f32 %v3851_v54, %v989_v3  ;;  %v1257_v18 = vpop.permute.xlu2 %1256  ;;  %v1001_v20 = vsel %vm1000_vm8, %v3847_v55, %v997_v13  ;;  %vm1014_vm10 = vweird.f32 %v3851_v54 }
 0x327   : > { %3540 = vmatpush.xpose.msk.msra.mxu2 %vm757_vm1, %v1257_v18  ;;  %v1006_v22 = vsel %vm1003_vm9, %v1005_v14, %v1001_v20  ;;  %vm1015_vm12 = vmor %vm1013_vm11, %vm1014_vm10  ;;  %v1031_v35 = vsel %vm1030_vm5, %v3849_v5, %v1027_v31 }
 0x328   : > { %v1010_v23 = vsub.f32 1.0, %v1009_v16  ;;  %v1007_v24 = vmul.f32 %v4260_v7, %v1006_v22  ;;  %v1036_v37 = vsel %vm1033_vm6, %v1035_v36, %v1031_v35 }
 0x329   : > { %v1037_v39 = vmul.f32 %v4256_v4, %v1036_v37 }
 0x32a   : > { %v1011_v26 = vmul.f32 %v3851_v54, %v1010_v23  ;;  %3525 = vmatmul.msk.f32.vlgmr.msrb.gmra.mxu2 %vm796_vm2, %v1007_v24 }
 0x32c   : > { %v1012_v28 = vadd.f32 %v3851_v54, %v1011_v26 }
 0x32e   : > { %v1086_v19 = vpop.permute.xlu2 %1085  ;;  %v1016_v30 = vsel %vm1015_vm12, %v3851_v54, %v1012_v28 }
 0x32f   : > { %3532 = vmatmul.msk.f32.gmra.mxu1 %vm757_vm1, %v1086_v19  ;;  %v1021_v7 = vsel %vm1018_vm13, %v1020_v29, %v1016_v30 }
 0x330   : > { %v1022_v33 = vmul.f32 %v4264_v9, %v1021_v7 }
 0x332   : > { %3526 = vmatmul.msk.f32.gmra.mxu2 %vm796_vm2, %v1022_v33 }
 0x336   : > { %v1088_v38 = vpop.permute.xlu2 %1087 }
 0x337   : > { %3533 = vmatmul.msk.f32.gmra.mxu1 %vm757_vm1, %v1088_v38 }
 0x33a   : > { %3527 = vmatmul.msk.f32.gmra.mxu2 %vm796_vm2, %v1037_v39 }
 0x342   : > { %3541 = vmatmul.msk.f32.vlgmr.msra.gmra.mxu2 %vm757_vm1, %v1251_v40 }
 0x34a   : > { %3542 = vmatmul.msk.f32.gmra.mxu2 %vm757_vm1, %v1253_v41 }
 0x34e   : > { %v1124_v9 = vpop.f32.mrf.mxu1 }
 0x34f   : > { %v1133_v42 = vsel %vm796_vm2, %v1124_v9, -inf }
 0x350   : > { %1134 = vmax.xlane.f32.xlu2 %v1133_v42 }
 0x352   : > { %3543 = vmatmul.msk.f32.gmra.mxu2 %vm757_vm1, %v1255_v43 }
 0x369   : > { %v4305_v44 = vpop.f32.mrf.mxu2 }
 0x371   : > { %v4307_v45 = vpop.f32.mrf.mxu2 }
 0x379   : > { %v4309_v4 = vpop.f32.mrf.mxu2 }
 0x3ac   : > { %v1127_v46 = vpop.f32.mrf.mxu1 }
 0x3ad   : > { %v1074_v47 = vpop.f32.mrf.mxu2  ;;  %v1136_v48 = vsel %vm796_vm2, %v1127_v46, -inf }
 0x3ae   : > { %1137 = vmax.xlane.f32.xlu0 %v1136_v48 }
 0x3b4   : > { %v1130_v58 = vpop.f32.mrf.mxu1 }
 0x3b5   : > { %v4312_v49 = vpop.f32.mrf.mxu2  ;;  %v1139_v61 = vsel %vm803_vm3, %v1130_v58, -inf }
 0x3bd   : > { %v4314_v50 = vpop.f32.mrf.mxu2 }
 0x3c3   : > { %v1135_v52 = vpop.xlane.xlu2 %1134 }
 0x3c4   : > { %v1142_v53 = vsub.f32 %v1124_v9, %v1135_v52 }
 0x3c5   : > { %v1291_v56 = vpop.f32.mrf.mxu2 }
 0x3c6   : > { %v1145_v51 = vmul.f32 1.442695, %v1142_v53  ;;  %v1300_v57 = vsel %vm796_vm2, %v1291_v56, -inf }
 0x3c7   : > { %1301 = vmax.xlane.f32.xlu1 %v1300_v57 }
 0x3c8   : > { %3852 = vpow2.f32 %v1145_v51 }
 0x3cd   : > { %v1294_v63 = vpop.f32.mrf.mxu2 }
 0x3ce   : > { %v4317_v60 = vpop.eup %3852  ;;  %v1303_v0 = vsel %vm796_vm2, %v1294_v63, -inf }
 0x3cf   : > { %1140 = vmax.xlane.f32.xlu1 %v1139_v61  ;;  %v1151_v62 = vsel %vm796_vm2, %v4317_v60, 0.0 }
 0x3d0   : > { %1152 = vadd.xlane.f32.xlu2 %v1151_v62 }
 0x3d5   : > { %v1297_v6 = vpop.f32.mrf.mxu2 }
 0x3d6   : > { %v1306_v8 = vsel %vm803_vm3, %v1297_v6, -inf }
 0x3d8   : > { %1304 = vmax.xlane.f32.xlu2 %v1303_v0 }
 0x3f0   : > { %1209 = vrot.lane.b32.xlu2 %v4182_v21, %s3979_s5 }
 0x421   : > { %v1138_v1 = vpop.xlane.xlu0 %1137 }
 0x422   : > { %v1143_v55 = vsub.f32 %v1127_v46, %v1138_v1 }
 0x424   : > { %v1147_v2 = vmul.f32 1.442695, %v1143_v55 }
 0x426   : > { %3854 = vpow2.f32 %v1147_v2 }
 0x42c   : > { %v4325_v3 = vpop.eup %3854 }
 0x42d   : > { %v1154_v5 = vsel %vm796_vm2, %v4325_v3, 0.0 }
 0x42e   : > { %1155 = vadd.xlane.f32.xlu0 %v1154_v5 }
 0x436   : > { %1307 = vmax.xlane.f32.xlu0 %v1306_v8 }
 0x43a   : > { %v1302_v10 = vpop.xlane.xlu1 %1301 }
 0x43b   : > { %v1309_v11 = vsub.f32 %v1291_v56, %v1302_v10 }
 0x43d   : > { %v1312_v12 = vmul.f32 1.442695, %v1309_v11 }
 0x43f   : > { %3856 = vpow2.f32 %v1312_v12 }
 0x442   : > { %v1141_v13 = vpop.xlane.xlu1 %1140 }
 0x443   : > { %v1144_v54 = vsub.f32 %v1130_v58, %v1141_v13  ;;  %v4330_v14 = vpop.xlane.xlu2 %1152 }
 0x444   : > { %vm1165_vm12 = vweird.f32 %v4330_v14  ;;  %v1171_v0 = vand.u32 2147483648, %v4330_v14  ;;  %v1169_v5 = vand.u32 2147483647, %v4330_v14 }
 0x445   : > { %v4332_v15 = vpop.eup %3856  ;;  %v1149_v16 = vmul.f32 1.442695, %v1144_v54 }
 0x446   : > { %v1318_v18 = vsel %vm796_vm2, %v4332_v15, 0.0  ;;  %vm1170_vm6 = vcmp.eq.f32.partialorder %v1169_v5, 8.507059e+37 }
 0x447   : > { %3858 = vpow2.f32 %v1149_v16  ;;  %1319 = vadd.xlane.f32.xlu1 %v1318_v18  ;;  %v1172_v18 = vor.u32 1.1754944e-38, %v1171_v0 }
 0x44b   : > { %v1305_v20 = vpop.xlane.xlu2 %1304 }
 0x44c   : > { %v1310_v22 = vsub.f32 %v1294_v63, %v1305_v20 }
 0x44d   : > { %v4336_v23 = vpop.eup %3858 }
 0x44e   : > { %v1314_v24 = vmul.f32 1.442695, %v1310_v22  ;;  %v1157_v25 = vsel %vm803_vm3, %v4336_v23, 0.0 }
 0x44f   : > { %1158 = vadd.xlane.f32.xlu0 %v1157_v25 }
 0x450   : > { %3860 = vpow2.f32 %v1314_v24 }
 0x453   : > { %v1210_v17 = vpop.permute.xlu2 %1209 }
 0x454   : > { %3534 = vmatpush.msk.msra.mxu3 %vm887_vm4, %v1210_v17 }
 0x456   : > { %v4341_v26 = vpop.eup %3860 }
 0x457   : > { %v1321_v27 = vsel %vm796_vm2, %v4341_v26, 0.0 }
 0x458   : > { %1322 = vadd.xlane.f32.xlu1 %v1321_v27 }
 0x463   : > { %1376 = vrot.lane.b32.xlu0 %v4182_v21, %s3980_s22 }
 0x46b   : > { %3794 = vrot.lane.b32.xlu0 %v4246_v59, %s3980_s22  ;;  %s3985_s22 = smov 124  }
 0x471   : > { %3789 = vrot.lane.b32.xlu1 %v4246_v59, %s3979_s5  ;;  %s5267_s5 = sld [smem:[#allocation5_spill]] }
 0x479   : > { %1420 = vrot.lane.b32.xlu1 %v1074_v47, %s5247_s23 }
 0x4a1   : > { %v4350_v28 = vpop.xlane.xlu0 %1155 }
 0x4a9   : > { %v1308_v29 = vpop.xlane.xlu0 %1307 }
 0x4aa   : > { %v1311_v19 = vsub.f32 %v1297_v6, %v1308_v29  ;;  %v1186_v29 = vand.u32 2147483648, %v4350_v28 }
 0x4ac   : > { %v1316_v30 = vmul.f32 1.442695, %v1311_v19 }
 0x4ae   : > { %3862 = vpow2.f32 %v1316_v30 }
 0x4b4   : > { %v4352_v31 = vpop.eup %3862 }
 0x4b5   : > { %v1324_v32 = vsel %vm803_vm3, %v4352_v31, 0.0 }
 0x4b6   : > { %1325 = vadd.xlane.f32.xlu2 %v1324_v32 }
 0x4ba   : > { %v1320_v21 = vpop.xlane.xlu1 %1319 }
 0x4bb   : > { %3864 = vrcp.f32 %v1320_v21  ;;  %v1338_v52 = vand.u32 2147483648, %v1320_v21  ;;  %vm1332_vm8 = vweird.f32 %v1320_v21  ;;  %v1336_v53 = vand.u32 2147483647, %v1320_v21 }
 0x4bc   : > { %3866 = vrcp.f32 %v4330_v14 }
 0x4bd   : > { %v1339_v61 = vor.u32 1.1754944e-38, %v1338_v52  ;;  %vm1337_vm11 = vcmp.eq.f32.partialorder %v1336_v53, 8.507059e+37 }
 0x4c1   : > { %v3865_v59 = vpop.eup %3864 }
 0x4c2   : > { %v1328_v7 = vmul.f32 %v3865_v59, %v1320_v21  ;;  %v3867_v34 = vpop.eup %3866  ;;  %v4357_v35 = vpop.xlane.xlu0 %1158  ;;  %vm1333_vm7 = vweird.f32 %v3865_v59  ;;  %v1184_v21 = vand.u32 2147483647, %v4350_v28 }
 0x4c3   : > { %v1161_v37 = vmul.f32 %v3867_v34, %v4330_v14  ;;  %vm1334_vm9 = vmor %vm1332_vm8, %vm1333_vm7  ;;  %vm1166_vm10 = vweird.f32 %v3867_v34 }
 0x4c4   : > { %v1329_v36 = vsub.f32 1.0, %v1328_v7  ;;  %vm4369_vm13 = vmor %vm1165_vm12, %vm1166_vm10 }
 0x4c5   : > { %v1162_v41 = vsub.f32 1.0, %v1161_v37 }
 0x4c6   : > { %v1330_v39 = vmul.f32 %v3865_v59, %v1329_v36 }
 0x4c7   : > { %v1163_v47 = vmul.f32 %v3867_v34, %v1162_v41 }
 0x4c8   : > { %v1331_v43 = vadd.f32 %v3865_v59, %v1330_v39 }
 0x4c9   : > { %v1164_v57 = vadd.f32 %v3867_v34, %v1163_v47 }
 0x4ca   : > { %v1335_v56 = vsel %vm1334_vm9, %v3865_v59, %v1331_v43  ;;  %vm1180_vm9 = vweird.f32 %v4350_v28 }
 0x4cb   : > { %v1323_v33 = vpop.xlane.xlu1 %1322  ;;  %v1340_v1 = vsel %vm1337_vm11, %v1339_v61, %v1335_v56  ;;  %v1168_v8 = vsel %vm4369_vm13, %v3867_v34, %v1164_v57  ;;  %v1187_v34 = vor.u32 1.1754944e-38, %v1186_v29  ;;  %vm1185_vm11 = vcmp.eq.f32.partialorder %v1184_v21, 8.507059e+37 }
 0x4cc   : > { %3868 = vrcp.f32 %v1323_v33  ;;  %v1353_v11 = vand.u32 2147483648, %v1323_v33  ;;  %vm1347_vm15 = vweird.f32 %v1323_v33  ;;  %v1341_v54 = vmul.f32 %v4332_v15, %v1340_v1 }
 0x4cd   : > { %3870 = vrcp.f32 %v4350_v28  ;;  %v1351_v16 = vand.u32 2147483647, %v1323_v33  ;;  %v1173_v24 = vsel %vm1170_vm6, %v1172_v18, %v1168_v8  ;;  %vm1195_vm13 = vweird.f32 %v4357_v35  ;;  %v1624_v18 = vld [vmem:[%s5230_s13 + $0x8] sm:$0xff] }
 0x4ce   : > { %3872 = vrcp.f32 %v4357_v35  ;;  %v1354_v25 = vor.u32 1.1754944e-38, %v1353_v11  ;;  %v1174_v32 = vmul.f32 %v4317_v60, %v1173_v24  ;;  %v1201_v60 = vand.u32 2147483648, %v4357_v35  ;;  %3560 = vmatpush.xpose.msk.msrb.mxu2 %vm676_vm0, %v1624_v18 }
 0x4cf   : > { %vm1352_vm7 = vcmp.eq.f32.partialorder %v1351_v16, 8.507059e+37 }
 0x4d0   : > { %v1202_v39 = vor.u32 1.1754944e-38, %v1201_v60 }
 0x4d2   : > { %v3869_v38 = vpop.eup %3868 }
 0x4d3   : > { %v1343_v40 = vmul.f32 %v3869_v38, %v1323_v33  ;;  %v4361_v9 = vpop.eup %3870  ;;  %vm1348_vm14 = vweird.f32 %v3869_v38 }
 0x4d4   : > { %v1176_v48 = vmul.f32 %v4361_v9, %v4350_v28  ;;  %v3873_v63 = vpop.eup %3872  ;;  %vm4379_vm5 = vmor %vm1347_vm15, %vm1348_vm14  ;;  %vm1181_vm8 = vweird.f32 %v4361_v9 }
 0x4d5   : > { %v1377_v42 = vpop.permute.xlu0 %1376  ;;  %v1344_v46 = vsub.f32 1.0, %v1343_v40  ;;  %v1191_v13 = vmul.f32 %v3873_v63, %v4357_v35  ;;  %vm1182_vm10 = vmor %vm1180_vm9, %vm1181_vm8  ;;  %vm1196_vm12 = vweird.f32 %v3873_v63  ;;  %vm1456_vm9 = vcmask 130048  }
 0x4d6   : > { %3544 = vmatpush.msk.msra.mxu1 %vm887_vm4, %v1377_v42  ;;  %v1177_v58 = vsub.f32 1.0, %v1176_v48  ;;  %vm1197_vm14 = vmor %vm1195_vm13, %vm1196_vm12 }
 0x4d7   : > { %v1345_v51 = vmul.f32 %v3869_v38, %v1344_v46  ;;  %v1192_v27 = vsub.f32 1.0, %v1191_v13 }
 0x4d8   : > { %v1178_v10 = vmul.f32 %v4361_v9, %v1177_v58 }
 0x4d9   : > { %v1346_v6 = vadd.f32 %v3869_v38, %v1345_v51  ;;  %v1193_v59 = vmul.f32 %v3873_v63, %v1192_v27  ;;  %v1623_v27 = vld [vmem:[%s5230_s13] sm:$0xff] }
 0x4da   : > { %v1179_v15 = vadd.f32 %v4361_v9, %v1178_v10  ;;  %3561 = vmatpush.xpose.msk.msrb.mxu2 %vm676_vm0, %v1623_v27 }
 0x4db   : > { %v1350_v22 = vsel %vm4379_vm5, %v3869_v38, %v1346_v6  ;;  %v1194_v37 = vadd.f32 %v3873_v63, %v1193_v59  ;;  %v1199_v38 = vand.u32 2147483647, %v4357_v35  ;;  %v4480_v59 = vld [vmem:[%s5231_s14] ss:$0 sm:$0xff] }
 0x4dc   : > { %v1355_v30 = vsel %vm1352_vm7, %v1354_v25, %v1350_v22  ;;  %v1183_v33 = vsel %vm1182_vm10, %v4361_v9, %v1179_v15  ;;  %vm1460_vm10 = vcmask 195584  }
 0x4dd   : > { %v3795_v62 = vpop.permute.xlu0 %3794  ;;  %v1356_v7 = vmul.f32 %v4341_v26, %v1355_v30  ;;  %v1188_v36 = vsel %vm1185_vm11, %v1187_v34, %v1183_v33  ;;  %v1198_v26 = vsel %vm1197_vm14, %v3873_v63, %v1194_v37  ;;  %vm1200_vm15 = vcmp.eq.f32.partialorder %v1199_v38, 8.507059e+37  ;;  %v1466_v63 = vld [vmem:[%s5267_s5 + $0x10] sm:$0xff] }
 0x4de   : > { %v3796_v55 = vunpack.i.l.bf16 %v3795_v62  ;;  %v3797_v12 = vunpack.i.h.bf16 %v3795_v62  ;;  %v1189_v28 = vmul.f32 %v4325_v3, %v1188_v36  ;;  %v1203_v40 = vsel %vm1200_vm15, %v1202_v39, %v1198_v26 }
 0x4df   : > { %v1204_v41 = vmul.f32 %v4336_v23, %v1203_v40 }
 0x4e0   : > { %1405 = vmatpush.msra.mxu1 %v3796_v55 }
 0x4e2   : > { %1406 = vmatpush.msra.mxu1 %v3797_v12 }
 0x4e3   : > { %3545 = vmatmul.msk.f32.vlgmr.msra.gmra.mxu1 %vm796_vm2, %v1341_v54  ;;  %v3790_v20 = vpop.permute.xlu1 %3789 }
 0x4e4   : > { %v3791_v17 = vunpack.i.l.bf16 %v3790_v20  ;;  %v3792_v19 = vunpack.i.h.bf16 %v3790_v20 }
 0x4e6   : > { %1238 = vmatpush.msra.mxu3 %v3791_v17  ;;  %v1519_v17 = vld [vmem:[%s5228_s11] sm:$0xff] }
 0x4e8   : > { %1239 = vmatpush.msra.mxu3 %v3792_v19 }
 0x4e9   : > { %3535 = vmatmul.msk.f32.vlgmr.msra.gmra.mxu3 %vm796_vm2, %v1174_v32 }
 0x4eb   : > { %3546 = vmatmul.msk.f32.gmra.mxu1 %vm796_vm2, %v1356_v7  ;;  %v1421_v1 = vpop.permute.xlu1 %1420 }
 0x4ec   : > { %v1453_v55 = vsel %vm757_vm1, %v4305_v44, %v1421_v1  ;;  %v1520_v44 = vld [vmem:[%s5228_s11 + $0x8] sm:$0xff] }
 0x4ed   : > { %3555 = vmatpush.xpose.msk.msrb.mxu0 %vm676_vm0, %v1520_v44 }
 0x4f1   : > { %3536 = vmatmul.msk.f32.gmra.mxu3 %vm796_vm2, %v1189_v28  ;;  %3556 = vmatpush.xpose.msk.msrb.mxu0 %vm676_vm0, %v1519_v17 }
 0x4f9   : > { %3537 = vmatmul.msk.f32.gmra.mxu3 %vm796_vm2, %v1204_v41 }
 0x529   : > { %v1326_v9 = vpop.xlane.xlu2 %1325 }
 0x52a   : > { %3874 = vrcp.f32 %v1326_v9  ;;  %v1368_v47 = vand.u32 2147483648, %v1326_v9  ;;  %v1366_v35 = vand.u32 2147483647, %v1326_v9  ;;  %vm1362_vm6 = vweird.f32 %v1326_v9 }
 0x52c   : > { %v1369_v52 = vor.u32 1.1754944e-38, %v1368_v47  ;;  %vm1367_vm8 = vcmp.eq.f32.partialorder %v1366_v35, 8.507059e+37 }
 0x530   : > { %v3875_v42 = vpop.eup %3874 }
 0x531   : > { %v1358_v43 = vmul.f32 %v3875_v42, %v1326_v9  ;;  %vm1363_vm5 = vweird.f32 %v3875_v42 }
 0x532   : > { %vm1364_vm7 = vmor %vm1362_vm6, %vm1363_vm5 }
 0x533   : > { %v1359_v46 = vsub.f32 1.0, %v1358_v43 }
 0x535   : > { %v1360_v3 = vmul.f32 %v3875_v42, %v1359_v46 }
 0x537   : > { %v1361_v48 = vadd.f32 %v3875_v42, %v1360_v3 }
 0x539   : > { %v1365_v53 = vsel %vm1364_vm7, %v3875_v42, %v1361_v48 }
 0x53a   : > { %v1370_v56 = vsel %vm1367_vm8, %v1369_v52, %v1365_v53 }
 0x53b   : > { %v1371_v23 = vmul.f32 %v4352_v31, %v1370_v56  ;;  %v1467_v31 = vld [vmem:[%s5267_s5 + $0x18] sm:$0xff] }
 0x53c   : > { %3548 = vmatpush.xpose.msk.msrb.mxu3 %vm676_vm0, %v1467_v31 }
 0x53d   : > { %3547 = vmatmul.msk.f32.gmra.mxu1 %vm796_vm2, %v1371_v23 }
 0x540   : > { %3549 = vmatpush.xpose.msk.msrb.mxu3 %vm676_vm0, %v1466_v63 }
 0x560   : > { %v1408_v51 = vpop.f32.mrf.mxu1 }
 0x561   : > { %1444 = vrot.lane.b32.xlu1 %v1408_v51, %s3982_s26 }
 0x568   : > { %v1411_v61 = vpop.f32.mrf.mxu1 }
 0x56c   : > { %v1241_v57 = vpop.f32.mrf.mxu3 }
 0x56d   : > { %1432 = vrot.lane.b32.xlu0 %v1241_v57, %s3983_s27 }
 0x574   : > { %v1244_v58 = vpop.f32.mrf.mxu3 }
 0x575   : > { %1422 = vrot.lane.b32.xlu0 %v4312_v49, %s5247_s23  ;;  %1434 = vrot.lane.b32.xlu1 %v1244_v58, %s3983_s27  ;;  %v1465_v49 = vld [vmem:[%s5267_s5 + $0x8] sm:$0xff] }
 0x576   : > { %3550 = vmatpush.xpose.msk.msrb.mxu3 %vm676_vm0, %v1465_v49 }
 0x57c   : > { %v1247_v62 = vpop.f32.mrf.mxu3 }
 0x57d   : > { %1446 = vrot.lane.b32.xlu0 %v1411_v61, %s3982_s26  ;;  %1424 = vrot.lane.b32.xlu1 %v4314_v50, %s5247_s23  ;;  %v1464_v50 = vld [vmem:[%s5267_s5] sm:$0xff]  ;;  %s5270_s23 = smov 112  }
 0x57e   : > { %3551 = vmatpush.xpose.msk.msrb.mxu3 %vm676_vm0, %v1464_v50 }
 0x585   : > { %1436 = vrot.lane.b32.xlu0 %v1247_v62, %s3983_s27  ;;  %s3986_s27 = smov 116  }
 0x5ba   : > { %v1414_v0 = vpop.f32.mrf.mxu1 }
 0x5bb   : > { %1448 = vrot.lane.b32.xlu2 %v1414_v0, %s3982_s26  ;;  %s3987_s26 = smov 108  }
 0x5d3   : > { %v1445_v5 = vpop.permute.xlu1 %1444 }
 0x5df   : > { %v1433_v2 = vpop.permute.xlu0 %1432 }
 0x5e0   : > { %v1457_v6 = vsel %vm1456_vm9, %v1453_v55, %v1433_v2 }
 0x5e1   : > { %v1461_v8 = vsel %vm1460_vm10, %v1457_v6, %v1445_v5 }
 0x5e2   : > { %3552 = vmatmul.msk.f32.vlgmr.msrb.gmra.mxu3 %vm676_vm0, %v1461_v8 }
 0x5e7   : > { %v1423_v10 = vpop.permute.xlu0 %1422  ;;  %v1435_v12 = vpop.permute.xlu1 %1434 }
 0x5e8   : > { %v1454_v11 = vsel %vm757_vm1, %v4307_v45, %v1423_v10 }
 0x5e9   : > { %v1458_v13 = vsel %vm1456_vm9, %v1454_v11, %v1435_v12 }
 0x5ef   : > { %v1447_v54 = vpop.permute.xlu0 %1446  ;;  %v1425_v45 = vpop.permute.xlu1 %1424 }
 0x5f0   : > { %v1462_v16 = vsel %vm1460_vm10, %v1458_v13, %v1447_v54  ;;  %v1455_v20 = vsel %vm757_vm1, %v4309_v4, %v1425_v45  ;;  %v3819_v4 = vld [vmem:[%s5268_s4] ss:$0 sm:$0xff] }
 0x5f1   : > { %3553 = vmatmul.msk.f32.gmra.mxu3 %vm676_vm0, %v1462_v16 }
 0x5f7   : > { %v1437_v14 = vpop.permute.xlu0 %1436 }
 0x5f8   : > { %v1459_v22 = vsel %vm1456_vm9, %v1455_v20, %v1437_v14 }
 0x615   : > { %v1449_v24 = vpop.permute.xlu2 %1448 }
 0x616   : > { %v1463_v25 = vsel %vm1460_vm10, %v1459_v22, %v1449_v24 }
 0x617   : > { %3554 = vmatmul.msk.f32.gmra.mxu3 %vm676_vm0, %v1463_v25 }
 0x665   : > { %v1510_v15 = vpop.f32.mrf.mxu3 }
 0x666   : > { %v4459_v29 = vadd.f32 %v3819_v4, %v1510_v15 }
 0x668   : > { %3557 = vmatmul.msk.f32.vlgmr.msrb.gmra.mxu0 %vm676_vm0, %v4459_v29  ;;  %3562 = vmatmul.msk.f32.vlgmr.msrb.gmra.mxu2 %vm676_vm0, %v4459_v29 }
 0x674   : > { %v1513_v19 = vpop.f32.mrf.mxu3 }
 0x675   : > { %v4465_v30 = vadd.f32 %v3819_v4, %v1513_v19 }
 0x677   : > { %3558 = vmatmul.msk.f32.gmra.mxu0 %vm676_vm0, %v4465_v30  ;;  %3563 = vmatmul.msk.f32.gmra.mxu2 %vm676_vm0, %v4465_v30 }
 0x69a   : > { %v1516_v32 = vpop.f32.mrf.mxu3 }
 0x69b   : > { %v4471_v21 = vadd.f32 %v3819_v4, %v1516_v32 }
 0x69d   : > { %3559 = vmatmul.msk.f32.gmra.mxu0 %vm676_vm0, %v4471_v21  ;;  %3564 = vmatmul.msk.f32.gmra.mxu2 %vm676_vm0, %v4471_v21 }
 0x6eb   : > { %v1652_v7 = vpop.f32.mrf.mxu2 }
 0x6ec   : > { %v4483_v33 = vadd.f32 %v4480_v59, %v1652_v7 }
 0x6ee   : > { %v4486_v34 = vmul.f32 0.70710677, %v4483_v33  ;;  %v1661_v32 = vmul.f32 0.5, %v4483_v33 }
 0x6f0   : > { %v1667_v36 = vand.u32 2147483647, %v4486_v34  ;;  %vm1766_vm8 = vcmp.ge.f32.partialorder %v4486_v34, 0.0 }
 0x6f2   : > { %v1670_v37 = vmul.f32 0.3275911, %v1667_v36  ;;  %v1748_v53 = vsub.f32 0.0, %v1667_v36 }
 0x6f4   : > { %v1673_v60 = vadd.f32 1.0, %v1670_v37  ;;  %v1751_v58 = vmul.f32 %v1748_v53, %v1667_v36 }
 0x6f6   : > { %3876 = vrcp.f32 %v1673_v60  ;;  %v1687_v43 = vand.u32 2147483648, %v1673_v60  ;;  %v1685_v47 = vand.u32 2147483647, %v1673_v60  ;;  %vm1681_vm12 = vweird.f32 %v1673_v60 }
 0x6f7   : > { %v1754_v49 = vmul.f32 1.442695, %v1751_v58 }
 0x6f8   : > { %v1688_v48 = vor.u32 1.1754944e-38, %v1687_v43  ;;  %vm1686_vm14 = vcmp.eq.f32.partialorder %v1685_v47, 8.507059e+37 }
 0x6fa   : > { %v1655_v28 = vpop.f32.mrf.mxu2 }
 0x6fb   : > { %v4490_v38 = vadd.f32 %v4480_v59, %v1655_v28 }
 0x6fc   : > { %v3877_v26 = vpop.eup %3876 }
 0x6fd   : > { %v1677_v39 = vmul.f32 %v3877_v26, %v1673_v60  ;;  %v4493_v40 = vmul.f32 0.70710677, %v4490_v38  ;;  %vm1682_vm11 = vweird.f32 %v3877_v26 }
 0x6fe   : > { %vm1683_vm13 = vmor %vm1681_vm12, %vm1682_vm11 }
 0x6ff   : > { %v1678_v41 = vsub.f32 1.0, %v1677_v39  ;;  %v1668_v9 = vand.u32 2147483647, %v4493_v40  ;;  %vm1767_vm10 = vcmp.ge.f32.partialorder %v4493_v40, 0.0 }
 0x701   : > { %v1679_v42 = vmul.f32 %v3877_v26, %v1678_v41  ;;  %v1671_v46 = vmul.f32 0.3275911, %v1668_v9  ;;  %v1749_v11 = vsub.f32 0.0, %v1668_v9 }
 0x703   : > { %v1674_v3 = vadd.f32 1.0, %v1671_v46  ;;  %v1680_v35 = vadd.f32 %v3877_v26, %v1679_v42  ;;  %v1752_v45 = vmul.f32 %v1749_v11, %v1668_v9 }
 0x705   : > { %3878 = vrcp.f32 %v1674_v3  ;;  %v1684_v52 = vsel %vm1683_vm13, %v3877_v26, %v1680_v35  ;;  %v1702_v0 = vand.u32 2147483648, %v1674_v3  ;;  %v1700_v55 = vand.u32 2147483647, %v1674_v3 }
 0x706   : > { %v1689_v56 = vsel %vm1686_vm14, %v1688_v48, %v1684_v52  ;;  %vm1696_vm5 = vweird.f32 %v1674_v3  ;;  %3880 = vpow2.f32 %v1754_v49  ;;  %v1756_v25 = vmul.f32 1.442695, %v1752_v45 }
 0x707   : > { %v1721_v23 = vmul.f32 1.0614054, %v1689_v56  ;;  %v1703_v6 = vor.u32 1.1754944e-38, %v1702_v0  ;;  %vm1701_vm7 = vcmp.eq.f32.partialorder %v1700_v55, 8.507059e+37 }
 0x708   : > { %3882 = vpow2.f32 %v1756_v25 }
 0x709   : > { %v1724_v51 = vadd.f32 -1.4531521, %v1721_v23 }
 0x70b   : > { %v3879_v57 = vpop.eup %3878  ;;  %v1727_v62 = vmul.f32 %v1724_v51, %v1689_v56 }
 0x70c   : > { %v1692_v61 = vmul.f32 %v3879_v57, %v1674_v3  ;;  %vm1697_vm15 = vweird.f32 %v3879_v57  ;;  %v3881_v18 = vpop.eup %3880  ;;  %v1662_v3 = vmul.f32 0.5, %v4490_v38 }
 0x70d   : > { %v1730_v63 = vadd.f32 1.4214138, %v1727_v62  ;;  %vm1698_vm6 = vmor %vm1696_vm5, %vm1697_vm15  ;;  %vm1787_vm5 = vcmask 122880  }
 0x70e   : > { %v1693_v31 = vsub.f32 1.0, %v1692_v61  ;;  %v3883_v9 = vpop.eup %3882 }
 0x70f   : > { %v1733_v1 = vmul.f32 %v1730_v63, %v1689_v56 }
 0x710   : > { %v1694_v50 = vmul.f32 %v3879_v57, %v1693_v31 }
 0x711   : > { %v1736_v2 = vadd.f32 -0.28449672, %v1733_v1 }
 0x712   : > { %v1695_v5 = vadd.f32 %v3879_v57, %v1694_v50 }
 0x713   : > { %v1739_v8 = vmul.f32 %v1736_v2, %v1689_v56 }
 0x714   : > { %v1699_v10 = vsel %vm1698_vm6, %v3879_v57, %v1695_v5 }
 0x715   : > { %v1704_v12 = vsel %vm1701_vm7, %v1703_v6, %v1699_v10  ;;  %v1742_v13 = vadd.f32 0.2548296, %v1739_v8 }
 0x716   : > { %v1722_v54 = vmul.f32 1.0614054, %v1704_v12 }
 0x717   : > { %v1745_v16 = vmul.f32 %v1742_v13, %v1689_v56 }
 0x718   : > { %v1725_v44 = vadd.f32 -1.4531521, %v1722_v54 }
 0x719   : > { %v1760_v14 = vmul.f32 %v3881_v18, %v1745_v16 }
 0x71a   : > { %v1728_v20 = vmul.f32 %v1725_v44, %v1704_v12 }
 0x71b   : > { %v1763_v22 = vsub.f32 1.0, %v1760_v14 }
 0x71c   : > { %v1731_v24 = vadd.f32 1.4214138, %v1728_v20  ;;  %v3984_v20 = vmov 16.0  }
 0x71d   : > { %v1769_v17 = vsub.f32 0.0, %v1763_v22 }
 0x71e   : > { %v1734_v27 = vmul.f32 %v1731_v24, %v1704_v12 }
 0x71f   : > { %v1772_v15 = vsel %vm1766_vm8, %v1763_v22, %v1769_v17 }
 0x720   : > { %v1658_v4 = vpop.f32.mrf.mxu2  ;;  %v1737_v19 = vadd.f32 -0.28449672, %v1734_v27  ;;  %v1775_v36 = vadd.f32 1.0, %v1772_v15 }
 0x721   : > { %v1659_v7 = vadd.f32 %v4480_v59, %v1658_v4 }
 0x722   : > { %v1740_v37 = vmul.f32 %v1737_v19, %v1704_v12  ;;  %v4499_v28 = vmul.f32 %v1775_v36, %v1661_v32 }
 0x723   : > { %v1666_v60 = vmul.f32 0.70710677, %v1659_v7  ;;  %v1663_v44 = vmul.f32 0.5, %v1659_v7 }
 0x724   : > { %v1743_v26 = vadd.f32 0.2548296, %v1740_v37  ;;  %v1781_v41 = vsel %vm1456_vm9, %v4499_v28, 0.0 }
 0x725   : > { %v1669_v39 = vand.u32 2147483647, %v1666_v60  ;;  %1782 = vadd.xlane.f32.xlu1 %v1781_v41  ;;  %vm1768_vm15 = vcmp.ge.f32.partialorder %v1666_v60, 0.0 }
 0x726   : > { %v1746_v34 = vmul.f32 %v1743_v26, %v1704_v12 }
 0x727   : > { %v1672_v42 = vmul.f32 0.3275911, %v1669_v39  ;;  %v1750_v31 = vsub.f32 0.0, %v1669_v39 }
 0x728   : > { %v1761_v43 = vmul.f32 %v3883_v9, %v1746_v34 }
 0x729   : > { %v1675_v46 = vadd.f32 1.0, %v1672_v42  ;;  %v1753_v0 = vmul.f32 %v1750_v31, %v1669_v39 }
 0x72a   : > { %v1764_v33 = vsub.f32 1.0, %v1761_v43 }
 0x72b   : > { %3884 = vrcp.f32 %v1675_v46  ;;  %v1717_v51 = vand.u32 2147483648, %v1675_v46  ;;  %v1715_v58 = vand.u32 2147483647, %v1675_v46  ;;  %vm1711_vm12 = vweird.f32 %v1675_v46 }
 0x72c   : > { %v1770_v47 = vsub.f32 0.0, %v1764_v33  ;;  %v1758_v55 = vmul.f32 1.442695, %v1753_v0 }
 0x72d   : > { %v1718_v62 = vor.u32 1.1754944e-38, %v1717_v51  ;;  %vm1716_vm14 = vcmp.eq.f32.partialorder %v1715_v58, 8.507059e+37  ;;  %v1910_v58 = vld [vmem:[%s5224_s7] sm:$0xff] }
 0x72e   : > { %v1773_v59 = vsel %vm1767_vm10, %v1764_v33, %v1770_v47  ;;  %3886 = vpow2.f32 %v1758_v55  ;;  %v1557_v33 = vpop.f32.mrf.mxu0 }
 0x72f   : > { %v1776_v35 = vadd.f32 1.0, %v1773_v59  ;;  %3888 = vrcp.f32 %v3984_v20 }
 0x731   : > { %v3885_v48 = vpop.eup %3884  ;;  %v1779_v52 = vmul.f32 %v1776_v35, %v1662_v3  ;;  %v1913_v35 = vld [vmem:[%s5224_s7 + $0x18] sm:$0xff] }
 0x732   : > { %v1707_v53 = vmul.f32 %v3885_v48, %v1675_v46  ;;  %vm1712_vm11 = vweird.f32 %v3885_v48  ;;  %v4531_v46 = vld [vmem:[%s5229_s12] ss:$0 sm:$0xff]  ;;  %3570 = vmatpush.xpose.msk.msra.mxu3 %vm1456_vm9, %v1913_v35 }
 0x733   : > { %v1784_v56 = vsel %vm1456_vm9, %v1779_v52, 0.0  ;;  %vm1713_vm13 = vmor %vm1711_vm12, %vm1712_vm11  ;;  %v1558_v47 = vadd.f32 %v4531_v46, %v1557_v33 }
 0x734   : > { %v1708_v23 = vsub.f32 1.0, %v1707_v53  ;;  %1785 = vadd.xlane.f32.xlu0 %v1784_v56  ;;  %v3887_v11 = vpop.eup %3886  ;;  %v1911_v56 = vld [vmem:[%s5224_s7 + $0x8] sm:$0xff] }
 0x735   : > { %v3889_v22 = vpop.eup %3888  ;;  %v1566_v59 = vsub.f32 0.0, %v1558_v47 }
 0x736   : > { %v1709_v57 = vmul.f32 %v3885_v48, %v1708_v23  ;;  %v1792_v24 = vmul.f32 16.0, %v3889_v22  ;;  %vm1796_vm6 = vweird.f32 %v3889_v22 }
 0x737   : > { %v1569_v3 = vmul.f32 1.442695, %v1566_v59 }
 0x738   : > { %v1710_v61 = vadd.f32 %v3885_v48, %v1709_v57  ;;  %v1793_v25 = vsub.f32 1.0, %v1792_v24 }
 0x739   : > { %3890 = vpow2.f32 %v1569_v3 }
 0x73a   : > { %v1714_v40 = vsel %vm1713_vm13, %v3885_v48, %v1710_v61  ;;  %v1794_v17 = vmul.f32 %v3889_v22, %v1793_v25  ;;  %v1560_v48 = vpop.f32.mrf.mxu0 }
 0x73b   : > { %v1719_v38 = vsel %vm1716_vm14, %v1718_v62, %v1714_v40  ;;  %v1561_v53 = vadd.f32 %v4531_v46, %v1560_v48 }
 0x73c   : > { %v1723_v63 = vmul.f32 1.0614054, %v1719_v38  ;;  %v1795_v27 = vadd.f32 %v3889_v22, %v1794_v17 }
 0x73d   : > { %v1567_v51 = vsub.f32 0.0, %v1561_v53 }
 0x73e   : > { %v1726_v49 = vadd.f32 -1.4531521, %v1723_v63  ;;  %v4507_v4 = vsel %vm1796_vm6, %v3889_v22, %v1795_v27 }
 0x73f   : > { %v3891_v23 = vpop.eup %3890  ;;  %v1571_v61 = vmul.f32 1.442695, %v1567_v51 }
 0x740   : > { %v1729_v50 = vmul.f32 %v1726_v49, %v1719_v38  ;;  %v1575_v57 = vadd.f32 1.0, %v3891_v23 }
 0x742   : > { %v1732_v1 = vadd.f32 1.4214138, %v1729_v50  ;;  %3892 = vrcp.f32 %v1575_v57  ;;  %vm1583_vm12 = vweird.f32 %v1575_v57  ;;  %v1587_v22 = vand.u32 2147483647, %v1575_v57  ;;  %v1563_v25 = vpop.f32.mrf.mxu0 }
 0x743   : > { %3894 = vpow2.f32 %v1571_v61  ;;  %v1872_v61 = vld [vmem:[%s5269_s30] sm:$0xff] }
 0x744   : > { %v1735_v2 = vmul.f32 %v1732_v1, %v1719_v38  ;;  %vm1588_vm14 = vcmp.eq.f32.partialorder %v1587_v22, 8.507059e+37 }
 0x746   : > { %v1738_v5 = vadd.f32 -0.28449672, %v1735_v2 }
 0x748   : > { %v1741_v6 = vmul.f32 %v1738_v5, %v1719_v38 }
 0x74a   : > { %v1744_v8 = vadd.f32 0.2548296, %v1741_v6 }
 0x74c   : > { %v1747_v10 = vmul.f32 %v1744_v8, %v1719_v38  ;;  %v3893_v38 = vpop.eup %3892 }
 0x74d   : > { %v3895_v63 = vpop.eup %3894  ;;  %v1579_v49 = vmul.f32 %v3893_v38, %v1575_v57  ;;  %vm1584_vm10 = vweird.f32 %v3893_v38 }
 0x74e   : > { %v1762_v12 = vmul.f32 %v3887_v11, %v1747_v10  ;;  %v4552_v0 = vadd.f32 1.0, %v3895_v63  ;;  %vm1585_vm13 = vmor %vm1583_vm12, %vm1584_vm10 }
 0x74f   : > { %v1580_v55 = vsub.f32 1.0, %v1579_v49 }
 0x750   : > { %v1765_v13 = vsub.f32 1.0, %v1762_v12  ;;  %v1604_v3 = vand.u32 2147483648, %v4552_v0  ;;  %v1602_v48 = vand.u32 2147483647, %v4552_v0 }
 0x751   : > { %v1581_v10 = vmul.f32 %v3893_v38, %v1580_v55 }
 0x752   : > { %v1771_v54 = vsub.f32 0.0, %v1765_v13 }
 0x754   : > { %v1774_v16 = vsel %vm1768_vm15, %v1765_v13, %v1771_v54 }
 0x755   : > { %v1777_v18 = vadd.f32 1.0, %v1774_v16  ;;  %v4559_v16 = vld [vmem:[%s5232_s15] ss:$0 sm:$0xff] }
 0x757   : > { %v1780_v45 = vmul.f32 %v1777_v18, %v1663_v44  ;;  %v1582_v44 = vadd.f32 %v3893_v38, %v1581_v10  ;;  %v1589_v18 = vand.u32 2147483648, %v1575_v57 }
 0x759   : > { %v1788_v14 = vsel %vm1787_vm5, %v1780_v45, 0.0 }
 0x75a   : > { %1789 = vadd.xlane.f32.xlu2 %v1788_v14  ;;  %v4564_v14 = vld [vmem:[%s5233_s16] ss:$0 sm:$0xff] }
 0x798   : > { %v1783_v15 = vpop.xlane.xlu1 %1782 }
 0x799   : > { %v1798_v19 = vmul.f32 %v4507_v4, %v1783_v15  ;;  %v1586_v15 = vsel %vm1585_vm13, %v3893_v38, %v1582_v44 }
 0x79b   : > { %v4511_v32 = vsub.f32 %v4499_v28, %v1798_v19  ;;  %v1590_v19 = vor.u32 1.1754944e-38, %v1589_v18 }
 0x79d   : > { %v1804_v7 = vmul.f32 %v4511_v32, %v4511_v32 }
 0x79f   : > { %v1807_v36 = vsel %vm1456_vm9, %v1804_v7, 0.0 }
 0x7a0   : > { %1808 = vadd.xlane.f32.xlu1 %v1807_v36  ;;  %v1564_v36 = vadd.f32 %v4531_v46, %v1563_v25 }
 0x7a7   : > { %v1786_v37 = vpop.xlane.xlu0 %1785 }
 0x7a8   : > { %v1799_v60 = vmul.f32 %v4507_v4, %v1786_v37 }
 0x7aa   : > { %v4517_v26 = vsub.f32 %v1779_v52, %v1799_v60  ;;  %v1912_v52 = vld [vmem:[%s5224_s7 + $0x10] sm:$0xff] }
 0x7ab   : > { %3571 = vmatpush.xpose.msk.msra.mxu3 %vm1456_vm9, %v1912_v52 }
 0x7ac   : > { %v1805_v39 = vmul.f32 %v4517_v26, %v4517_v26 }
 0x7ae   : > { %v1810_v41 = vsel %vm1456_vm9, %v1805_v39, 0.0 }
 0x7af   : > { %1811 = vadd.xlane.f32.xlu0 %v1810_v41  ;;  %3572 = vmatpush.xpose.msk.msra.mxu3 %vm1456_vm9, %v1911_v56  ;;  %v1591_v41 = vsel %vm1588_vm14, %v1590_v19, %v1586_v15  ;;  %v1605_v56 = vor.u32 1.1754944e-38, %v1604_v3 }
 0x7b3   : > { %3573 = vmatpush.xpose.msk.msra.mxu3 %vm1456_vm9, %v1910_v58 }
 0x7cd   : > { %v1790_v34 = vpop.xlane.xlu2 %1789 }
 0x7ce   : > { %v1800_v28 = vmul.f32 %v4507_v4, %v1790_v34 }
 0x7d0   : > { %v4523_v9 = vsub.f32 %v1780_v45, %v1800_v28  ;;  %v1568_v28 = vsub.f32 0.0, %v1564_v36 }
 0x7d2   : > { %v1806_v42 = vmul.f32 %v4523_v9, %v4523_v9  ;;  %v1573_v47 = vmul.f32 1.442695, %v1568_v28 }
 0x7d4   : > { %v1813_v43 = vsel %vm1787_vm5, %v1806_v42, 0.0 }
 0x7d5   : > { %1814 = vadd.xlane.f32.xlu1 %v1813_v43 }
 0x813   : > { %v1809_v62 = vpop.xlane.xlu1 %1808 }
 0x814   : > { %v1816_v40 = vmul.f32 %v1809_v62, %v4507_v4 }
 0x816   : > { %v1819_v31 = vadd.f32 1e-05, %v1816_v40  ;;  %v4588_v40 = vld [vmem:[%s4164_s0] sm:$0xff] }
 0x818   : > { %3896 = vrsqrt.f32 %v1819_v31  ;;  %vm1828_vm8 = vweird.f32 %v1819_v31 }
 0x819   : > { %3898 = vrcp.f32 %v4552_v0 }
 0x81e   : > { %v3897_v50 = vpop.eup %3896 }
 0x81f   : > { %v1823_v1 = vmul.f32 %v3897_v50, %v1819_v31  ;;  %vm1829_vm7 = vweird.f32 %v3897_v50  ;;  %v3899_v13 = vpop.eup %3898 }
 0x820   : > { %vm1830_vm11 = vmor %vm1828_vm8, %vm1829_vm7  ;;  %v1594_v24 = vmul.f32 %v3899_v13, %v4552_v0  ;;  %vm1599_vm7 = vweird.f32 %v3899_v13  ;;  %vm1598_vm8 = vweird.f32 %v4552_v0  ;;  %v4594_v0 = vld [vmem:[%s4164_s0 + $0x8] sm:$0xff] }
 0x821   : > { %v1824_v2 = vmul.f32 %v3897_v50, %v1823_v1  ;;  %vm1600_vm10 = vmor %vm1598_vm8, %vm1599_vm7  ;;  %vm1965_vm8 = vcmask 31744  }
 0x822   : > { %v1812_v5 = vpop.xlane.xlu0 %1811  ;;  %v1595_v60 = vsub.f32 1.0, %v1594_v24 }
 0x823   : > { %v1817_v6 = vmul.f32 %v1812_v5, %v4507_v4  ;;  %v1825_v8 = vmul.f32 0.5, %v1824_v2 }
 0x824   : > { %v1596_v42 = vmul.f32 %v3899_v13, %v1595_v60  ;;  %v3825_v60 = vld [vmem:[%s5223_s6] ss:$0 sm:$0xff] }
 0x825   : > { %v1820_v11 = vadd.f32 1e-05, %v1817_v6  ;;  %v1826_v12 = vsub.f32 1.5, %v1825_v8  ;;  %v4599_v6 = vld [vmem:[%s4164_s0 + $0x10] sm:$0x1] }
 0x826   : > { %v1597_v59 = vadd.f32 %v3899_v13, %v1596_v42 }
 0x827   : > { %3900 = vrsqrt.f32 %v1820_v11  ;;  %v1827_v54 = vmul.f32 %v3897_v50, %v1826_v12  ;;  %vm1838_vm5 = vweird.f32 %v1820_v11 }
 0x828   : > { %3902 = vpow2.f32 %v1573_v47  ;;  %v1601_v52 = vsel %vm1600_vm10, %v3899_v13, %v1597_v59 }
 0x829   : > { %v1831_v45 = vsel %vm1830_vm11, %v3897_v50, %v1827_v54  ;;  %vm1603_vm11 = vcmp.eq.f32.partialorder %v1602_v48, 8.507059e+37 }
 0x82a   : > { %v1852_v20 = vmul.f32 %v1831_v45, %v4511_v32  ;;  %v1606_v51 = vsel %vm1603_vm11, %v1605_v56, %v1601_v52 }
 0x82c   : > { %v1859_v27 = vmul.f32 %v4559_v16, %v1852_v20 }
 0x82d   : > { %v3901_v17 = vpop.eup %3900 }
 0x82e   : > { %v1833_v7 = vmul.f32 %v3901_v17, %v1820_v11  ;;  %v1866_v37 = vadd.f32 %v4564_v14, %v1859_v27  ;;  %vm1839_vm15 = vweird.f32 %v3901_v17  ;;  %v3903_v58 = vpop.eup %3902  ;;  %v3824_v27 = vld [vmem:[%s5225_s8] ss:$0 sm:$0xff] }
 0x82f   : > { %vm1840_vm6 = vmor %vm1838_vm5, %vm1839_vm15  ;;  %v1577_v62 = vadd.f32 1.0, %v3903_v58 }
 0x830   : > { %v1834_v39 = vmul.f32 %v3901_v17, %v1833_v7  ;;  %v1869_v32 = vmul.f32 %v1866_v37, %v1591_v41 }
 0x831   : > { %3904 = vrcp.f32 %v1577_v62  ;;  %v1619_v54 = vand.u32 2147483648, %v1577_v62  ;;  %vm1613_vm5 = vweird.f32 %v1577_v62  ;;  %v1617_v18 = vand.u32 2147483647, %v1577_v62 }
 0x832   : > { %v1835_v34 = vmul.f32 0.5, %v1834_v39  ;;  %3574 = vmatmul.msk.f32.vlgmr.msra.gmra.mxu3 %vm1456_vm9, %v1869_v32 }
 0x833   : > { %v1620_v22 = vor.u32 1.1754944e-38, %v1619_v54  ;;  %vm1618_vm7 = vcmp.eq.f32.partialorder %v1617_v18, 8.507059e+37 }
 0x834   : > { %v1836_v43 = vsub.f32 1.5, %v1835_v34 }
 0x836   : > { %v1837_v33 = vmul.f32 %v3901_v17, %v1836_v43 }
 0x837   : > { %v3905_v49 = vpop.eup %3904 }
 0x838   : > { %v1841_v46 = vsel %vm1840_vm6, %v3901_v17, %v1837_v33  ;;  %v1609_v50 = vmul.f32 %v3905_v49, %v1577_v62  ;;  %vm1614_vm15 = vweird.f32 %v3905_v49 }
 0x839   : > { %v1853_v35 = vmul.f32 %v1841_v46, %v4517_v26  ;;  %v1873_v26 = vld [vmem:[%s5269_s30 + $0x8] sm:$0xff]  ;;  %vm1615_vm6 = vmor %vm1613_vm5, %vm1614_vm15 }
 0x83a   : > { %3565 = vmatpush.xpose.msk.msrb.mxu1 %vm676_vm0, %v1873_v26  ;;  %v1610_v2 = vsub.f32 1.0, %v1609_v50 }
 0x83b   : > { %v1860_v53 = vmul.f32 %v4559_v16, %v1853_v35 }
 0x83d   : > { %v1867_v23 = vadd.f32 %v4564_v14, %v1860_v53 }
 0x83e   : > { %3566 = vmatpush.xpose.msk.msrb.mxu1 %vm676_vm0, %v1872_v61 }
 0x83f   : > { %v1870_v57 = vmul.f32 %v1867_v23, %v1606_v51 }
 0x841   : > { %3575 = vmatmul.msk.f32.gmra.mxu3 %vm1456_vm9, %v1870_v57  ;;  %3567 = vmatmul.msk.f32.vlgmr.msrb.gmra.mxu1 %vm676_vm0, %v4588_v40 }
 0x848   : > { %v1815_v31 = vpop.xlane.xlu1 %1814 }
 0x849   : > { %v1818_v38 = vmul.f32 %v1815_v31, %v4507_v4  ;;  %3568 = vmatmul.msk.f32.gmra.mxu1 %vm676_vm0, %v4594_v0  ;;  %v1611_v4 = vmul.f32 %v3905_v49, %v1610_v2 }
 0x84b   : > { %v1821_v63 = vadd.f32 1e-05, %v1818_v38  ;;  %v1612_v12 = vadd.f32 %v3905_v49, %v1611_v4 }
 0x84d   : > { %3906 = vrsqrt.f32 %v1821_v63  ;;  %vm1848_vm13 = vweird.f32 %v1821_v63  ;;  %v1616_v45 = vsel %vm1615_vm6, %v3905_v49, %v1612_v12 }
 0x84e   : > { %v1621_v25 = vsel %vm1618_vm7, %v1620_v22, %v1616_v45 }
 0x851   : > { %3569 = vmatmul.msk.f32.gmra.mxu1 %vm676_vm0, %v4599_v6 }
 0x853   : > { %v3907_v1 = vpop.eup %3906 }
 0x854   : > { %v1843_v55 = vmul.f32 %v3907_v1, %v1821_v63  ;;  %vm1849_vm12 = vweird.f32 %v3907_v1 }
 0x855   : > { %vm1850_vm14 = vmor %vm1848_vm13, %vm1849_vm12 }
 0x856   : > { %v1844_v5 = vmul.f32 %v3907_v1, %v1843_v55 }
 0x858   : > { %v1845_v8 = vmul.f32 0.5, %v1844_v5 }
 0x85a   : > { %v1846_v10 = vsub.f32 1.5, %v1845_v8 }
 0x85c   : > { %v1847_v11 = vmul.f32 %v3907_v1, %v1846_v10 }
 0x85e   : > { %v1851_v13 = vsel %vm1850_vm14, %v3907_v1, %v1847_v11 }
 0x85f   : > { %v1854_v44 = vmul.f32 %v1851_v13, %v4523_v9 }
 0x861   : > { %v1861_v20 = vmul.f32 %v4559_v16, %v1854_v44 }
 0x863   : > { %v1868_v24 = vadd.f32 %v4564_v14, %v1861_v20 }
 0x865   : > { %v1871_v17 = vmul.f32 %v1868_v24, %v1621_v25 }
 0x867   : > { %3576 = vmatmul.msk.f32.gmra.mxu3 %vm1456_vm9, %v1871_v17 }
 0x8b5   : > { %v1956_v15 = vpop.f32.mrf.mxu3 }
 0x8b6   : > { %v1957_v9 = vadd.f32 %v3824_v27, %v1956_v15 }
 0x8b8   : > { %2133 = vrot.lane.b32.xlu2 %v1957_v9, %s3985_s22 }
 0x8be   : > { %v1901_v16 = vpop.f32.mrf.mxu1 }
 0x8bf   : > { %v1902_v41 = vadd.f32 %v3825_v60, %v1901_v16 }
 0x8c4   : > { %v1959_v19 = vpop.f32.mrf.mxu3 }
 0x8c5   : > { %v1960_v7 = vadd.f32 %v3824_v27, %v1959_v19 }
 0x8c6   : > { %v1904_v14 = vpop.f32.mrf.mxu1 }
 0x8c7   : > { %2135 = vrot.lane.b32.xlu1 %v1960_v7, %s3985_s22  ;;  %2469 = vrot.lane.b32.xlu2 %v1960_v7, %s3986_s27  ;;  %v1905_v34 = vadd.f32 %v3825_v60, %v1904_v14  ;;  %v4630_v28 = vpack.i.bf16 %v1957_v9, %v1960_v7 }
 0x8ce   : > { %v1907_v39 = vpop.f32.mrf.mxu1 }
 0x8cf   : > { %v1908_v32 = vadd.f32 %v3825_v60, %v1907_v39 }
 0x8ea   : > { %v1962_v36 = vpop.f32.mrf.mxu3 }
 0x8eb   : > { %v4611_v37 = vadd.f32 %v3824_v27, %v1962_v36 }
 0x8ed   : > { %2137 = vrot.lane.b32.xlu0 %v4611_v37, %s3985_s22  ;;  %3577 = vmatpush.xpose.msk.msra.mxu0 %vm1965_vm8, %v4611_v37 }
 0x8ee   : > { %2304 = vrot.lane.b32.xlu1 %v4611_v37, %s3972_s24  ;;  %2471 = vrot.lane.b32.xlu2 %v4611_v37, %s3986_s27 }
 0x8f1   : > { %3578 = vmatpush.xpose.msk.msra.mxu0 %vm1965_vm8, %v1960_v7 }
 0x8f5   : > { %2127 = vrot.lane.b32.xlu0 %v1902_v41, %s3985_s22  ;;  %3579 = vmatpush.xpose.msk.msra.mxu0 %vm1965_vm8, %v1957_v9 }
 0x8f6   : > { %2131 = vrot.lane.b32.xlu1 %v1908_v32, %s3985_s22  ;;  %2467 = vrot.lane.b32.xlu2 %v1957_v9, %s3986_s27 }
 0x8f8   : > { %3580 = vmatmul.msk.f32.vlgmr.msra.gmra.mxu0 %vm1965_vm8, %v1902_v41 }
 0x8fd   : > { %2129 = vrot.lane.b32.xlu0 %v1905_v34, %s3985_s22  ;;  %s5276_s22 = smov 12  }
 0x8fe   : > { %2294 = vrot.lane.b32.xlu1 %v1902_v41, %s3972_s24  ;;  %2463 = vrot.lane.b32.xlu2 %v1905_v34, %s3986_s27 }
 0x900   : > { %3581 = vmatmul.msk.f32.gmra.mxu0 %vm1965_vm8, %v1905_v34 }
 0x905   : > { %2302 = vrot.lane.b32.xlu0 %v1960_v7, %s3972_s24 }
 0x906   : > { %2296 = vrot.lane.b32.xlu1 %v1905_v34, %s3972_s24  ;;  %3799 = vrot.lane.b32.xlu2 %v4630_v28, %s5270_s23 }
 0x908   : > { %3582 = vmatmul.msk.f32.gmra.mxu0 %vm1965_vm8, %v1908_v32 }
 0x90d   : > { %2300 = vrot.lane.b32.xlu0 %v1957_v9, %s3972_s24 }
 0x90e   : > { %2465 = vrot.lane.b32.xlu1 %v1908_v32, %s3986_s27 }
 0x912   : > { %v2134_v42 = vpop.permute.xlu2 %2133 }
 0x915   : > { %2461 = vrot.lane.b32.xlu0 %v1902_v41, %s3986_s27 }
 0x916   : > { %2253 = vrot.lane.b32.xlu1 %v4611_v37, %s3987_s26 }
 0x91d   : > { %2298 = vrot.lane.b32.xlu0 %v1908_v32, %s3972_s24  ;;  %s5271_s24 = smov 104  }
 0x921   : > { %v2470_v33 = vpop.permute.xlu2 %2469 }
 0x925   : > { %2086 = vrot.lane.b32.xlu0 %v4611_v37, %s5270_s23  ;;  %s5275_s23 = smov 4  }
 0x939   : > { %v2136_v43 = vpop.permute.xlu1 %2135 }
 0x948   : > { %v2472_v46 = vpop.permute.xlu2 %2471 }
 0x950   : > { %v2468_v52 = vpop.permute.xlu2 %2467 }
 0x958   : > { %v2464_v50 = vpop.permute.xlu2 %2463 }
 0x95f   : > { %v2138_v47 = vpop.permute.xlu0 %2137 }
 0x960   : > { %v2305_v59 = vpop.permute.xlu1 %2304  ;;  %3587 = vmatpush.xpose.msk.msra.mxu1 %vm1965_vm8, %v2138_v47  ;;  %v3800_v55 = vpop.permute.xlu2 %3799 }
 0x961   : > { %3597 = vmatpush.xpose.msk.msrb.mxu0 %vm1965_vm8, %v2305_v59  ;;  %v3801_v5 = vunpack.i.l.bf16 %v3800_v55  ;;  %v3802_v8 = vunpack.i.h.bf16 %v3800_v55 }
 0x964   : > { %3588 = vmatpush.xpose.msk.msra.mxu1 %vm1965_vm8, %v2136_v43 }
 0x967   : > { %v2128_v3 = vpop.permute.xlu0 %2127 }
 0x968   : > { %v2132_v35 = vpop.permute.xlu1 %2131  ;;  %3589 = vmatpush.xpose.msk.msra.mxu1 %vm1965_vm8, %v2134_v42 }
 0x96b   : > { %3590 = vmatmul.msk.f32.vlgmr.msra.gmra.mxu1 %vm1965_vm8, %v2128_v3 }
 0x96c   : > { %3607 = vmatpush.xpose.msk.msrb.mxu1 %vm1965_vm8, %v2472_v46 }
 0x96f   : > { %v2130_v48 = vpop.permute.xlu0 %2129 }
 0x970   : > { %3608 = vmatpush.xpose.msk.msrb.mxu1 %vm1965_vm8, %v2470_v33  ;;  %v2295_v53 = vpop.permute.xlu1 %2294 }
 0x973   : > { %3591 = vmatmul.msk.f32.gmra.mxu1 %vm1965_vm8, %v2130_v48 }
 0x974   : > { %3609 = vmatpush.xpose.msk.msrb.mxu1 %vm1965_vm8, %v2468_v52 }
 0x975   : > { %v4654_v56 = vpop.f32.mrf.mxu0 }
 0x976   : > { %v2010_v23 = vsel %vm796_vm2, %v4654_v56, -inf }
 0x977   : > { %v2303_v51 = vpop.permute.xlu0 %2302  ;;  %2011 = vmax.xlane.f32.xlu2 %v2010_v23 }
 0x978   : > { %v2297_v57 = vpop.permute.xlu1 %2296  ;;  %3598 = vmatpush.xpose.msk.msrb.mxu0 %vm1965_vm8, %v2303_v51 }
 0x97b   : > { %3592 = vmatmul.msk.f32.gmra.mxu1 %vm1965_vm8, %v2132_v35 }
 0x97d   : > { %v2004_v26 = vpop.f32.mrf.mxu0 }
 0x97e   : > { %v2013_v58 = vsel %vm796_vm2, %v2004_v26, -inf }
 0x97f   : > { %v2301_v61 = vpop.permute.xlu0 %2300  ;;  %2014 = vmax.xlane.f32.xlu1 %v2013_v58 }
 0x980   : > { %v2466_v62 = vpop.permute.xlu1 %2465  ;;  %3599 = vmatpush.xpose.msk.msrb.mxu0 %vm1965_vm8, %v2301_v61 }
 0x983   : > { %3600 = vmatmul.msk.f32.vlgmr.msrb.gmra.mxu0 %vm1965_vm8, %v2295_v53 }
 0x985   : > { %v2007_v31 = vpop.f32.mrf.mxu0 }
 0x986   : > { %v2016_v38 = vsel %vm803_vm3, %v2007_v31, -inf }
 0x987   : > { %v2462_v63 = vpop.permute.xlu0 %2461  ;;  %2017 = vmax.xlane.f32.xlu0 %v2016_v38 }
 0x988   : > { %v2254_v49 = vpop.permute.xlu1 %2253  ;;  %3610 = vmatmul.msk.f32.vlgmr.msrb.gmra.mxu1 %vm1965_vm8, %v2462_v63 }
 0x989   : > { %3593 = vmatpush.msk.msrb.mxu3 %vm887_vm4, %v2254_v49 }
 0x98b   : > { %3601 = vmatmul.msk.f32.gmra.mxu0 %vm1965_vm8, %v2297_v57 }
 0x98f   : > { %v2299_v1 = vpop.permute.xlu0 %2298 }
 0x990   : > { %3611 = vmatmul.msk.f32.gmra.mxu1 %vm1965_vm8, %v2464_v50 }
 0x993   : > { %3602 = vmatmul.msk.f32.gmra.mxu0 %vm1965_vm8, %v2299_v1 }
 0x997   : > { %v2087_v2 = vpop.permute.xlu0 %2086 }
 0x998   : > { %3583 = vmatpush.msk.msra.mxu2 %vm887_vm4, %v2087_v2  ;;  %3612 = vmatmul.msk.f32.gmra.mxu1 %vm1965_vm8, %v2466_v62 }
 0x99a   : > { %2115 = vmatpush.msra.mxu2 %v3801_v5 }
 0x99c   : > { %2116 = vmatpush.msra.mxu2 %v3802_v8 }
 0x9e8   : > { %v2168_v4 = vpop.f32.mrf.mxu1 }
 0x9e9   : > { %v2177_v10 = vsel %vm796_vm2, %v2168_v4, -inf }
 0x9ea   : > { %2178 = vmax.xlane.f32.xlu0 %v2177_v10  ;;  %v2012_v42 = vpop.xlane.xlu2 %2011 }
 0x9eb   : > { %v2019_v43 = vsub.f32 %v4654_v56, %v2012_v42 }
 0x9ed   : > { %v2022_v33 = vmul.f32 1.442695, %v2019_v43 }
 0x9f0   : > { %v4672_v11 = vpop.f32.mrf.mxu1 }
 0x9f1   : > { %v2180_v45 = vsel %vm796_vm2, %v4672_v11, -inf }
 0x9f2   : > { %v2015_v54 = vpop.xlane.xlu1 %2014 }
 0x9f3   : > { %v2020_v44 = vsub.f32 %v2004_v26, %v2015_v54 }
 0x9f5   : > { %v2024_v24 = vmul.f32 1.442695, %v2020_v44 }
 0x9f7   : > { %3908 = vpow2.f32 %v2024_v24 }
 0x9f8   : > { %v4678_v22 = vpop.f32.mrf.mxu1 }
 0x9f9   : > { %v2183_v15 = vsel %vm803_vm3, %v4678_v22, -inf }
 0x9fa   : > { %v2018_v25 = vpop.xlane.xlu0 %2017 }
 0x9fb   : > { %v2021_v17 = vsub.f32 %v2007_v31, %v2018_v25 }
 0x9fd   : > { %v2026_v7 = vmul.f32 1.442695, %v2021_v17  ;;  %v4688_v16 = vpop.eup %3908 }
 0x9fe   : > { %v2031_v14 = vsel %vm796_vm2, %v4688_v16, 0.0 }
 0x9ff   : > { %3910 = vpow2.f32 %v2026_v7 }
 0xa00   : > { %v2335_v12 = vpop.f32.mrf.mxu0  ;;  %3912 = vpow2.f32 %v2022_v33 }
 0xa01   : > { %v2344_v13 = vsel %vm796_vm2, %v2335_v12, -inf }
 0xa02   : > { %2345 = vmax.xlane.f32.xlu2 %v2344_v13 }
 0xa05   : > { %v4686_v19 = vpop.f32.mrf.mxu1  ;;  %v4696_v39 = vpop.eup %3910 }
 0xa06   : > { %v2511_v36 = vsel %vm796_vm2, %v4686_v19, -inf  ;;  %v2034_v41 = vsel %vm803_vm3, %v4696_v39, 0.0  ;;  %v4709_v47 = vpop.eup %3912 }
 0xa07   : > { %v2028_v59 = vsel %vm796_vm2, %v4709_v47, 0.0 }
 0xa08   : > { %v2338_v18 = vpop.f32.mrf.mxu0 }
 0xa09   : > { %v2347_v20 = vsel %vm796_vm2, %v2338_v18, -inf }
 0xa0a   : > { %2181 = vmax.xlane.f32.xlu2 %v2180_v45  ;;  %2348 = vmax.xlane.f32.xlu1 %v2347_v20 }
 0xa0d   : > { %v4694_v60 = vpop.f32.mrf.mxu1 }
 0xa0e   : > { %v2514_v46 = vsel %vm796_vm2, %v4694_v60, -inf }
 0xa10   : > { %v4680_v27 = vpop.f32.mrf.mxu0 }
 0xa11   : > { %v2350_v9 = vsel %vm803_vm3, %v4680_v27, -inf }
 0xa12   : > { %2184 = vmax.xlane.f32.xlu1 %v2183_v15  ;;  %2351 = vmax.xlane.f32.xlu0 %v2350_v9 }
 0xa15   : > { %v4702_v32 = vpop.f32.mrf.mxu1 }
 0xa16   : > { %v2517_v34 = vsel %vm803_vm3, %v4702_v32, -inf }
 0xa1a   : > { %2032 = vadd.xlane.f32.xlu1 %v2031_v14  ;;  %2512 = vmax.xlane.f32.xlu0 %v2511_v36 }
 0xa22   : > { %3804 = vrot.lane.b32.xlu2 %v4630_v28, %s3987_s26  ;;  %2035 = vadd.xlane.f32.xlu1 %v2034_v41 }
 0xa2a   : > { %2518 = vmax.xlane.f32.xlu1 %v2517_v34 }
 0xa43   : > { %2420 = vrot.lane.b32.xlu1 %v4611_v37, %s5271_s24 }
 0xa4b   : > { %2029 = vadd.xlane.f32.xlu2 %v2028_v59 }
 0xa53   : > { %2515 = vmax.xlane.f32.xlu2 %v2514_v46 }
 0xa5d   : > { %v2179_v3 = vpop.xlane.xlu0 %2178 }
 0xa5e   : > { %v2186_v35 = vsub.f32 %v2168_v4, %v2179_v3 }
 0xa60   : > { %v2189_v48 = vmul.f32 1.442695, %v2186_v35 }
 0xa62   : > { %3914 = vpow2.f32 %v2189_v48 }
 0xa68   : > { %v4715_v52 = vpop.eup %3914 }
 0xa69   : > { %v2195_v53 = vsel %vm796_vm2, %v4715_v52, 0.0 }
 0xa6a   : > { %2196 = vadd.xlane.f32.xlu0 %v2195_v53 }
 0xa75   : > { %v2346_v56 = vpop.xlane.xlu2 %2345 }
 0xa76   : > { %v2353_v23 = vsub.f32 %v2335_v12, %v2346_v56 }
 0xa78   : > { %v2356_v51 = vmul.f32 1.442695, %v2353_v23 }
 0xa7a   : > { %3916 = vpow2.f32 %v2356_v51 }
 0xa7d   : > { %v2182_v57 = vpop.xlane.xlu2 %2181  ;;  %v2349_v26 = vpop.xlane.xlu1 %2348 }
 0xa7e   : > { %v2187_v58 = vsub.f32 %v4672_v11, %v2182_v57  ;;  %v2354_v61 = vsub.f32 %v2338_v18, %v2349_v26 }
 0xa80   : > { %v4720_v62 = vpop.eup %3916  ;;  %v2191_v31 = vmul.f32 1.442695, %v2187_v58  ;;  %v2358_v38 = vmul.f32 1.442695, %v2354_v61 }
 0xa81   : > { %v2362_v63 = vsel %vm796_vm2, %v4720_v62, 0.0 }
 0xa82   : > { %3918 = vpow2.f32 %v2191_v31  ;;  %2363 = vadd.xlane.f32.xlu1 %v2362_v63 }
 0xa83   : > { %3920 = vpow2.f32 %v2358_v38 }
 0xa85   : > { %v3805_v49 = vpop.permute.xlu2 %3804  ;;  %v2185_v50 = vpop.xlane.xlu1 %2184 }
 0xa86   : > { %v3806_v1 = vunpack.i.l.bf16 %v3805_v49  ;;  %v2188_v55 = vsub.f32 %v4678_v22, %v2185_v50  ;;  %v2352_v2 = vpop.xlane.xlu0 %2351  ;;  %v3807_v4 = vunpack.i.h.bf16 %v3805_v49 }
 0xa87   : > { %v2355_v5 = vsub.f32 %v4680_v27, %v2352_v2 }
 0xa88   : > { %v4726_v8 = vpop.eup %3918  ;;  %v2193_v10 = vmul.f32 1.442695, %v2188_v55  ;;  %2282 = vmatpush.msrb.mxu3 %v3806_v1 }
 0xa89   : > { %v4728_v11 = vpop.eup %3920  ;;  %v2360_v12 = vmul.f32 1.442695, %v2355_v5  ;;  %v2198_v13 = vsel %vm796_vm2, %v4726_v8, 0.0 }
 0xa8a   : > { %3922 = vpow2.f32 %v2193_v10  ;;  %2199 = vadd.xlane.f32.xlu2 %v2198_v13  ;;  %2283 = vmatpush.msrb.mxu3 %v3807_v4  ;;  %v2365_v54 = vsel %vm796_vm2, %v4728_v11, 0.0 }
 0xa8b   : > { %3924 = vpow2.f32 %v2360_v12  ;;  %2366 = vadd.xlane.f32.xlu0 %v2365_v54 }
 0xa8d   : > { %v2033_v27 = vpop.xlane.xlu1 %2032 }
 0xa8e   : > { %v2513_v44 = vpop.xlane.xlu0 %2512  ;;  %v2063_v31 = vand.u32 2147483648, %v2033_v27  ;;  %vm2057_vm15 = vweird.f32 %v2033_v27  ;;  %v2061_v63 = vand.u32 2147483647, %v2033_v27 }
 0xa8f   : > { %v2520_v18 = vsub.f32 %v4686_v19, %v2513_v44 }
 0xa90   : > { %v4735_v45 = vpop.eup %3922  ;;  %v2064_v2 = vor.u32 1.1754944e-38, %v2063_v31  ;;  %vm2062_vm6 = vcmp.eq.f32.partialorder %v2061_v63, 8.507059e+37 }
 0xa91   : > { %v4737_v20 = vpop.eup %3924  ;;  %v2523_v22 = vmul.f32 1.442695, %v2520_v18  ;;  %v2201_v24 = vsel %vm803_vm3, %v4735_v45, 0.0 }
 0xa92   : > { %v2368_v25 = vsel %vm803_vm3, %v4737_v20, 0.0 }
 0xa93   : > { %3926 = vpow2.f32 %v2523_v22  ;;  %2202 = vadd.xlane.f32.xlu0 %v2201_v24  ;;  %2369 = vadd.xlane.f32.xlu2 %v2368_v25 }
 0xa94   : > { %3928 = vrcp.f32 %v2033_v27 }
 0xa95   : > { %v4748_v9 = vpop.xlane.xlu1 %2035 }
 0xa96   : > { %v2076_v13 = vand.u32 2147483647, %v4748_v9 }
 0xa99   : > { %v4743_v17 = vpop.eup %3926 }
 0xa9a   : > { %v2529_v15 = vsel %vm796_vm2, %v4743_v17, 0.0  ;;  %v3929_v14 = vpop.eup %3928 }
 0xa9b   : > { %2530 = vadd.xlane.f32.xlu2 %v2529_v15  ;;  %3814 = vrot.lane.b32.xlu1 %v4630_v28, %s3988_s28  ;;  %v2053_v41 = vmul.f32 %v3929_v14, %v2033_v27  ;;  %vm2058_vm13 = vweird.f32 %v3929_v14 }
 0xa9c   : > { %vm2059_vm5 = vmor %vm2057_vm15, %vm2058_vm13 }
 0xa9d   : > { %v2519_v19 = vpop.xlane.xlu1 %2518  ;;  %v2054_v42 = vsub.f32 1.0, %v2053_v41 }
 0xa9f   : > { %v2055_v3 = vmul.f32 %v3929_v14, %v2054_v42 }
 0xaa1   : > { %v2056_v61 = vadd.f32 %v3929_v14, %v2055_v3 }
 0xaa3   : > { %v2060_v55 = vsel %vm2059_vm5, %v3929_v14, %v2056_v61 }
 0xaa4   : > { %v2065_v5 = vsel %vm2062_vm6, %v2064_v2, %v2060_v55 }
 0xaa5   : > { %v2066_v12 = vmul.f32 %v4688_v16, %v2065_v5 }
 0xaa7   : > { %3809 = vrot.lane.b32.xlu0 %v4630_v28, %s5271_s24 }
 0xab3   : > { %2587 = vrot.lane.b32.xlu2 %v4611_v37, %s3988_s28  ;;  %v2522_v37 = vsub.f32 %v4702_v32, %v2519_v19  ;;  %s5249_s28 = smov 4  }
 0xab5   : > { %v2421_v7 = vpop.permute.xlu1 %2420  ;;  %v2527_v57 = vmul.f32 1.442695, %v2522_v37 }
 0xab6   : > { %3603 = vmatpush.msk.msrb.mxu2 %vm887_vm4, %v2421_v7 }
 0xabe   : > { %v2030_v36 = vpop.xlane.xlu2 %2029 }
 0xabf   : > { %3930 = vrcp.f32 %v2030_v36  ;;  %v2048_v35 = vand.u32 2147483648, %v2030_v36  ;;  %v2046_v23 = vand.u32 2147483647, %v2030_v36  ;;  %vm2042_vm11 = vweird.f32 %v2030_v36 }
 0xac0   : > { %3932 = vrcp.f32 %v4748_v9 }
 0xac1   : > { %v2049_v26 = vor.u32 1.1754944e-38, %v2048_v35  ;;  %vm2047_vm14 = vcmp.eq.f32.partialorder %v2046_v23, 8.507059e+37 }
 0xac5   : > { %v3931_v34 = vpop.eup %3930 }
 0xac6   : > { %v2038_v43 = vmul.f32 %v3931_v34, %v2030_v36  ;;  %v2516_v33 = vpop.xlane.xlu2 %2515  ;;  %v3933_v59 = vpop.eup %3932  ;;  %vm2043_vm10 = vweird.f32 %v3931_v34 }
 0xac7   : > { %v2521_v28 = vsub.f32 %v4694_v60, %v2516_v33  ;;  %v2068_v53 = vmul.f32 %v3933_v59, %v4748_v9  ;;  %vm2044_vm12 = vmor %vm2042_vm11, %vm2043_vm10  ;;  %vm2073_vm7 = vweird.f32 %v3933_v59  ;;  %vm2072_vm10 = vweird.f32 %v4748_v9 }
 0xac8   : > { %v2039_v46 = vsub.f32 1.0, %v2038_v43  ;;  %vm2074_vm11 = vmor %vm2072_vm10, %vm2073_vm7 }
 0xac9   : > { %v2525_v48 = vmul.f32 1.442695, %v2521_v28  ;;  %v2069_v58 = vsub.f32 1.0, %v2068_v53 }
 0xaca   : > { %v2040_v56 = vmul.f32 %v3931_v34, %v2039_v46 }
 0xacb   : > { %3934 = vpow2.f32 %v2525_v48  ;;  %v2070_v50 = vmul.f32 %v3933_v59, %v2069_v58 }
 0xacc   : > { %v2041_v51 = vadd.f32 %v3931_v34, %v2040_v56  ;;  %3936 = vpow2.f32 %v2527_v57 }
 0xacd   : > { %v2071_v4 = vadd.f32 %v3933_v59, %v2070_v50 }
 0xace   : > { %v2045_v60 = vsel %vm2044_vm12, %v3931_v34, %v2041_v51  ;;  %vm2077_vm12 = vcmp.eq.f32.partialorder %v2076_v13, 8.507059e+37 }
 0xacf   : > { %v2050_v32 = vsel %vm2047_vm14, %v2049_v26, %v2045_v60  ;;  %v2075_v44 = vsel %vm2074_vm11, %v3933_v59, %v2071_v4 }
 0xad0   : > { %v2051_v38 = vmul.f32 %v4709_v47, %v2050_v32  ;;  %v2078_v47 = vand.u32 2147483648, %v4748_v9 }
 0xad1   : > { %v4759_v49 = vpop.eup %3934 }
 0xad2   : > { %3584 = vmatmul.msk.f32.vlgmr.msra.gmra.mxu2 %vm796_vm2, %v2051_v38  ;;  %v2532_v1 = vsel %vm796_vm2, %v4759_v49, 0.0  ;;  %v4764_v10 = vpop.eup %3936  ;;  %v2079_v18 = vor.u32 1.1754944e-38, %v2078_v47 }
 0xad3   : > { %2533 = vadd.xlane.f32.xlu0 %v2532_v1  ;;  %v2535_v54 = vsel %vm803_vm3, %v4764_v10, 0.0 }
 0xad4   : > { %v2080_v24 = vsel %vm2077_vm12, %v2079_v18, %v2075_v44  ;;  %v2734_v18 = vld [vmem:[%s5234_s17 + $0x10] sm:$0xff] }
 0xad5   : > { %v2081_v25 = vmul.f32 %v4696_v39, %v2080_v24 }
 0xada   : > { %3585 = vmatmul.msk.f32.gmra.mxu2 %vm796_vm2, %v2066_v12 }
 0xadb   : > { %2536 = vadd.xlane.f32.xlu0 %v2535_v54 }
 0xadd   : > { %v2197_v22 = vpop.xlane.xlu0 %2196 }
 0xade   : > { %3938 = vrcp.f32 %v2197_v22  ;;  %v2215_v9 = vand.u32 2147483648, %v2197_v22  ;;  %v2213_v7 = vand.u32 2147483647, %v2197_v22  ;;  %vm2209_vm3 = vweird.f32 %v2197_v22 }
 0xae0   : > { %v2216_v36 = vor.u32 1.1754944e-38, %v2215_v9  ;;  %vm2214_vm15 = vcmp.eq.f32.partialorder %v2213_v7, 8.507059e+37 }
 0xae2   : > { %3586 = vmatmul.msk.f32.gmra.mxu2 %vm796_vm2, %v2081_v25 }
 0xae4   : > { %v3939_v16 = vpop.eup %3938 }
 0xae5   : > { %v2205_v27 = vmul.f32 %v3939_v16, %v2197_v22  ;;  %vm2210_vm13 = vweird.f32 %v3939_v16 }
 0xae6   : > { %vm2211_vm14 = vmor %vm2209_vm3, %vm2210_vm13 }
 0xae7   : > { %v2206_v15 = vsub.f32 1.0, %v2205_v27 }
 0xae9   : > { %v2207_v19 = vmul.f32 %v3939_v16, %v2206_v15 }
 0xaeb   : > { %v2208_v14 = vadd.f32 %v3939_v16, %v2207_v19 }
 0xaed   : > { %v2212_v41 = vsel %vm2211_vm14, %v3939_v16, %v2208_v14 }
 0xaee   : > { %v2217_v34 = vsel %vm2214_vm15, %v2216_v36, %v2212_v41 }
 0xaef   : > { %v2218_v42 = vmul.f32 %v4715_v52, %v2217_v34 }
 0xaf1   : > { %3594 = vmatmul.msk.f32.vlgmr.msrb.gmra.mxu3 %vm796_vm2, %v2218_v42 }
 0xaf5   : > { %v4777_v39 = vpop.xlane.xlu1 %2363 }
 0xaf6   : > { %3940 = vrcp.f32 %v4777_v39  ;;  %v2382_v1 = vand.u32 2147483648, %v4777_v39  ;;  %vm2376_vm13 = vweird.f32 %v4777_v39 }
 0xaf8   : > { %v2383_v22 = vor.u32 1.1754944e-38, %v2382_v1 }
 0xafc   : > { %v4782_v59 = vpop.eup %3940 }
 0xafd   : > { %v2200_v43 = vpop.xlane.xlu2 %2199  ;;  %v2372_v3 = vmul.f32 %v4782_v59, %v4777_v39  ;;  %vm2377_vm11 = vweird.f32 %v4782_v59 }
 0xafe   : > { %3942 = vrcp.f32 %v2200_v43  ;;  %v4780_v33 = vpop.xlane.xlu0 %2366  ;;  %v2230_v48 = vand.u32 2147483648, %v2200_v43  ;;  %v2228_v56 = vand.u32 2147483647, %v2200_v43  ;;  %vm2224_vm6 = vweird.f32 %v2200_v43  ;;  %vm4807_vm3 = vmor %vm2376_vm13, %vm2377_vm11 }
 0xaff   : > { %3944 = vrcp.f32 %v4780_v33  ;;  %v2373_v23 = vsub.f32 1.0, %v2372_v3 }
 0xb00   : > { %v2231_v26 = vor.u32 1.1754944e-38, %v2230_v48  ;;  %vm2229_vm10 = vcmp.eq.f32.partialorder %v2228_v56, 8.507059e+37  ;;  %v2397_v48 = vand.u32 2147483648, %v4780_v33 }
 0xb01   : > { %v2374_v61 = vmul.f32 %v4782_v59, %v2373_v23 }
 0xb03   : > { %v2375_v2 = vadd.f32 %v4782_v59, %v2374_v61 }
 0xb04   : > { %v3943_v28 = vpop.eup %3942 }
 0xb05   : > { %v2220_v46 = vmul.f32 %v3943_v28, %v2200_v43  ;;  %vm2225_vm5 = vweird.f32 %v3943_v28  ;;  %v4789_v51 = vpop.eup %3944  ;;  %v2379_v25 = vsel %vm4807_vm3, %v4782_v59, %v2375_v2 }
 0xb06   : > { %v4787_v52 = vpop.xlane.xlu2 %2369  ;;  %v2203_v37 = vpop.xlane.xlu0 %2202  ;;  %vm2226_vm7 = vmor %vm2224_vm6, %vm2225_vm5  ;;  %v2387_v31 = vmul.f32 %v4789_v51, %v4780_v33 }
 0xb07   : > { %v2221_v35 = vsub.f32 1.0, %v2220_v46  ;;  %3946 = vrcp.f32 %v2203_v37  ;;  %v2245_v4 = vand.u32 2147483648, %v2203_v37  ;;  %v2243_v12 = vand.u32 2147483647, %v2203_v37 }
 0xb08   : > { %3948 = vrcp.f32 %v4787_v52  ;;  %v2388_v5 = vsub.f32 1.0, %v2387_v31  ;;  %vm2239_vm14 = vweird.f32 %v2203_v37  ;;  %v2398_v31 = vor.u32 1.1754944e-38, %v2397_v48  ;;  %v4907_v48 = vld [vmem:[%s4164_s0 + $0x8] sm:$0xff] }
 0xb09   : > { %v2222_v53 = vmul.f32 %v3943_v28, %v2221_v35  ;;  %v2246_v27 = vor.u32 1.1754944e-38, %v2245_v4  ;;  %vm2244_vm5 = vcmp.eq.f32.partialorder %v2243_v12, 8.507059e+37 }
 0xb0a   : > { %v2389_v16 = vmul.f32 %v4789_v51, %v2388_v5 }
 0xb0b   : > { %v2223_v57 = vadd.f32 %v3943_v28, %v2222_v53 }
 0xb0c   : > { %v2390_v35 = vadd.f32 %v4789_v51, %v2389_v16  ;;  %v2733_v16 = vld [vmem:[%s5234_s17 + $0x8] sm:$0xff] }
 0xb0d   : > { %v2227_v58 = vsel %vm2226_vm7, %v3943_v28, %v2223_v57  ;;  %v3947_v60 = vpop.eup %3946  ;;  %v3815_v54 = vpop.permute.xlu1 %3814  ;;  %v2395_v57 = vand.u32 2147483647, %v4780_v33 }
 0xb0e   : > { %v4795_v32 = vpop.xlane.xlu2 %2530  ;;  %v2232_v38 = vsel %vm2229_vm10, %v2231_v26, %v2227_v58  ;;  %v2235_v63 = vmul.f32 %v3947_v60, %v2203_v37  ;;  %vm2240_vm12 = vweird.f32 %v3947_v60  ;;  %v4803_v13 = vpop.eup %3948  ;;  %v3816_v7 = vunpack.i.l.bf16 %v3815_v54 }
 0xb0f   : > { %3950 = vrcp.f32 %v4795_v32  ;;  %v2233_v50 = vmul.f32 %v4726_v8, %v2232_v38  ;;  %v2380_v8 = vand.u32 2147483647, %v4777_v39  ;;  %vm2241_vm15 = vmor %vm2239_vm14, %vm2240_vm12  ;;  %v2402_v19 = vmul.f32 %v4803_v13, %v4787_v52 }
 0xb10   : > { %v2236_v55 = vsub.f32 1.0, %v2235_v63  ;;  %v3817_v42 = vunpack.i.h.bf16 %v3815_v54  ;;  %v2549_v39 = vand.u32 2147483648, %v4795_v32  ;;  %v2547_v46 = vand.u32 2147483647, %v4795_v32 }
 0xb11   : > { %3595 = vmatmul.msk.f32.gmra.mxu3 %vm796_vm2, %v2233_v50  ;;  %vm2381_vm6 = vcmp.eq.f32.partialorder %v2380_v8, 8.507059e+37  ;;  %v2403_v37 = vsub.f32 1.0, %v2402_v19  ;;  %vm2392_vm10 = vweird.f32 %v4789_v51  ;;  %vm2543_vm11 = vweird.f32 %v4795_v32  ;;  %v2732_v19 = vld [vmem:[%s5234_s17] sm:$0xff] }
 0xb12   : > { %v2237_v47 = vmul.f32 %v3947_v60, %v2236_v55  ;;  %v2384_v34 = vsel %vm2381_vm6, %v2383_v22, %v2379_v25  ;;  %vm2391_vm12 = vweird.f32 %v4780_v33  ;;  %vm2548_vm3 = vcmp.eq.f32.partialorder %v2547_v46, 8.507059e+37  ;;  %v3646_v46 = vld [vmem:[%s5234_s17 + $0x48] sm:$0xff] }
 0xb13   : > { %v2385_v23 = vmul.f32 %v4720_v62, %v2384_v34  ;;  %vm2393_vm14 = vmor %vm2391_vm12, %vm2392_vm10  ;;  %v2404_v58 = vmul.f32 %v4803_v13, %v2403_v37  ;;  %v2412_v38 = vand.u32 2147483648, %v4787_v52  ;;  %vm2406_vm6 = vweird.f32 %v4787_v52  ;;  %v3645_v37 = vld [vmem:[%s5234_s17 + $0x40] sm:$0xff] }
 0xb14   : > { %v2238_v24 = vadd.f32 %v3947_v60, %v2237_v47  ;;  %v2394_v61 = vsel %vm2393_vm14, %v4789_v51, %v2390_v35  ;;  %v2410_v50 = vand.u32 2147483647, %v4787_v52 }
 0xb15   : > { %v3951_v44 = vpop.eup %3950  ;;  %v2405_v33 = vadd.f32 %v4803_v13, %v2404_v58  ;;  %v2413_v51 = vor.u32 1.1754944e-38, %v2412_v38 }
 0xb16   : > { %v2539_v15 = vmul.f32 %v3951_v44, %v4795_v32  ;;  %v2588_v9 = vpop.permute.xlu2 %2587  ;;  %v2242_v14 = vsel %vm2241_vm15, %v3947_v60, %v2238_v24  ;;  %vm2544_vm7 = vweird.f32 %v3951_v44  ;;  %vm2396_vm15 = vcmp.eq.f32.partialorder %v2395_v57, 8.507059e+37  ;;  %v3675_v57 = vld [vmem:[%s5234_s17 + $0x90] sm:$0xff] }
 0xb17   : > { %3613 = vmatpush.msk.msra.mxu3 %vm887_vm4, %v2588_v9  ;;  %v2247_v41 = vsel %vm2244_vm5, %v2246_v27, %v2242_v14  ;;  %vm2545_vm13 = vmor %vm2543_vm11, %vm2544_vm7  ;;  %v2399_v62 = vsel %vm2396_vm15, %v2398_v31, %v2394_v61  ;;  %vm2407_vm5 = vweird.f32 %v4803_v13  ;;  %vm2411_vm10 = vcmp.eq.f32.partialorder %v2410_v50, 8.507059e+37  ;;  %v3660_v61 = vld [vmem:[%s5234_s17 + $0x68] sm:$0xff]  ;;  %v3673_v31 = vld [vmem:[%s5234_s17 + $0x80] sm:$0xff] }
 0xb18   : > { %v2540_v36 = vsub.f32 1.0, %v2539_v15  ;;  %v2248_v59 = vmul.f32 %v4735_v45, %v2247_v41  ;;  %v2550_v45 = vor.u32 1.1754944e-38, %v2549_v39  ;;  %v2400_v63 = vmul.f32 %v4728_v11, %v2399_v62  ;;  %vm2408_vm7 = vmor %vm2406_vm6, %vm2407_vm5  ;;  %v3690_v50 = vld [vmem:[%s5234_s17 + $0xb8] sm:$0xff] }
 0xb19   : > { %2616 = vmatpush.msra.mxu3 %v3816_v7  ;;  %v3810_v43 = vpop.permute.xlu0 %3809 }
 0xb1a   : > { %v2541_v28 = vmul.f32 %v3951_v44, %v2540_v36  ;;  %v3811_v3 = vunpack.i.l.bf16 %v3810_v43  ;;  %3596 = vmatmul.msk.f32.gmra.mxu3 %vm796_vm2, %v2248_v59  ;;  %v3812_v56 = vunpack.i.h.bf16 %v3810_v43  ;;  %v3632_v43 = vld [vmem:[%s5234_s17 + $0x28] sm:$0xff]  ;;  %v3647_v59 = vld [vmem:[%s5234_s17 + $0x50] sm:$0xff] }
 0xb1b   : > { %2617 = vmatpush.msra.mxu3 %v3817_v42 }
 0xb1c   : > { %v2542_v53 = vadd.f32 %v3951_v44, %v2541_v28  ;;  %2449 = vmatpush.msrb.mxu2 %v3811_v3  ;;  %v3631_v28 = vld [vmem:[%s5234_s17 + $0x20] sm:$0xff] }
 0xb1d   : > { %v4895_v3 = vld [vmem:[%s4164_s0] sm:$0xff] }
 0xb1e   : > { %v2546_v26 = vsel %vm2545_vm13, %v3951_v44, %v2542_v53  ;;  %2450 = vmatpush.msrb.mxu2 %v3812_v56  ;;  %v3662_v56 = vld [vmem:[%s5234_s17 + $0x78] sm:$0xff] }
 0xb1f   : > { %v2551_v60 = vsel %vm2548_vm3, %v2550_v45, %v2546_v26  ;;  %3604 = vmatmul.msk.f32.vlgmr.msrb.gmra.mxu2 %vm796_vm2, %v2385_v23  ;;  %v3676_v45 = vld [vmem:[%s5234_s17 + $0x98] sm:$0xff]  ;;  %v3661_v23 = vld [vmem:[%s5234_s17 + $0x70] sm:$0xff]  ;;  %v3674_v26 = vld [vmem:[%s5234_s17 + $0x88] sm:$0xff] }
 0xb20   : > { %v2552_v32 = vmul.f32 %v4743_v17, %v2551_v60  ;;  %v2409_v17 = vsel %vm2408_vm7, %v4803_v13, %v2405_v33  ;;  %v4931_v60 = vld [vmem:[%s4164_s0 + $0x10] sm:$0x1]  ;;  %s5274_s0 = smov 8   ;;  %vm2670_vm7 = vcmask 97280  }
 0xb21   : > { %v2414_v1 = vsel %vm2411_vm10, %v2413_v51, %v2409_v17  ;;  %v3689_v17 = vld [vmem:[%s5234_s17 + $0xb0] sm:$0xff]  ;;  %v3704_v51 = vld [vmem:[%s5234_s17 + $0xd8] sm:$0xff] }
 0xb22   : > { %3614 = vmatmul.msk.f32.vlgmr.msra.gmra.mxu3 %vm796_vm2, %v2552_v32  ;;  %v2415_v55 = vmul.f32 %v4737_v20, %v2414_v1  ;;  %v2735_v20 = vld [vmem:[%s5234_s17 + $0x18] sm:$0xff]  ;;  %v3659_v32 = vld [vmem:[%s5234_s17 + $0x60] sm:$0xff]  ;;  %v3703_v1 = vld [vmem:[%s5234_s17 + $0xd0] sm:$0xff] }
 0xb23   : > { %2748 = vmatpush.msra.mxu2 %v2735_v20 }
 0xb25   : > { %2749 = vmatpush.msra.mxu2 %v2734_v18 }
 0xb27   : > { %3605 = vmatmul.msk.f32.gmra.mxu2 %vm796_vm2, %v2400_v63 }
 0xb28   : > { %2750 = vmatpush.msra.mxu2 %v2733_v16  ;;  %v2675_v16 = vld [vmem:[%s5226_s9 + $0x8] sm:$0xff] }
 0xb2a   : > { %2751 = vmatpush.msra.mxu2 %v2732_v19 }
 0xb2f   : > { %3606 = vmatmul.msk.f32.gmra.mxu2 %vm796_vm2, %v2415_v55  ;;  %v3688_v55 = vld [vmem:[%s5234_s17 + $0xa8] sm:$0xff] }
 0xb37   : > { %3624 = vmatmul.msk.f32.vlgmr.msra.gmra.mxu2 %vm676_vm0, %v4588_v40  ;;  %v3634_v40 = vld [vmem:[%s5234_s17 + $0x38] sm:$0xff] }
 0xb38   : > { %2823 = vmatpush.msrb.mxu3 %v3634_v40 }
 0xb3f   : > { %3625 = vmatmul.msk.f32.gmra.mxu2 %vm676_vm0, %v4594_v0  ;;  %v3648_v0 = vld [vmem:[%s5234_s17 + $0x58] sm:$0xff] }
 0xb40   : > { %2899 = vmatpush.msrb.mxu2 %v3648_v0 }
 0xb42   : > { %2900 = vmatpush.msrb.mxu2 %v3647_v59 }
 0xb44   : > { %2901 = vmatpush.msrb.mxu2 %v3646_v46 }
 0xb46   : > { %v2534_v2 = vpop.xlane.xlu0 %2533  ;;  %2902 = vmatpush.msrb.mxu2 %v3645_v37  ;;  %v2763_v37 = vld [vmem:[%s5236_s19 + $0x8] sm:$0xff] }
 0xb47   : > { %3952 = vrcp.f32 %v2534_v2  ;;  %v2564_v52 = vand.u32 2147483648, %v2534_v2  ;;  %v2562_v8 = vand.u32 2147483647, %v2534_v2  ;;  %vm2558_vm12 = vweird.f32 %v2534_v2  ;;  %3626 = vmatmul.msk.f32.gmra.mxu2 %vm676_vm0, %v4599_v6 }
 0xb48   : > { %3051 = vmatpush.msra.mxu2 %v3676_v45 }
 0xb49   : > { %v2565_v44 = vor.u32 1.1754944e-38, %v2564_v52  ;;  %vm2563_vm3 = vcmp.eq.f32.partialorder %v2562_v8, 8.507059e+37  ;;  %v3732_v52 = vld [vmem:[%s5234_s17 + $0x118] sm:$0xff]  ;;  %v3716_v8 = vld [vmem:[%s5234_s17 + $0xe8] sm:$0xff] }
 0xb4a   : > { %3052 = vmatpush.msra.mxu2 %v3675_v57 }
 0xb4c   : > { %3053 = vmatpush.msra.mxu2 %v3674_v26 }
 0xb4d   : > { %v3953_v5 = vpop.eup %3952 }
 0xb4e   : > { %v2554_v4 = vmul.f32 %v3953_v5, %v2534_v2  ;;  %v2537_v47 = vpop.xlane.xlu0 %2536  ;;  %vm2559_vm11 = vweird.f32 %v3953_v5  ;;  %3054 = vmatpush.msra.mxu2 %v3673_v31  ;;  %v3702_v2 = vld [vmem:[%s5234_s17 + $0xc8] sm:$0xff]  ;;  %v3653_v31 = vld [vmem:[%s5236_s19 + $0x38] sm:$0xff] }
 0xb4f   : > { %3954 = vrcp.f32 %v2537_v47  ;;  %vm2560_vm13 = vmor %vm2558_vm12, %vm2559_vm11  ;;  %v2579_v9 = vand.u32 2147483648, %v2537_v47  ;;  %v2577_v14 = vand.u32 2147483647, %v2537_v47  ;;  %vm2573_vm15 = vweird.f32 %v2537_v47  ;;  %3649 = vmatmul.msk.f32.vlgmr.msrb.gmra.mxu2 %vm676_vm0, %v4895_v3 }
 0xb50   : > { %v2555_v11 = vsub.f32 1.0, %v2554_v4  ;;  %3203 = vmatpush.msrb.mxu2 %v3704_v51  ;;  %v3701_v4 = vld [vmem:[%s5234_s17 + $0xc0] sm:$0xff] }
 0xb51   : > { %v2580_v41 = vor.u32 1.1754944e-38, %v2579_v9  ;;  %vm2578_vm6 = vcmp.eq.f32.partialorder %v2577_v14, 8.507059e+37  ;;  %v2762_v14 = vld [vmem:[%s5236_s19] sm:$0xff] }
 0xb52   : > { %v2556_v12 = vmul.f32 %v3953_v5, %v2555_v11  ;;  %3204 = vmatpush.msrb.mxu2 %v3703_v1  ;;  %v3717_v11 = vld [vmem:[%s5234_s17 + $0xf0] sm:$0xff] }
 0xb54   : > { %v2557_v13 = vadd.f32 %v3953_v5, %v2556_v12  ;;  %3205 = vmatpush.msrb.mxu2 %v3702_v2  ;;  %v3731_v12 = vld [vmem:[%s5234_s17 + $0x110] sm:$0xff] }
 0xb55   : > { %v3955_v54 = vpop.eup %3954  ;;  %v4880_v6 = vpop.f32.mrf.mxu2 }
 0xb56   : > { %v2569_v22 = vmul.f32 %v3955_v54, %v2537_v47  ;;  %v2561_v24 = vsel %vm2560_vm13, %v3953_v5, %v2557_v13  ;;  %vm2574_vm14 = vweird.f32 %v3955_v54  ;;  %v3687_v5 = vld [vmem:[%s5234_s17 + $0xa0] sm:$0xff]  ;;  %3206 = vmatpush.msrb.mxu2 %v3701_v4  ;;  %v3718_v47 = vld [vmem:[%s5234_s17 + $0xf8] sm:$0xff]  ;;  %v3730_v13 = vld [vmem:[%s5234_s17 + $0x108] sm:$0xff] }
 0xb57   : > { %v2566_v25 = vsel %vm2563_vm3, %v2565_v44, %v2561_v24  ;;  %vm2575_vm5 = vmor %vm2573_vm15, %vm2574_vm14  ;;  %3650 = vmatmul.msk.f32.gmra.mxu2 %vm676_vm0, %v4907_v48  ;;  %v3729_v44 = vld [vmem:[%s5234_s17 + $0x100] sm:$0xff]  ;;  %v2677_v24 = vld [vmem:[%s5226_s9 + $0x18] sm:$0xff] }
 0xb58   : > { %v2570_v27 = vsub.f32 1.0, %v2569_v22  ;;  %v2567_v15 = vmul.f32 %v4759_v49, %v2566_v25  ;;  %3617 = vmatpush.xpose.msk.msra.mxu0 %vm1456_vm9, %v2677_v24  ;;  %v2676_v25 = vld [vmem:[%s5226_s9 + $0x10] sm:$0xff] }
 0xb59   : > { %v3708_v24 = vld [vmem:[%s5236_s19 + $0x90] sm:$0xff] }
 0xb5a   : > { %v2571_v7 = vmul.f32 %v3955_v54, %v2570_v27  ;;  %3615 = vmatmul.msk.f32.gmra.mxu3 %vm796_vm2, %v2567_v15  ;;  %v2674_v27 = vld [vmem:[%s5226_s9] sm:$0xff] }
 0xb5c   : > { %v2572_v36 = vadd.f32 %v3955_v54, %v2571_v7  ;;  %3618 = vmatpush.xpose.msk.msra.mxu0 %vm1456_vm9, %v2676_v25 }
 0xb5d   : > { %v4904_v35 = vpop.f32.mrf.mxu2 }
 0xb5e   : > { %v2576_v49 = vsel %vm2575_vm5, %v3955_v54, %v2572_v36  ;;  %v3715_v54 = vld [vmem:[%s5234_s17 + $0xe0] sm:$0xff] }
 0xb5f   : > { %v2581_v34 = vsel %vm2578_vm6, %v2580_v41, %v2576_v49  ;;  %3651 = vmatmul.msk.f32.gmra.mxu2 %vm676_vm0, %v4931_v60 }
 0xb60   : > { %v2582_v42 = vmul.f32 %v4764_v10, %v2581_v34  ;;  %v3633_v10 = vld [vmem:[%s5234_s17 + $0x30] sm:$0xff]  ;;  %3619 = vmatpush.xpose.msk.msra.mxu0 %vm1456_vm9, %v2675_v16  ;;  %v3709_v16 = vld [vmem:[%s5236_s19 + $0x98] sm:$0xff] }
 0xb61   : > { %2824 = vmatpush.msrb.mxu3 %v3633_v10 }
 0xb62   : > { %3616 = vmatmul.msk.f32.gmra.mxu3 %vm796_vm2, %v2582_v42 }
 0xb63   : > { %2825 = vmatpush.msrb.mxu3 %v3632_v43 }
 0xb64   : > { %3620 = vmatpush.xpose.msk.msra.mxu0 %vm1456_vm9, %v2674_v27  ;;  %v3667_v27 = vld [vmem:[%s5236_s19 + $0x50] sm:$0xff] }
 0xb65   : > { %2826 = vmatpush.msrb.mxu3 %v3631_v28  ;;  %v4928_v58 = vpop.f32.mrf.mxu2 }
 0xb67   : > { %2975 = vmatpush.msra.mxu3 %v3662_v56  ;;  %3677 = vmatmul.msk.f32.vlgmr.msra.gmra.mxu2 %vm676_vm0, %v4895_v3  ;;  %v2764_v56 = vld [vmem:[%s5236_s19 + $0x10] sm:$0x1] }
 0xb68   : > { %3355 = vmatpush.msra.mxu2 %v3732_v52 }
 0xb69   : > { %2976 = vmatpush.msra.mxu3 %v3661_v23  ;;  %v3652_v23 = vld [vmem:[%s5236_s19 + $0x30] sm:$0xff] }
 0xb6a   : > { %3635 = vmatmul.msk.f32.vlgmr.msrb.gmra.mxu3 %vm676_vm0, %v4895_v3  ;;  %3356 = vmatpush.msra.mxu2 %v3731_v12  ;;  %v3681_v12 = vld [vmem:[%s5236_s19 + $0x68] sm:$0xff] }
 0xb6b   : > { %2977 = vmatpush.msra.mxu3 %v3660_v61 }
 0xb6c   : > { %3357 = vmatpush.msra.mxu2 %v3730_v13  ;;  %v3639_v13 = vld [vmem:[%s5236_s19 + $0x20] sm:$0xff] }
 0xb6d   : > { %2978 = vmatpush.msra.mxu3 %v3659_v32 }
 0xb6e   : > { %3358 = vmatpush.msra.mxu2 %v3729_v44  ;;  %v3682_v44 = vld [vmem:[%s5236_s19 + $0x70] sm:$0x1] }
 0xb6f   : > { %3678 = vmatmul.msk.f32.gmra.mxu2 %vm676_vm0, %v4907_v48  ;;  %3127 = vmatpush.msrb.mxu3 %v3690_v50 }
 0xb71   : > { %3128 = vmatpush.msrb.mxu3 %v3689_v17  ;;  %v3654_v17 = vld [vmem:[%s5236_s19 + $0x40] sm:$0x1] }
 0xb72   : > { %3636 = vmatmul.msk.f32.gmra.mxu3 %vm676_vm0, %v4907_v48 }
 0xb73   : > { %3129 = vmatpush.msrb.mxu3 %v3688_v55 }
 0xb74   : > { %v2285_v39 = vpop.f32.mrf.mxu3 }
 0xb75   : > { %2631 = vrot.lane.b32.xlu2 %v2285_v39, %s5249_s28  ;;  %s5252_s28 = smov 12   ;;  %3130 = vmatpush.msrb.mxu3 %v3687_v5 }
 0xb77   : > { %3679 = vmatmul.msk.f32.gmra.mxu2 %vm676_vm0, %v4931_v60 }
 0xb7a   : > { %3637 = vmatmul.msk.f32.gmra.mxu3 %vm676_vm0, %v4931_v60 }
 0xb7f   : > { %3705 = vmatmul.msk.f32.vlgmr.msrb.gmra.mxu2 %vm676_vm0, %v4895_v3 }
 0xb82   : > { %3663 = vmatmul.msk.f32.vlgmr.msra.gmra.mxu3 %vm676_vm0, %v4895_v3 }
 0xb83   : > { %3279 = vmatpush.msra.mxu3 %v3718_v47 }
 0xb85   : > { %3280 = vmatpush.msra.mxu3 %v3717_v11  ;;  %v3680_v11 = vld [vmem:[%s5236_s19 + $0x60] sm:$0xff] }
 0xb87   : > { %3706 = vmatmul.msk.f32.gmra.mxu2 %vm676_vm0, %v4907_v48  ;;  %3281 = vmatpush.msra.mxu3 %v3716_v8 }
 0xb89   : > { %3282 = vmatpush.msra.mxu3 %v3715_v54 }
 0xb8a   : > { %3664 = vmatmul.msk.f32.gmra.mxu3 %vm676_vm0, %v4907_v48 }
 0xb8f   : > { %3707 = vmatmul.msk.f32.gmra.mxu2 %vm676_vm0, %v4931_v60 }
 0xb92   : > { %3665 = vmatmul.msk.f32.gmra.mxu3 %vm676_vm0, %v4931_v60 }
 0xb94   : > { %v2288_v53 = vpop.f32.mrf.mxu3 }
 0xb97   : > { %3733 = vmatmul.msk.f32.vlgmr.msra.gmra.mxu2 %vm676_vm0, %v4895_v3 }
 0xb9a   : > { %3691 = vmatmul.msk.f32.vlgmr.msrb.gmra.mxu3 %vm676_vm0, %v4895_v3 }
 0xb9d   : > { %v2291_v62 = vpop.f32.mrf.mxu3 }
 0xb9f   : > { %3734 = vmatmul.msk.f32.gmra.mxu2 %vm676_vm0, %v4907_v48 }
 0xba2   : > { %v2452_v33 = vpop.f32.mrf.mxu2  ;;  %3692 = vmatmul.msk.f32.gmra.mxu3 %vm676_vm0, %v4907_v48 }
 0xba3   : > { %2643 = vrot.lane.b32.xlu1 %v2452_v33, %s5274_s0 }
 0xba5   : > { %v2619_v38 = vpop.f32.mrf.mxu3 }
 0xba6   : > { %2655 = vrot.lane.b32.xlu2 %v2619_v38, %s5252_s28 }
 0xba7   : > { %3735 = vmatmul.msk.f32.gmra.mxu2 %vm676_vm0, %v4931_v60 }
 0xbaa   : > { %v2455_v63 = vpop.f32.mrf.mxu2  ;;  %3693 = vmatmul.msk.f32.gmra.mxu3 %vm676_vm0, %v4931_v60 }
 0xbab   : > { %2633 = vrot.lane.b32.xlu1 %v2288_v53, %s5275_s23 }
 0xbae   : > { %2645 = vrot.lane.b32.xlu2 %v2455_v63, %s5274_s0 }
 0xbb2   : > { %3719 = vmatmul.msk.f32.vlgmr.msra.gmra.mxu3 %vm676_vm0, %v4895_v3  ;;  %v2458_v18 = vpop.f32.mrf.mxu2 }
 0xbb6   : > { %2635 = vrot.lane.b32.xlu2 %v2291_v62, %s5275_s23  ;;  %s5277_s23 = smul.u32 24, %s5279_s25 }
 0xbb8   : > { %s656_s29 = scalar_lea.vmem %s5238_s21, %s5277_s23 }
 0xbba   : > { %3720 = vmatmul.msk.f32.gmra.mxu3 %vm676_vm0, %v4907_v48  ;;  %v2753_v15 = vpop.f32.mrf.mxu2 }
 0xbc2   : > { %3721 = vmatmul.msk.f32.gmra.mxu3 %vm676_vm0, %v4931_v60  ;;  %v2756_v9 = vpop.f32.mrf.mxu2 }
 0xbca   : > { %v2759_v19 = vpop.f32.mrf.mxu2 }
 0xbcb   : > { %3627 = vmatpush.msk.msra.mxu1 %vm887_vm4, %v2759_v19  ;;  %v3736_v19 = vld [vmem:[%s5236_s19 + $0xc0] sm:$0xff] }
 0xbcd   : > { %2791 = vmatpush.msra.mxu1 %v2756_v9  ;;  %v3668_v9 = vld [vmem:[%s5236_s19 + $0x58] sm:$0x1] }
 0xbcf   : > { %2792 = vmatpush.msra.mxu1 %v2753_v15  ;;  %v2632_v36 = vpop.permute.xlu2 %2631  ;;  %v3710_v15 = vld [vmem:[%s5236_s19 + $0xa0] sm:$0x1] }
 0xbd0   : > { %3628 = vmatmul.msk.f32.vlgmr.msra.gmra.mxu1 %vm796_vm2, %v2762_v14  ;;  %v2664_v49 = vsel %vm1965_vm8, %v4880_v6, %v2632_v36  ;;  %v3826_v14 = vld [vmem:[%s5227_s10] ss:$0 sm:$0xff] }
 0xbd1   : > { %v3827_v36 = vld [vmem:[%s5237_s20] ss:$0 sm:$0xff] }
 0xbd2   : > { %v2904_v41 = vpop.f32.mrf.mxu2 }
 0xbd8   : > { %3629 = vmatmul.msk.f32.gmra.mxu1 %vm796_vm2, %v2763_v37 }
 0xbda   : > { %v2907_v0 = vpop.f32.mrf.mxu2 }
 0xbdd   : > { %v2622_v20 = vpop.f32.mrf.mxu3 }
 0xbde   : > { %2657 = vrot.lane.b32.xlu1 %v2622_v20, %s5276_s22 }
 0xbe0   : > { %3630 = vmatmul.msk.f32.gmra.mxu1 %vm796_vm2, %v2764_v56 }
 0xbe2   : > { %v2910_v59 = vpop.f32.mrf.mxu2 }
 0xbe3   : > { %3655 = vmatpush.msk.msrb.mxu1 %vm887_vm4, %v2910_v59  ;;  %v3723_v59 = vld [vmem:[%s5236_s19 + $0xb0] sm:$0xff] }
 0xbe5   : > { %v2625_v22 = vpop.f32.mrf.mxu3  ;;  %2943 = vmatpush.msrb.mxu1 %v2907_v0  ;;  %v3722_v0 = vld [vmem:[%s5236_s19 + $0xa8] sm:$0xff] }
 0xbe6   : > { %2659 = vrot.lane.b32.xlu0 %v2625_v22, %s5276_s22  ;;  %2647 = vrot.lane.b32.xlu1 %v2458_v18, %s5274_s0  ;;  %v3640_v18 = vld [vmem:[%s5236_s19 + $0x28] sm:$0x1] }
 0xbe7   : > { %2944 = vmatpush.msrb.mxu1 %v2904_v41  ;;  %v3666_v22 = vld [vmem:[%s5236_s19 + $0x48] sm:$0xff] }
 0xbe8   : > { %3656 = vmatmul.msk.f32.vlgmr.msrb.gmra.mxu1 %vm796_vm2, %v3652_v23 }
 0xbea   : > { %v3056_v28 = vpop.f32.mrf.mxu2 }
 0xbed   : > { %v2828_v7 = vpop.f32.mrf.mxu3 }
 0xbf0   : > { %3657 = vmatmul.msk.f32.gmra.mxu1 %vm796_vm2, %v3653_v31 }
 0xbf2   : > { %v3059_v3 = vpop.f32.mrf.mxu2 }
 0xbf5   : > { %v2831_v42 = vpop.f32.mrf.mxu3 }
 0xbf8   : > { %3658 = vmatmul.msk.f32.gmra.mxu1 %vm796_vm2, %v3654_v17 }
 0xbfa   : > { %v3062_v53 = vpop.f32.mrf.mxu2 }
 0xbfb   : > { %3683 = vmatpush.msk.msra.mxu1 %vm887_vm4, %v3062_v53  ;;  %v3419_v53 = vmul.f32 %v3827_v36, %v4465_v30 }
 0xbfd   : > { %v2834_v43 = vpop.f32.mrf.mxu3  ;;  %3095 = vmatpush.msra.mxu1 %v3059_v3 }
 0xbfe   : > { %3641 = vmatpush.msk.msrb.mxu0 %vm887_vm4, %v2834_v43 }
 0xbff   : > { %3096 = vmatpush.msra.mxu1 %v3056_v28  ;;  %v3724_v28 = vld [vmem:[%s5236_s19 + $0xb8] sm:$0x1] }
 0xc00   : > { %v2656_v39 = vpop.permute.xlu2 %2655  ;;  %2867 = vmatpush.msrb.mxu0 %v2831_v42  ;;  %3684 = vmatmul.msk.f32.vlgmr.msra.gmra.mxu1 %vm796_vm2, %v3680_v11  ;;  %v3737_v42 = vld [vmem:[%s5236_s19 + $0xc8] sm:$0xff] }
 0xc02   : > { %2868 = vmatpush.msrb.mxu0 %v2828_v7  ;;  %v3208_v45 = vpop.f32.mrf.mxu2  ;;  %v3694_v7 = vld [vmem:[%s5236_s19 + $0x78] sm:$0xff] }
 0xc05   : > { %v2980_v6 = vpop.f32.mrf.mxu3 }
 0xc08   : > { %v2646_v61 = vpop.permute.xlu2 %2645  ;;  %3685 = vmatmul.msk.f32.gmra.mxu1 %vm796_vm2, %v3681_v12 }
 0xc0a   : > { %v3211_v60 = vpop.f32.mrf.mxu2 }
 0xc0d   : > { %v2983_v46 = vpop.f32.mrf.mxu3 }
 0xc10   : > { %v2636_v51 = vpop.permute.xlu2 %2635  ;;  %3686 = vmatmul.msk.f32.gmra.mxu1 %vm796_vm2, %v3682_v44 }
 0xc12   : > { %v3214_v38 = vpop.f32.mrf.mxu2 }
 0xc13   : > { %3711 = vmatpush.msk.msrb.mxu1 %vm887_vm4, %v3214_v38 }
 0xc15   : > { %v2644_v34 = vpop.permute.xlu1 %2643  ;;  %v2986_v48 = vpop.f32.mrf.mxu3  ;;  %3247 = vmatpush.msrb.mxu1 %v3211_v60 }
 0xc16   : > { %v2667_v40 = vsel %vm757_vm1, %v2664_v49, %v2644_v34  ;;  %v3418_v34 = vmul.f32 %v3827_v36, %v4459_v29  ;;  %v3696_v29 = vld [vmem:[%s5236_s19 + $0x88] sm:$0x1] }
 0xc17   : > { %v2671_v10 = vsel %vm2670_vm7, %v2667_v40, %v2656_v39  ;;  %3248 = vmatpush.msrb.mxu1 %v3208_v45  ;;  %v3695_v40 = vld [vmem:[%s5236_s19 + $0x80] sm:$0xff] }
 0xc18   : > { %3621 = vmatmul.msk.f32.vlgmr.msra.gmra.mxu0 %vm1456_vm9, %v2671_v10  ;;  %3712 = vmatmul.msk.f32.vlgmr.msrb.gmra.mxu1 %vm796_vm2, %v3708_v24  ;;  %v3738_v10 = vld [vmem:[%s5236_s19 + $0xd0] sm:$0x1] }
 0xc19   : > { %3669 = vmatpush.msk.msra.mxu0 %vm887_vm4, %v2986_v48 }
 0xc1a   : > { %v3360_v5 = vpop.f32.mrf.mxu2 }
 0xc1b   : > { %3019 = vmatpush.msra.mxu0 %v2983_v46 }
 0xc1d   : > { %3020 = vmatpush.msra.mxu0 %v2980_v6  ;;  %v3132_v57 = vpop.f32.mrf.mxu3  ;;  %v2634_v26 = vpop.permute.xlu1 %2633 }
 0xc1e   : > { %v2665_v32 = vsel %vm1965_vm8, %v4904_v35, %v2634_v26  ;;  %v2666_v35 = vsel %vm1965_vm8, %v4928_v58, %v2636_v51  ;;  %v3638_v58 = vld [vmem:[%s5236_s19 + $0x18] sm:$0xff]  ;;  %v3420_v26 = vmul.f32 %v3827_v36, %v4471_v21 }
 0xc1f   : > { %v2668_v33 = vsel %vm757_vm1, %v2665_v32, %v2646_v61 }
 0xc20   : > { %3713 = vmatmul.msk.f32.gmra.mxu1 %vm796_vm2, %v3709_v16 }
 0xc22   : > { %v3363_v52 = vpop.f32.mrf.mxu2 }
 0xc25   : > { %v3135_v50 = vpop.f32.mrf.mxu3 }
 0xc28   : > { %3714 = vmatmul.msk.f32.gmra.mxu1 %vm796_vm2, %v3710_v15 }
 0xc2a   : > { %v3366_v54 = vpop.f32.mrf.mxu2 }
 0xc2b   : > { %3739 = vmatpush.msk.msra.mxu1 %vm887_vm4, %v3366_v54  ;;  %v2731_v54 = vld [vmem:[%s5235_s18 + $0x10] sm:$0x1] }
 0xc2d   : > { %v3138_v47 = vpop.f32.mrf.mxu3  ;;  %3399 = vmatpush.msra.mxu1 %v3363_v52 }
 0xc2f   : > { %3400 = vmatpush.msra.mxu1 %v3360_v5 }
 0xc30   : > { %3740 = vmatmul.msk.f32.vlgmr.msra.gmra.mxu1 %vm796_vm2, %v3736_v19 }
 0xc35   : > { %v3284_v8 = vpop.f32.mrf.mxu3 }
 0xc38   : > { %3741 = vmatmul.msk.f32.gmra.mxu1 %vm796_vm2, %v3737_v42 }
 0xc3d   : > { %v3287_v20 = vpop.f32.mrf.mxu3 }
 0xc40   : > { %3742 = vmatmul.msk.f32.gmra.mxu1 %vm796_vm2, %v3738_v10 }
 0xc45   : > { %v3290_v25 = vpop.f32.mrf.mxu3 }
 0xc4d   : > { %v2794_v43 = vpop.f32.mrf.mxu1 }
 0xc50   : > { %v2658_v62 = vpop.permute.xlu1 %2657 }
 0xc51   : > { %v2672_v63 = vsel %vm2670_vm7, %v2668_v33, %v2658_v62 }
 0xc52   : > { %3622 = vmatmul.msk.f32.gmra.mxu0 %vm1456_vm9, %v2672_v63 }
 0xc55   : > { %v2797_v6 = vpop.f32.mrf.mxu1 }
 0xc58   : > { %v2660_v1 = vpop.permute.xlu0 %2659  ;;  %v2648_v55 = vpop.permute.xlu1 %2647 }
 0xc59   : > { %v2669_v2 = vsel %vm757_vm1, %v2666_v35, %v2648_v55  ;;  %v2729_v55 = vld [vmem:[%s5235_s18] sm:$0xff]  ;;  %vm3429_vm1 = vcmask 253952  }
 0xc5a   : > { %v2673_v4 = vsel %vm2670_vm7, %v2669_v2, %v2660_v1  ;;  %v2803_v2 = vadd.f32 %v2794_v43, %v2729_v55 }
 0xc5b   : > { %3623 = vmatmul.msk.f32.gmra.mxu0 %vm1456_vm9, %v2673_v4  ;;  %v2730_v4 = vld [vmem:[%s5235_s18 + $0x8] sm:$0xff] }
 0xc5d   : > { %v2800_v46 = vpop.f32.mrf.mxu1 }
 0xc63   : > { %3642 = vmatmul.msk.f32.vlgmr.msrb.gmra.mxu0 %vm796_vm2, %v3638_v58  ;;  %v2804_v58 = vadd.f32 %v2797_v6, %v2730_v4 }
 0xc64   : > { %3697 = vmatpush.msk.msrb.mxu0 %vm887_vm4, %v3138_v47 }
 0xc65   : > { %v2946_v3 = vpop.f32.mrf.mxu1 }
 0xc66   : > { %3171 = vmatpush.msrb.mxu0 %v3135_v50 }
 0xc68   : > { %3172 = vmatpush.msrb.mxu0 %v3132_v57 }
 0xc6b   : > { %3643 = vmatmul.msk.f32.gmra.mxu0 %vm796_vm2, %v3639_v13 }
 0xc6d   : > { %v2949_v45 = vpop.f32.mrf.mxu1 }
 0xc73   : > { %3644 = vmatmul.msk.f32.gmra.mxu0 %vm796_vm2, %v3640_v18 }
 0xc75   : > { %v2952_v61 = vpop.f32.mrf.mxu1 }
 0xc7b   : > { %3670 = vmatmul.msk.f32.vlgmr.msra.gmra.mxu0 %vm796_vm2, %v3666_v22  ;;  %v2805_v22 = vadd.f32 %v2800_v46, %v2731_v54 }
 0xc7c   : > { %3725 = vmatpush.msk.msra.mxu0 %vm887_vm4, %v3290_v25 }
 0xc7d   : > { %v3098_v62 = vpop.f32.mrf.mxu1 }
 0xc7e   : > { %3323 = vmatpush.msra.mxu0 %v3287_v20 }
 0xc80   : > { %3324 = vmatpush.msra.mxu0 %v3284_v8 }
 0xc83   : > { %3671 = vmatmul.msk.f32.gmra.mxu0 %vm796_vm2, %v3667_v27 }
 0xc85   : > { %v3101_v38 = vpop.f32.mrf.mxu1 }
 0xc8b   : > { %3672 = vmatmul.msk.f32.gmra.mxu0 %vm796_vm2, %v3668_v9 }
 0xc8d   : > { %v3104_v50 = vpop.f32.mrf.mxu1 }
 0xc93   : > { %3698 = vmatmul.msk.f32.vlgmr.msrb.gmra.mxu0 %vm796_vm2, %v3694_v7 }
 0xc95   : > { %v2720_v41 = vpop.f32.mrf.mxu0  ;;  %v3250_v51 = vpop.f32.mrf.mxu1 }
 0xc96   : > { %v2721_v49 = vadd.f32 %v3826_v14, %v2720_v41 }
 0xc98   : > { %v5168_v39 = vadd.f32 %v3418_v34, %v2721_v49 }
 0xc9b   : > { %3699 = vmatmul.msk.f32.gmra.mxu0 %vm796_vm2, %v3695_v40 }
 0xc9d   : > { %v3253_v30 = vpop.f32.mrf.mxu1 }
 0xca3   : > { %3700 = vmatmul.msk.f32.gmra.mxu0 %vm796_vm2, %v3696_v29 }
 0xca5   : > { %v3256_v47 = vpop.f32.mrf.mxu1 }
 0xcab   : > { %3726 = vmatmul.msk.f32.vlgmr.msra.gmra.mxu0 %vm796_vm2, %v3722_v0 }
 0xcad   : > { %v3402_v18 = vpop.f32.mrf.mxu1 }
 0xcb3   : > { %3727 = vmatmul.msk.f32.gmra.mxu0 %vm796_vm2, %v3723_v59 }
 0xcb5   : > { %v3405_v49 = vpop.f32.mrf.mxu1 }
 0xcbb   : > { %3728 = vmatmul.msk.f32.gmra.mxu0 %vm796_vm2, %v3724_v28 }
 0xcbd   : > { %v3408_v28 = vpop.f32.mrf.mxu1 }
 0xccf   : > { %v2723_v37 = vpop.f32.mrf.mxu0 }
 0xcd0   : > { %v2724_v48 = vadd.f32 %v3826_v14, %v2723_v37 }
 0xcd2   : > { %v3422_v56 = vadd.f32 %v3419_v53, %v2724_v48 }
 0xcd8   : > { %v2726_v23 = vpop.f32.mrf.mxu0 }
 0xcd9   : > { %v2727_v57 = vadd.f32 %v3826_v14, %v2726_v23 }
 0xcdb   : > { %v3423_v60 = vadd.f32 %v3420_v26, %v2727_v57 }
 0xce0   : > { %v2870_v31 = vpop.f32.mrf.mxu0 }
 0xce1   : > { %v2879_v21 = vadd.f32 %v2870_v31, %v2803_v2 }
 0xce3   : > { %v2955_v11 = vadd.f32 %v2946_v3, %v2879_v21 }
 0xce8   : > { %v2873_v32 = vpop.f32.mrf.mxu0 }
 0xce9   : > { %v2880_v12 = vadd.f32 %v2873_v32, %v2804_v58 }
 0xceb   : > { %v2956_v44 = vadd.f32 %v2949_v45, %v2880_v12 }
 0xcf0   : > { %v2876_v33 = vpop.f32.mrf.mxu0 }
 0xcf1   : > { %v2881_v25 = vadd.f32 %v2876_v33, %v2805_v22 }
 0xcf3   : > { %v2957_v19 = vadd.f32 %v2952_v61, %v2881_v25 }
 0xcf8   : > { %v3022_v63 = vpop.f32.mrf.mxu0 }
 0xcf9   : > { %v3031_v52 = vadd.f32 %v3022_v63, %v2955_v11 }
 0xcfb   : > { %v3107_v13 = vadd.f32 %v3098_v62, %v3031_v52 }
 0xd00   : > { %v3025_v17 = vpop.f32.mrf.mxu0 }
 0xd01   : > { %v3032_v24 = vadd.f32 %v3025_v17, %v2956_v44 }
 0xd03   : > { %v3108_v15 = vadd.f32 %v3101_v38, %v3032_v24 }
 0xd08   : > { %v3028_v35 = vpop.f32.mrf.mxu0 }
 0xd09   : > { %v3033_v36 = vadd.f32 %v3028_v35, %v2957_v19 }
 0xd0b   : > { %v3109_v40 = vadd.f32 %v3104_v50, %v3033_v36 }
 0xd10   : > { %v3174_v1 = vpop.f32.mrf.mxu0 }
 0xd11   : > { %v3183_v20 = vadd.f32 %v3174_v1, %v3107_v13 }
 0xd13   : > { %v3259_v16 = vadd.f32 %v3250_v51, %v3183_v20 }
 0xd18   : > { %v3177_v5 = vpop.f32.mrf.mxu0 }
 0xd19   : > { %v3184_v7 = vadd.f32 %v3177_v5, %v3108_v15 }
 0xd1b   : > { %v3260_v34 = vadd.f32 %v3253_v30, %v3184_v7 }
 0xd20   : > { %v3180_v8 = vpop.f32.mrf.mxu0 }
 0xd21   : > { %v3185_v29 = vadd.f32 %v3180_v8, %v3109_v40 }
 0xd23   : > { %v3261_v59 = vadd.f32 %v3256_v47, %v3185_v29 }
 0xd28   : > { %v3326_v27 = vpop.f32.mrf.mxu0 }
 0xd29   : > { %v3335_v9 = vadd.f32 %v3326_v27, %v3259_v16 }
 0xd2b   : > { %v3411_v14 = vadd.f32 %v3402_v18, %v3335_v9 }
 0xd2d   : > { %v3424_v41 = vadd.f32 %v5168_v39, %v3411_v14 }
 0xd2f   : > { %3427 = vst.msk [vmem:[%s656_s29] sm:$0xff] %vm676_vm0, %v3424_v41 }
 0xd30   : > { %v3329_v42 = vpop.f32.mrf.mxu0 }
 0xd31   : > { %v3336_v10 = vadd.f32 %v3329_v42, %v3260_v34 }
 0xd33   : > { %v3412_v0 = vadd.f32 %v3405_v49, %v3336_v10 }
 0xd35   : > { %v3425_v43 = vadd.f32 %v3422_v56, %v3412_v0 }
 0xd37   : > { %3428 = vst.msk [vmem:[%s656_s29 + $0x8] sm:$0xff] %vm676_vm0, %v3425_v43 }
 0xd38   : > { %v3332_v6 = vpop.f32.mrf.mxu0 }
 0xd39   : > { %v3337_v46 = vadd.f32 %v3332_v6, %v3261_v59 }
 0xd3b   : > { %v3413_v3 = vadd.f32 %v3408_v28, %v3337_v46 }
 0xd3d   : > { %v3426_v37 = vadd.f32 %v3423_v60, %v3413_v3 }
 0xd3f   : > { %3430 = vst.msk [vmem:[%s656_s29 + $0x10] sm:$0x1] %vm3429_vm1, %v3426_v37 }
 0xd40 PF: > { %s31_s2 = sadd.s32 1, %s3968_s2  }
 0xd41   : > { %p28_p4 = scmp.ge.s32.totalorder %s31_s2, 4  }
 0xd43   :  { %30 = sbr.rel (!%p28_p4) target bundleno = 7 (0x7), region = 150 }

</bundles_post_ra>
